<compile_context>
chip_gen: v7x
topology: tpu7x:2x2x1
jax: 0.10.0
libtpu: 0.0.40
codegen_flags: <defaults>
</compile_context>

<pallas_src>
import numpy as np
import jax
import jax.numpy as jnp
from jax.experimental import pallas as pl
from jax.experimental.pallas import tpu as pltpu


def _silu(v):
    # sigmoid via exp + approximate EUP reciprocal (keeps the divide off the VALU).
    return v * pl.reciprocal(1.0 + jnp.exp(-v), approx=True)


def bottleneck_kernel(x_ref, w1_ref, s1_ref, b1_ref,
                      w2_ref, s2_ref, b2_ref,
                      w3_ref, s3_ref, b3_ref,
                      out_ref, pad_ref):
    """One grid step = block_b images.

    x_ref   : (Bt, H, W, Cin)  f32 input tile
    w1_ref  : (Cin, width)     bf16, 1x1 conv weight as a matrix
    w2_ref  : (9, width, width) bf16, 3x3 grouped conv as block-diagonal per-tap matrices
    w3_ref  : (width, Cout)    bf16, 1x1 conv weight as a matrix
    s*/b*   : (1, C)           f32 folded BatchNorm scale / shift
    pad_ref : (Bt, H+2, W+2, width) f32 VMEM scratch holding the zero-padded conv1 activation
    """
    Bt, H, W, Cin = x_ref.shape
    width = w1_ref.shape[1]
    Cout = w3_ref.shape[1]
    M = Bt * H * W

    # Hoisted folded-BN parameters (single loads, no per-iteration re-broadcast).
    s1 = s1_ref[...]; b1 = b1_ref[...]
    s2 = s2_ref[...]; b2 = b2_ref[...]
    s3 = s3_ref[...]; b3 = b3_ref[...]

    x = x_ref[...]                                   # (Bt, H, W, Cin) f32
    x2d = x.reshape(M, Cin)                          # (M, Cin)

    # ---- conv1 (1x1) + bn1 + SiLU : one whole-block matmul -------------------------
    y = jnp.dot(x2d.astype(jnp.bfloat16), w1_ref[...],
                preferred_element_type=jnp.float32)  # (M, width) f32
    y = _silu(y * s1 + b1)

    # ---- refresh only the zero halo of the padded scratch --------------------------
    # The interior is fully overwritten below, so no full memset. The scratch is
    # per-core and persists across grid steps, so this cannot be gated on
    # program_id == 0 when the grid axis is "parallel" (megacore).
    pad_ref[:, 0:1, :, :] = jnp.zeros((Bt, 1, W + 2, width), pad_ref.dtype)
    pad_ref[:, H + 1:H + 2, :, :] = jnp.zeros((Bt, 1, W + 2, width), pad_ref.dtype)
    pad_ref[:, :, 0:1, :] = jnp.zeros((Bt, H + 2, 1, width), pad_ref.dtype)
    pad_ref[:, :, W + 1:W + 2, :] = jnp.zeros((Bt, H + 2, 1, width), pad_ref.dtype)

    # ---- write the conv1 activation into the scratch interior as one slab ----------
    pad_ref[:, 1:H + 1, 1:W + 1, :] = y.reshape(Bt, H, W, width)

    # ---- conv2 (3x3 grouped via block-diagonal taps) : 9 whole-block matmuls --------
    acc = jnp.zeros((M, width), jnp.float32)
    for dy in range(3):
        for dx in range(3):
            slab = pad_ref[:, dy:dy + H, dx:dx + W, :].reshape(M, width)
            acc = acc + jnp.dot(slab.astype(jnp.bfloat16), w2_ref[dy * 3 + dx],
                                preferred_element_type=jnp.float32)
    v = _silu(acc * s2 + b2)

    # ---- conv3 (1x1) + bn3 + residual + SiLU : one matmul, one slab store -----------
    v = jnp.dot(v.astype(jnp.bfloat16), w3_ref[...],
                preferred_element_type=jnp.float32)  # (M, Cout)
    v = v * s3 + b3
    v = v + x2d                                      # identity add (Cin == Cout)
    v = _silu(v)
    out_ref[...] = v.reshape(Bt, H, W, Cout).astype(out_ref.dtype)


def bottleneck_transform(x, w1m, bn1, w2taps, bn2, w3m, bn3, *, block_b=1):
    """x: (B, H, W, Cin) float32 (NHWC).
    w1m (Cin,width), w2taps (9,width,width) block-diagonal, w3m (width,Cout): bf16.
    bn* = (scale, shift), each (1, C) float32 (folded eval-mode BatchNorm)."""
    B, H, W, Cin = x.shape
    width = w1m.shape[1]
    Cout = w3m.shape[1]
    assert Cin == Cout, "residual add requires inplanes == channels * expansion"
    assert B % block_b == 0
    Bt = block_b
    s1, b1 = bn1
    s2, b2 = bn2
    s3, b3 = bn3

    full = lambda shape: pl.BlockSpec(shape, lambda n: (0,) * len(shape))
    grid_spec = pltpu.PrefetchScalarGridSpec(
        num_scalar_prefetch=0,
        grid=(B // Bt,),
        in_specs=[
            pl.BlockSpec((Bt, H, W, Cin), lambda n: (n, 0, 0, 0)),
            full((Cin, width)),
            full((1, width)), full((1, width)),
            full((9, width, width)),
            full((1, width)), full((1, width)),
            full((width, Cout)),
            full((1, Cout)), full((1, Cout)),
        ],
        out_specs=pl.BlockSpec((Bt, H, W, Cout), lambda n: (n, 0, 0, 0)),
        scratch_shapes=[pltpu.VMEM((Bt, H + 2, W + 2, width), jnp.float32)],
    )

    # Advisory cost hint for the XLA scheduler around the custom call.
    M = B * H * W
    mm_flops = 2 * M * (Cin * width + 9 * width * width + width * Cout)
    ew_flops = 12 * M * (2 * width + Cout)
    cost = pl.CostEstimate(
        flops=mm_flops + ew_flops,
        transcendentals=M * (2 * width + Cout),
        bytes_accessed=(x.size + B * H * W * Cout) * 4
        + (w1m.size + w2taps.size + w3m.size) * 2,
    )

    return pl.pallas_call(
        bottleneck_kernel,
        out_shape=jax.ShapeDtypeStruct((B, H, W, Cout), jnp.float32),
        grid_spec=grid_spec,
        compiler_params=pltpu.CompilerParams(dimension_semantics=("parallel",)),
        cost_estimate=cost,
    )(x, w1m, s1, b1, w2taps, s2, b2, w3m, s3, b3)


# --------------------------- pure-JAX reference (for validation) ----------------------------
def _conv_nhwc(x, w_oihw, groups=1):
    k = w_oihw.shape[-1]
    w_hwio = jnp.transpose(w_oihw, (2, 3, 1, 0))          # (kh, kw, in/groups, out)
    pad = (k - 1) // 2
    return jax.lax.conv_general_dilated(
        x, w_hwio, window_strides=(1, 1), padding=[(pad, pad), (pad, pad)],
        dimension_numbers=("NHWC", "HWIO", "NHWC"), feature_group_count=groups)


def _bn_eval(y, gamma, beta, mean, var, eps=1e-5):
    return (y - mean) * (gamma / jnp.sqrt(var + eps)) + beta


def ref_forward(x, w1, p1, w2, p2, w3, p3):
    silu = lambda v: v * jax.nn.sigmoid(v)
    out = silu(_bn_eval(_conv_nhwc(x, w1, 1), *p1))
    out = silu(_bn_eval(_conv_nhwc(out, w2, 4), *p2))
    out = _bn_eval(_conv_nhwc(out, w3, 1), *p3)
    out = out + x
    return silu(out)


def _fold_bn(gamma, beta, mean, var, eps=1e-5):
    scale = gamma / jnp.sqrt(var + eps)
    shift = beta - mean * scale
    return scale.reshape(1, -1).astype(jnp.float32), shift.reshape(1, -1).astype(jnp.float32)


if __name__ == "__main__":
    key = jax.random.PRNGKey(0)
    B, H, W = 2, 16, 16
    inplanes, channels = 8, 4
    expansion, base_width, groups = 2, 64, 1
    conv2_groups = 4
    width = int(channels * (base_width / 64.0)) * groups        # 4
    Cout = channels * expansion                                 # 8
    assert inplanes == Cout, "residual add requires inplanes == channels * expansion"

    keys = jax.random.split(key, 8)
    x = jax.random.normal(keys[0], (B, H, W, inplanes), jnp.float32)   # layout: NHWC

    # Deterministic synthetic parameters (PyTorch conv weight layout OIHW).
    w1 = 0.2 * jax.random.normal(keys[1], (width, inplanes, 1, 1), jnp.float32)
    w2 = 0.2 * jax.random.normal(keys[2], (width, width // conv2_groups, 3, 3), jnp.float32)
    w3 = 0.2 * jax.random.normal(keys[3], (Cout, width, 1, 1), jnp.float32)

    def bn_params(k, c):
        k1, k2, k3, k4 = jax.random.split(k, 4)
        gamma = 1.0 + 0.1 * jax.random.normal(k1, (c,), jnp.float32)
        beta = 0.1 * jax.random.normal(k2, (c,), jnp.float32)
        mean = 0.1 * jax.random.normal(k3, (c,), jnp.float32)
        var = jax.random.uniform(k4, (c,), jnp.float32, 0.5, 1.5)
        return gamma, beta, mean, var

    p1 = bn_params(keys[4], width)
    p2 = bn_params(keys[5], width)
    p3 = bn_params(keys[6], Cout)

    # Fold 1x1 conv weights into plain matrices (bf16 for the MXU, f32 accumulation in-kernel).
    w1m = jnp.transpose(w1[:, :, 0, 0]).astype(jnp.bfloat16)    # (Cin, width)
    w3m = jnp.transpose(w3[:, :, 0, 0]).astype(jnp.bfloat16)    # (width, Cout)

    # Expand the grouped 3x3 conv into 9 block-diagonal (width, width) tap matrices.
    # (dense block-diagonal is free on the MXU while width <= 128)
    w2_np = np.asarray(w2)
    in_per_group = width // conv2_groups
    out_per_group = width // conv2_groups
    taps = np.zeros((9, width, width), np.float32)
    for o in range(width):
        g = o // out_per_group
        for i in range(in_per_group):
            for dy in range(3):
                for dx in range(3):
                    taps[dy * 3 + dx, g * in_per_group + i, o] = w2_np[o, i, dy, dx]
    w2taps = jnp.asarray(taps, jnp.bfloat16)

    bn1 = _fold_bn(*p1)
    bn2 = _fold_bn(*p2)
    bn3 = _fold_bn(*p3)

    out = bottleneck_transform(x, w1m, bn1, w2taps, bn2, w3m, bn3, block_b=1)
    out = jax.block_until_ready(out)

    ref = jax.block_until_ready(ref_forward(x, w1, p1, w2, p2, w3, p3))
    np.testing.assert_allclose(np.asarray(out), np.asarray(ref), rtol=2e-2, atol=2e-2)

    print("KERNEL_OK")
</pallas_src>

<mosaic_0001>
module attributes {stable_mosaic.version = 11 : i64} {
  func.func @bottleneck_kernel(%arg0: i32, %arg1: memref<1x16x16x8xf32, #tpu.memory_space<vmem>>, %arg2: memref<8x4xbf16, #tpu.memory_space<vmem>>, %arg3: memref<1x4xf32, #tpu.memory_space<vmem>>, %arg4: memref<1x4xf32, #tpu.memory_space<vmem>>, %arg5: memref<9x4x4xbf16, #tpu.memory_space<vmem>>, %arg6: memref<1x4xf32, #tpu.memory_space<vmem>>, %arg7: memref<1x4xf32, #tpu.memory_space<vmem>>, %arg8: memref<4x8xbf16, #tpu.memory_space<vmem>>, %arg9: memref<1x8xf32, #tpu.memory_space<vmem>>, %arg10: memref<1x8xf32, #tpu.memory_space<vmem>>, %arg11: memref<1x16x16x8xf32, #tpu.memory_space<vmem>>, %arg12: memref<1x18x18x4xf32, #tpu.memory_space<vmem>>) attributes {dimension_semantics = [#tpu.dimension_semantics<parallel>], iteration_bounds = array<i64: 2>, scalar_prefetch = 0 : i64, scratch_operands = 1 : i64, tpu.core_type = #tpu.core_type<tc>, window_params = [{transform_indices = @transform_0, window_bounds = array<i64: 1, 16, 16, 8>}, {pipeline_mode = #tpu.pipeline_mode<synchronous>, transform_indices = @transform_1, window_bounds = array<i64: 8, 4>}, {pipeline_mode = #tpu.pipeline_mode<synchronous>, transform_indices = @transform_2, window_bounds = array<i64: 1, 4>}, {pipeline_mode = #tpu.pipeline_mode<synchronous>, transform_indices = @transform_3, window_bounds = array<i64: 1, 4>}, {pipeline_mode = #tpu.pipeline_mode<synchronous>, transform_indices = @transform_4, window_bounds = array<i64: 9, 4, 4>}, {pipeline_mode = #tpu.pipeline_mode<synchronous>, transform_indices = @transform_5, window_bounds = array<i64: 1, 4>}, {pipeline_mode = #tpu.pipeline_mode<synchronous>, transform_indices = @transform_6, window_bounds = array<i64: 1, 4>}, {pipeline_mode = #tpu.pipeline_mode<synchronous>, transform_indices = @transform_7, window_bounds = array<i64: 4, 8>}, {pipeline_mode = #tpu.pipeline_mode<synchronous>, transform_indices = @transform_8, window_bounds = array<i64: 1, 8>}, {pipeline_mode = #tpu.pipeline_mode<synchronous>, transform_indices = @transform_9, window_bounds = array<i64: 1, 8>}, {transform_indices = @transform_10, window_bounds = array<i64: 1, 16, 16, 8>}]} {
    %c0 = arith.constant 0 : index
    %c0_0 = arith.constant 0 : index
    %0 = vector.load %arg3[%c0, %c0_0] : memref<1x4xf32, #tpu.memory_space<vmem>>, vector<1x4xf32>
    %c0_1 = arith.constant 0 : index
    %c0_2 = arith.constant 0 : index
    %1 = vector.load %arg4[%c0_1, %c0_2] : memref<1x4xf32, #tpu.memory_space<vmem>>, vector<1x4xf32>
    %c0_3 = arith.constant 0 : index
    %c0_4 = arith.constant 0 : index
    %2 = vector.load %arg6[%c0_3, %c0_4] : memref<1x4xf32, #tpu.memory_space<vmem>>, vector<1x4xf32>
    %c0_5 = arith.constant 0 : index
    %c0_6 = arith.constant 0 : index
    %3 = vector.load %arg7[%c0_5, %c0_6] : memref<1x4xf32, #tpu.memory_space<vmem>>, vector<1x4xf32>
    %c0_7 = arith.constant 0 : index
    %c0_8 = arith.constant 0 : index
    %4 = vector.load %arg9[%c0_7, %c0_8] : memref<1x8xf32, #tpu.memory_space<vmem>>, vector<1x8xf32>
    %c0_9 = arith.constant 0 : index
    %c0_10 = arith.constant 0 : index
    %5 = vector.load %arg10[%c0_9, %c0_10] : memref<1x8xf32, #tpu.memory_space<vmem>>, vector<1x8xf32>
    %c0_11 = arith.constant 0 : index
    %c0_12 = arith.constant 0 : index
    %c0_13 = arith.constant 0 : index
    %c0_14 = arith.constant 0 : index
    %6 = vector.load %arg1[%c0_11, %c0_12, %c0_13, %c0_14] : memref<1x16x16x8xf32, #tpu.memory_space<vmem>>, vector<1x16x16x8xf32>
    %7 = vector.shape_cast %6 : vector<1x16x16x8xf32> to vector<256x8xf32>
    %8 = arith.truncf %7 : vector<256x8xf32> to vector<256x8xbf16>
    %c0_15 = arith.constant 0 : index
    %c0_16 = arith.constant 0 : index
    %9 = vector.load %arg2[%c0_15, %c0_16] : memref<8x4xbf16, #tpu.memory_space<vmem>>, vector<8x4xbf16>
    %cst = arith.constant dense<0.000000e+00> : vector<256x4xf32>
    %10 = tpu.matmul %8, %9, %cst {dimension_numbers = #tpu.dot_dimension_numbers<[1], [0], [0], [1], [0, 0, 1, 1], [], []>} : vector<256x8xbf16>, vector<8x4xbf16>, vector<256x4xf32> -> vector<256x4xf32>
    %11 = vector.broadcast %0 : vector<1x4xf32> to vector<256x4xf32>
    %12 = arith.mulf %10, %11 : vector<256x4xf32>
    %13 = vector.broadcast %1 : vector<1x4xf32> to vector<256x4xf32>
    %14 = arith.addf %12, %13 : vector<256x4xf32>
    %cst_17 = arith.constant 0.000000e+00 : f32
    %15 = vector.broadcast %cst_17 : f32 to vector<256x4xf32>
    %16 = arith.subf %15, %14 : vector<256x4xf32>
    %17 = math.exp %16 : vector<256x4xf32>
    %cst_18 = arith.constant 1.000000e+00 : f32
    %18 = vector.broadcast %cst_18 : f32 to vector<256x4xf32>
    %19 = arith.addf %18, %17 : vector<256x4xf32>
    %20 = tpu.reciprocal %19 {approx = true} : vector<256x4xf32> -> vector<256x4xf32>
    %21 = arith.mulf %14, %20 : vector<256x4xf32>
    %cst_19 = arith.constant 0.000000e+00 : f32
    %22 = vector.broadcast %cst_19 : f32 to vector<1x1x18x4xf32>
    %c0_20 = arith.constant 0 : index
    %c0_21 = arith.constant 0 : index
    %c0_22 = arith.constant 0 : index
    %c0_23 = arith.constant 0 : index
    %23 = vector.load %arg12[%c0_20, %c0_21, %c0_22, %c0_23] : memref<1x18x18x4xf32, #tpu.memory_space<vmem>>, vector<1x1x18x4xf32>
    tpu.vector_store %arg12[%c0_20, %c0_21, %c0_22, %c0_23], %22 {strides = array<i32>} : memref<1x18x18x4xf32, #tpu.memory_space<vmem>>, vector<1x1x18x4xf32>,
    %cst_24 = arith.constant 0.000000e+00 : f32
    %24 = vector.broadcast %cst_24 : f32 to vector<1x1x18x4xf32>
    %c0_25 = arith.constant 0 : index
    %c17 = arith.constant 17 : index
    %c0_26 = arith.constant 0 : index
    %c0_27 = arith.constant 0 : index
    %25 = vector.load %arg12[%c0_25, %c17, %c0_26, %c0_27] : memref<1x18x18x4xf32, #tpu.memory_space<vmem>>, vector<1x1x18x4xf32>
    tpu.vector_store %arg12[%c0_25, %c17, %c0_26, %c0_27], %24 {strides = array<i32>} : memref<1x18x18x4xf32, #tpu.memory_space<vmem>>, vector<1x1x18x4xf32>,
    %cst_28 = arith.constant 0.000000e+00 : f32
    %26 = vector.broadcast %cst_28 : f32 to vector<1x18x1x4xf32>
    %c0_29 = arith.constant 0 : index
    %c0_30 = arith.constant 0 : index
    %c0_31 = arith.constant 0 : index
    %c0_32 = arith.constant 0 : index
    %27 = vector.load %arg12[%c0_29, %c0_30, %c0_31, %c0_32] : memref<1x18x18x4xf32, #tpu.memory_space<vmem>>, vector<1x18x1x4xf32>
    tpu.vector_store %arg12[%c0_29, %c0_30, %c0_31, %c0_32], %26 {strides = array<i32>} : memref<1x18x18x4xf32, #tpu.memory_space<vmem>>, vector<1x18x1x4xf32>,
    %cst_33 = arith.constant 0.000000e+00 : f32
    %28 = vector.broadcast %cst_33 : f32 to vector<1x18x1x4xf32>
    %c0_34 = arith.constant 0 : index
    %c0_35 = arith.constant 0 : index
    %c17_36 = arith.constant 17 : index
    %c0_37 = arith.constant 0 : index
    %29 = vector.load %arg12[%c0_34, %c0_35, %c17_36, %c0_37] : memref<1x18x18x4xf32, #tpu.memory_space<vmem>>, vector<1x18x1x4xf32>
    tpu.vector_store %arg12[%c0_34, %c0_35, %c17_36, %c0_37], %28 {strides = array<i32>} : memref<1x18x18x4xf32, #tpu.memory_space<vmem>>, vector<1x18x1x4xf32>,
    %30 = vector.shape_cast %21 : vector<256x4xf32> to vector<1x16x16x4xf32>
    %c0_38 = arith.constant 0 : index
    %c1 = arith.constant 1 : index
    %c1_39 = arith.constant 1 : index
    %c0_40 = arith.constant 0 : index
    %31 = vector.load %arg12[%c0_38, %c1, %c1_39, %c0_40] : memref<1x18x18x4xf32, #tpu.memory_space<vmem>>, vector<1x16x16x4xf32>
    tpu.vector_store %arg12[%c0_38, %c1, %c1_39, %c0_40], %30 {strides = array<i32>} : memref<1x18x18x4xf32, #tpu.memory_space<vmem>>, vector<1x16x16x4xf32>,
    %cst_41 = arith.constant 0.000000e+00 : f32
    %32 = vector.broadcast %cst_41 : f32 to vector<256x4xf32>
    %c0_42 = arith.constant 0 : index
    %c0_43 = arith.constant 0 : index
    %c0_44 = arith.constant 0 : index
    %c0_45 = arith.constant 0 : index
    %33 = vector.load %arg12[%c0_42, %c0_43, %c0_44, %c0_45] : memref<1x18x18x4xf32, #tpu.memory_space<vmem>>, vector<1x16x16x4xf32>
    %34 = vector.shape_cast %33 : vector<1x16x16x4xf32> to vector<256x4xf32>
    %35 = arith.truncf %34 : vector<256x4xf32> to vector<256x4xbf16>
    %c0_46 = arith.constant 0 : index
    %c0_47 = arith.constant 0 : index
    %c0_48 = arith.constant 0 : index
    %36 = vector.load %arg5[%c0_46, %c0_47, %c0_48] : memref<9x4x4xbf16, #tpu.memory_space<vmem>>, vector<1x4x4xbf16>
    %37 = vector.shape_cast %36 : vector<1x4x4xbf16> to vector<4x4xbf16>
    %cst_49 = arith.constant dense<0.000000e+00> : vector<256x4xf32>
    %38 = tpu.matmul %35, %37, %cst_49 {dimension_numbers = #tpu.dot_dimension_numbers<[1], [0], [0], [1], [0, 0, 1, 1], [], []>} : vector<256x4xbf16>, vector<4x4xbf16>, vector<256x4xf32> -> vector<256x4xf32>
    %39 = arith.addf %32, %38 : vector<256x4xf32>
    %c0_50 = arith.constant 0 : index
    %c0_51 = arith.constant 0 : index
    %c1_52 = arith.constant 1 : index
    %c0_53 = arith.constant 0 : index
    %40 = vector.load %arg12[%c0_50, %c0_51, %c1_52, %c0_53] : memref<1x18x18x4xf32, #tpu.memory_space<vmem>>, vector<1x16x16x4xf32>
    %41 = vector.shape_cast %40 : vector<1x16x16x4xf32> to vector<256x4xf32>
    %42 = arith.truncf %41 : vector<256x4xf32> to vector<256x4xbf16>
    %c1_54 = arith.constant 1 : index
    %c0_55 = arith.constant 0 : index
    %c0_56 = arith.constant 0 : index
    %43 = vector.load %arg5[%c1_54, %c0_55, %c0_56] : memref<9x4x4xbf16, #tpu.memory_space<vmem>>, vector<1x4x4xbf16>
    %44 = vector.shape_cast %43 : vector<1x4x4xbf16> to vector<4x4xbf16>
    %cst_57 = arith.constant dense<0.000000e+00> : vector<256x4xf32>
    %45 = tpu.matmul %42, %44, %cst_57 {dimension_numbers = #tpu.dot_dimension_numbers<[1], [0], [0], [1], [0, 0, 1, 1], [], []>} : vector<256x4xbf16>, vector<4x4xbf16>, vector<256x4xf32> -> vector<256x4xf32>
    %46 = arith.addf %39, %45 : vector<256x4xf32>
    %c0_58 = arith.constant 0 : index
    %c0_59 = arith.constant 0 : index
    %c2 = arith.constant 2 : index
    %c0_60 = arith.constant 0 : index
    %47 = vector.load %arg12[%c0_58, %c0_59, %c2, %c0_60] : memref<1x18x18x4xf32, #tpu.memory_space<vmem>>, vector<1x16x16x4xf32>
    %48 = vector.shape_cast %47 : vector<1x16x16x4xf32> to vector<256x4xf32>
    %49 = arith.truncf %48 : vector<256x4xf32> to vector<256x4xbf16>
    %c2_61 = arith.constant 2 : index
    %c0_62 = arith.constant 0 : index
    %c0_63 = arith.constant 0 : index
    %50 = vector.load %arg5[%c2_61, %c0_62, %c0_63] : memref<9x4x4xbf16, #tpu.memory_space<vmem>>, vector<1x4x4xbf16>
    %51 = vector.shape_cast %50 : vector<1x4x4xbf16> to vector<4x4xbf16>
    %cst_64 = arith.constant dense<0.000000e+00> : vector<256x4xf32>
    %52 = tpu.matmul %49, %51, %cst_64 {dimension_numbers = #tpu.dot_dimension_numbers<[1], [0], [0], [1], [0, 0, 1, 1], [], []>} : vector<256x4xbf16>, vector<4x4xbf16>, vector<256x4xf32> -> vector<256x4xf32>
    %53 = arith.addf %46, %52 : vector<256x4xf32>
    %c0_65 = arith.constant 0 : index
    %c1_66 = arith.constant 1 : index
    %c0_67 = arith.constant 0 : index
    %c0_68 = arith.constant 0 : index
    %54 = vector.load %arg12[%c0_65, %c1_66, %c0_67, %c0_68] : memref<1x18x18x4xf32, #tpu.memory_space<vmem>>, vector<1x16x16x4xf32>
    %55 = vector.shape_cast %54 : vector<1x16x16x4xf32> to vector<256x4xf32>
    %56 = arith.truncf %55 : vector<256x4xf32> to vector<256x4xbf16>
    %c3 = arith.constant 3 : index
    %c0_69 = arith.constant 0 : index
    %c0_70 = arith.constant 0 : index
    %57 = vector.load %arg5[%c3, %c0_69, %c0_70] : memref<9x4x4xbf16, #tpu.memory_space<vmem>>, vector<1x4x4xbf16>
    %58 = vector.shape_cast %57 : vector<1x4x4xbf16> to vector<4x4xbf16>
    %cst_71 = arith.constant dense<0.000000e+00> : vector<256x4xf32>
    %59 = tpu.matmul %56, %58, %cst_71 {dimension_numbers = #tpu.dot_dimension_numbers<[1], [0], [0], [1], [0, 0, 1, 1], [], []>} : vector<256x4xbf16>, vector<4x4xbf16>, vector<256x4xf32> -> vector<256x4xf32>
    %60 = arith.addf %53, %59 : vector<256x4xf32>
    %c0_72 = arith.constant 0 : index
    %c1_73 = arith.constant 1 : index
    %c1_74 = arith.constant 1 : index
    %c0_75 = arith.constant 0 : index
    %61 = vector.load %arg12[%c0_72, %c1_73, %c1_74, %c0_75] : memref<1x18x18x4xf32, #tpu.memory_space<vmem>>, vector<1x16x16x4xf32>
    %62 = vector.shape_cast %61 : vector<1x16x16x4xf32> to vector<256x4xf32>
    %63 = arith.truncf %62 : vector<256x4xf32> to vector<256x4xbf16>
    %c4 = arith.constant 4 : index
    %c0_76 = arith.constant 0 : index
    %c0_77 = arith.constant 0 : index
    %64 = vector.load %arg5[%c4, %c0_76, %c0_77] : memref<9x4x4xbf16, #tpu.memory_space<vmem>>, vector<1x4x4xbf16>
    %65 = vector.shape_cast %64 : vector<1x4x4xbf16> to vector<4x4xbf16>
    %cst_78 = arith.constant dense<0.000000e+00> : vector<256x4xf32>
    %66 = tpu.matmul %63, %65, %cst_78 {dimension_numbers = #tpu.dot_dimension_numbers<[1], [0], [0], [1], [0, 0, 1, 1], [], []>} : vector<256x4xbf16>, vector<4x4xbf16>, vector<256x4xf32> -> vector<256x4xf32>
    %67 = arith.addf %60, %66 : vector<256x4xf32>
    %c0_79 = arith.constant 0 : index
    %c1_80 = arith.constant 1 : index
    %c2_81 = arith.constant 2 : index
    %c0_82 = arith.constant 0 : index
    %68 = vector.load %arg12[%c0_79, %c1_80, %c2_81, %c0_82] : memref<1x18x18x4xf32, #tpu.memory_space<vmem>>, vector<1x16x16x4xf32>
    %69 = vector.shape_cast %68 : vector<1x16x16x4xf32> to vector<256x4xf32>
    %70 = arith.truncf %69 : vector<256x4xf32> to vector<256x4xbf16>
    %c5 = arith.constant 5 : index
    %c0_83 = arith.constant 0 : index
    %c0_84 = arith.constant 0 : index
    %71 = vector.load %arg5[%c5, %c0_83, %c0_84] : memref<9x4x4xbf16, #tpu.memory_space<vmem>>, vector<1x4x4xbf16>
    %72 = vector.shape_cast %71 : vector<1x4x4xbf16> to vector<4x4xbf16>
    %cst_85 = arith.constant dense<0.000000e+00> : vector<256x4xf32>
    %73 = tpu.matmul %70, %72, %cst_85 {dimension_numbers = #tpu.dot_dimension_numbers<[1], [0], [0], [1], [0, 0, 1, 1], [], []>} : vector<256x4xbf16>, vector<4x4xbf16>, vector<256x4xf32> -> vector<256x4xf32>
    %74 = arith.addf %67, %73 : vector<256x4xf32>
    %c0_86 = arith.constant 0 : index
    %c2_87 = arith.constant 2 : index
    %c0_88 = arith.constant 0 : index
    %c0_89 = arith.constant 0 : index
    %75 = vector.load %arg12[%c0_86, %c2_87, %c0_88, %c0_89] : memref<1x18x18x4xf32, #tpu.memory_space<vmem>>, vector<1x16x16x4xf32>
    %76 = vector.shape_cast %75 : vector<1x16x16x4xf32> to vector<256x4xf32>
    %77 = arith.truncf %76 : vector<256x4xf32> to vector<256x4xbf16>
    %c6 = arith.constant 6 : index
    %c0_90 = arith.constant 0 : index
    %c0_91 = arith.constant 0 : index
    %78 = vector.load %arg5[%c6, %c0_90, %c0_91] : memref<9x4x4xbf16, #tpu.memory_space<vmem>>, vector<1x4x4xbf16>
    %79 = vector.shape_cast %78 : vector<1x4x4xbf16> to vector<4x4xbf16>
    %cst_92 = arith.constant dense<0.000000e+00> : vector<256x4xf32>
    %80 = tpu.matmul %77, %79, %cst_92 {dimension_numbers = #tpu.dot_dimension_numbers<[1], [0], [0], [1], [0, 0, 1, 1], [], []>} : vector<256x4xbf16>, vector<4x4xbf16>, vector<256x4xf32> -> vector<256x4xf32>
    %81 = arith.addf %74, %80 : vector<256x4xf32>
    %c0_93 = arith.constant 0 : index
    %c2_94 = arith.constant 2 : index
    %c1_95 = arith.constant 1 : index
    %c0_96 = arith.constant 0 : index
    %82 = vector.load %arg12[%c0_93, %c2_94, %c1_95, %c0_96] : memref<1x18x18x4xf32, #tpu.memory_space<vmem>>, vector<1x16x16x4xf32>
    %83 = vector.shape_cast %82 : vector<1x16x16x4xf32> to vector<256x4xf32>
    %84 = arith.truncf %83 : vector<256x4xf32> to vector<256x4xbf16>
    %c7 = arith.constant 7 : index
    %c0_97 = arith.constant 0 : index
    %c0_98 = arith.constant 0 : index
    %85 = vector.load %arg5[%c7, %c0_97, %c0_98] : memref<9x4x4xbf16, #tpu.memory_space<vmem>>, vector<1x4x4xbf16>
    %86 = vector.shape_cast %85 : vector<1x4x4xbf16> to vector<4x4xbf16>
    %cst_99 = arith.constant dense<0.000000e+00> : vector<256x4xf32>
    %87 = tpu.matmul %84, %86, %cst_99 {dimension_numbers = #tpu.dot_dimension_numbers<[1], [0], [0], [1], [0, 0, 1, 1], [], []>} : vector<256x4xbf16>, vector<4x4xbf16>, vector<256x4xf32> -> vector<256x4xf32>
    %88 = arith.addf %81, %87 : vector<256x4xf32>
    %c0_100 = arith.constant 0 : index
    %c2_101 = arith.constant 2 : index
    %c2_102 = arith.constant 2 : index
    %c0_103 = arith.constant 0 : index
    %89 = vector.load %arg12[%c0_100, %c2_101, %c2_102, %c0_103] : memref<1x18x18x4xf32, #tpu.memory_space<vmem>>, vector<1x16x16x4xf32>
    %90 = vector.shape_cast %89 : vector<1x16x16x4xf32> to vector<256x4xf32>
    %91 = arith.truncf %90 : vector<256x4xf32> to vector<256x4xbf16>
    %c8 = arith.constant 8 : index
    %c0_104 = arith.constant 0 : index
    %c0_105 = arith.constant 0 : index
    %92 = vector.load %arg5[%c8, %c0_104, %c0_105] : memref<9x4x4xbf16, #tpu.memory_space<vmem>>, vector<1x4x4xbf16>
    %93 = vector.shape_cast %92 : vector<1x4x4xbf16> to vector<4x4xbf16>
    %cst_106 = arith.constant dense<0.000000e+00> : vector<256x4xf32>
    %94 = tpu.matmul %91, %93, %cst_106 {dimension_numbers = #tpu.dot_dimension_numbers<[1], [0], [0], [1], [0, 0, 1, 1], [], []>} : vector<256x4xbf16>, vector<4x4xbf16>, vector<256x4xf32> -> vector<256x4xf32>
    %95 = arith.addf %88, %94 : vector<256x4xf32>
    %96 = vector.broadcast %2 : vector<1x4xf32> to vector<256x4xf32>
    %97 = arith.mulf %95, %96 : vector<256x4xf32>
    %98 = vector.broadcast %3 : vector<1x4xf32> to vector<256x4xf32>
    %99 = arith.addf %97, %98 : vector<256x4xf32>
    %cst_107 = arith.constant 0.000000e+00 : f32
    %100 = vector.broadcast %cst_107 : f32 to vector<256x4xf32>
    %101 = arith.subf %100, %99 : vector<256x4xf32>
    %102 = math.exp %101 : vector<256x4xf32>
    %cst_108 = arith.constant 1.000000e+00 : f32
    %103 = vector.broadcast %cst_108 : f32 to vector<256x4xf32>
    %104 = arith.addf %103, %102 : vector<256x4xf32>
    %105 = tpu.reciprocal %104 {approx = true} : vector<256x4xf32> -> vector<256x4xf32>
    %106 = arith.mulf %99, %105 : vector<256x4xf32>
    %107 = arith.truncf %106 : vector<256x4xf32> to vector<256x4xbf16>
    %c0_109 = arith.constant 0 : index
    %c0_110 = arith.constant 0 : index
    %108 = vector.load %arg8[%c0_109, %c0_110] : memref<4x8xbf16, #tpu.memory_space<vmem>>, vector<4x8xbf16>
    %cst_111 = arith.constant dense<0.000000e+00> : vector<256x8xf32>
    %109 = tpu.matmul %107, %108, %cst_111 {dimension_numbers = #tpu.dot_dimension_numbers<[1], [0], [0], [1], [0, 0, 1, 1], [], []>} : vector<256x4xbf16>, vector<4x8xbf16>, vector<256x8xf32> -> vector<256x8xf32>
    %110 = vector.broadcast %4 : vector<1x8xf32> to vector<256x8xf32>
    %111 = arith.mulf %109, %110 : vector<256x8xf32>
    %112 = vector.broadcast %5 : vector<1x8xf32> to vector<256x8xf32>
    %113 = arith.addf %111, %112 : vector<256x8xf32>
    %114 = arith.addf %113, %7 : vector<256x8xf32>
    %cst_112 = arith.constant 0.000000e+00 : f32
    %115 = vector.broadcast %cst_112 : f32 to vector<256x8xf32>
    %116 = arith.subf %115, %114 : vector<256x8xf32>
    %117 = math.exp %116 : vector<256x8xf32>
    %cst_113 = arith.constant 1.000000e+00 : f32
    %118 = vector.broadcast %cst_113 : f32 to vector<256x8xf32>
    %119 = arith.addf %118, %117 : vector<256x8xf32>
    %120 = tpu.reciprocal %119 {approx = true} : vector<256x8xf32> -> vector<256x8xf32>
    %121 = arith.mulf %114, %120 : vector<256x8xf32>
    %122 = vector.shape_cast %121 : vector<256x8xf32> to vector<1x16x16x8xf32>
    %c0_114 = arith.constant 0 : index
    %c0_115 = arith.constant 0 : index
    %c0_116 = arith.constant 0 : index
    %c0_117 = arith.constant 0 : index
    %123 = vector.load %arg11[%c0_114, %c0_115, %c0_116, %c0_117] : memref<1x16x16x8xf32, #tpu.memory_space<vmem>>, vector<1x16x16x8xf32>
    tpu.vector_store %arg11[%c0_114, %c0_115, %c0_116, %c0_117], %122 {strides = array<i32>} : memref<1x16x16x8xf32, #tpu.memory_space<vmem>>, vector<1x16x16x8xf32>,
    return
  }
  func.func @transform_0(%arg0: i32) -> (i32, i32, i32, i32) {
    %c0_i32 = arith.constant 0 : i32
    %c0_i32_0 = arith.constant 0 : i32
    %c0_i32_1 = arith.constant 0 : i32
    %c0_i32_2 = arith.constant 0 : i32
    return %arg0, %c0_i32, %c0_i32_0, %c0_i32_1 : i32, i32, i32, i32
  }
  func.func @transform_1(%arg0: i32) -> (i32, i32) {
    %c0_i32 = arith.constant 0 : i32
    %c0_i32_0 = arith.constant 0 : i32
    %c0_i32_1 = arith.constant 0 : i32
    return %c0_i32, %c0_i32_0 : i32, i32
  }
  func.func @transform_2(%arg0: i32) -> (i32, i32) {
    %c0_i32 = arith.constant 0 : i32
    %c0_i32_0 = arith.constant 0 : i32
    %c0_i32_1 = arith.constant 0 : i32
    return %c0_i32, %c0_i32_0 : i32, i32
  }
  func.func @transform_3(%arg0: i32) -> (i32, i32) {
    %c0_i32 = arith.constant 0 : i32
    %c0_i32_0 = arith.constant 0 : i32
    %c0_i32_1 = arith.constant 0 : i32
    return %c0_i32, %c0_i32_0 : i32, i32
  }
  func.func @transform_4(%arg0: i32) -> (i32, i32, i32) {
    %c0_i32 = arith.constant 0 : i32
    %c0_i32_0 = arith.constant 0 : i32
    %c0_i32_1 = arith.constant 0 : i32
    %c0_i32_2 = arith.constant 0 : i32
    return %c0_i32, %c0_i32_0, %c0_i32_1 : i32, i32, i32
  }
  func.func @transform_5(%arg0: i32) -> (i32, i32) {
    %c0_i32 = arith.constant 0 : i32
    %c0_i32_0 = arith.constant 0 : i32
    %c0_i32_1 = arith.constant 0 : i32
    return %c0_i32, %c0_i32_0 : i32, i32
  }
  func.func @transform_6(%arg0: i32) -> (i32, i32) {
    %c0_i32 = arith.constant 0 : i32
    %c0_i32_0 = arith.constant 0 : i32
    %c0_i32_1 = arith.constant 0 : i32
    return %c0_i32, %c0_i32_0 : i32, i32
  }
  func.func @transform_7(%arg0: i32) -> (i32, i32) {
    %c0_i32 = arith.constant 0 : i32
    %c0_i32_0 = arith.constant 0 : i32
    %c0_i32_1 = arith.constant 0 : i32
    return %c0_i32, %c0_i32_0 : i32, i32
  }
  func.func @transform_8(%arg0: i32) -> (i32, i32) {
    %c0_i32 = arith.constant 0 : i32
    %c0_i32_0 = arith.constant 0 : i32
    %c0_i32_1 = arith.constant 0 : i32
    return %c0_i32, %c0_i32_0 : i32, i32
  }
  func.func @transform_9(%arg0: i32) -> (i32, i32) {
    %c0_i32 = arith.constant 0 : i32
    %c0_i32_0 = arith.constant 0 : i32
    %c0_i32_1 = arith.constant 0 : i32
    return %c0_i32, %c0_i32_0 : i32, i32
  }
  func.func @transform_10(%arg0: i32) -> (i32, i32, i32, i32) {
    %c0_i32 = arith.constant 0 : i32
    %c0_i32_0 = arith.constant 0 : i32
    %c0_i32_1 = arith.constant 0 : i32
    %c0_i32_2 = arith.constant 0 : i32
    return %arg0, %c0_i32, %c0_i32_0, %c0_i32_1 : i32, i32, i32, i32
  }
}

</mosaic_0001>

<bundles_post_ra>
// kernel: tpu_custom_call.1
= control target key start
LH: loop header
LB: loop body
LE: loop exit
PB: predicated region body
PF: predicated region fallthrough
CT: control target
= control target key end

     0   :  { %s5968_s13 = smov 0   ;;  %s7401_s0 = inlined_call_operand.vmem [shape: f32[2,16,16,8], index: 0, kind: input, shape index: {}]   ;;  %s7402_s1 = inlined_call_operand.vmem [shape: bf16[8,4], index: 1, kind: input, shape index: {}]   ;;  %s7403_s2 = inlined_call_operand.vmem [shape: f32[1,4], index: 2, kind: input, shape index: {}]   ;;  %s7404_s3 = inlined_call_operand.vmem [shape: f32[1,4], index: 3, kind: input, shape index: {}]   ;;  %s7405_s4 = inlined_call_operand.vmem [shape: bf16[9,4,4], index: 4, kind: input, shape index: {}]   ;;  %s7406_s5 = inlined_call_operand.vmem [shape: f32[1,4], index: 5, kind: input, shape index: {}]   ;;  %s7407_s6 = inlined_call_operand.vmem [shape: f32[1,4], index: 6, kind: input, shape index: {}]   ;;  %s7408_s7 = inlined_call_operand.vmem [shape: bf16[4,8], index: 7, kind: input, shape index: {}]   ;;  %s7409_s8 = inlined_call_operand.vmem [shape: f32[1,8], index: 8, kind: input, shape index: {}]   ;;  %s7410_s9 = inlined_call_operand.vmem [shape: f32[1,8], index: 9, kind: input, shape index: {}]   ;;  %s7411_s10 = inlined_call_operand.vmem [shape: f32[2,16,16,8], index: 10, kind: output, shape index: {}]  }
   0x1 LB: > { %s4444_s14 = sadd.s32 4294967295, %s5910_s13   ;;  %p4448_p0 = scmp.ge.s32.totalorder %s5910_s13, 1  ;;  %s5910_s13 = sphi %s5968_s13, %s20_s13  }
   0x2   : > { %p312_p1 = scmp.lt.s32.totalorder %s5910_s13, 3 }
   0x4   : > { %p313_p2 = pnand %p4448_p0, %p312_p1 }
   0x5   : > { %v415_v0 = vld [vmem:[%s7402_s1] sm:$0xf] (!%p313_p2)  ;;  %vm465_vm0 = vcmask (!%p313_p2), 1043456   ;;  %p350_p3 = scmp.lt.s32.totalorder (!%p313_p2), %s4444_s14, 1  ;;  %vm416_vm1 = vcmask (!%p313_p2), 64512   ;;  %vm898_vm2 = vcmask (!%p313_p2), 31744  }
   0x6   : > { %316 = sbr.rel (%p313_p2) target bundleno = 1187 (0x4a3), region = 60  ;;  %5466 = vmatprep.subr.msk.bf16.mxu0 (!%p313_p2), %vm465_vm0, %v415_v0  ;;  %v467_v1 = vsel (!%p313_p2), %vm465_vm0, %v415_v0, 0  ;;  %v5912_v50 = vmov (!%p313_p2), 0.0   ;;  %vm901_vm3 = vcmask (!%p313_p2), 25600   ;;  %vm907_vm4 = vcmask (!%p313_p2), 24576  }
   0x7   : > { %4835 = vmatpush3.bf16.msra.mxu0 (!%p313_p2), %v467_v1  ;;  %899 = vst.msk [vmem:[#allocation2] sm:$0xff] (!%p313_p2), %vm898_vm2, %v5912_v50  ;;  %900 = vst.msk [vmem:[#allocation2 + $0x8] sm:$0xff] (!%p313_p2), %vm898_vm2, %v5912_v50  ;;  %v4471_v51 = vld [vmem:[%s7405_s4 + $0x2] sm:$0x3] (!%p313_p2)  ;;  %vm1124_vm5 = vcmask (!%p313_p2), 1041408  }
   0x8   : > { %904 = vst.msk [vmem:[#allocation2 + $0x198] sm:$0xff] (!%p313_p2), %vm898_vm2, %v5912_v50  ;;  %905 = vst.msk [vmem:[#allocation2 + $0x1a0] sm:$0xff] (!%p313_p2), %vm898_vm2, %v5912_v50  ;;  %5467 = vmatprep.subr.msk.bf16.mxu0 (!%p313_p2), %vm1124_vm5, %v4471_v51  ;;  %v1126_v52 = vsel (!%p313_p2), %vm1124_vm5, %v4471_v51, 0  ;;  %v4521_v56 = vld [vmem:[%s7405_s4 + $0x6] sm:$0x3] (!%p313_p2) }
   0x9   : > { %902 = vst.msk [vmem:[#allocation2 + $0x10] sm:$0x3] (!%p313_p2), %vm901_vm3, %v5912_v50  ;;  %906 = vst.msk [vmem:[#allocation2 + $0x1a8] sm:$0x3] (!%p313_p2), %vm901_vm3, %v5912_v50  ;;  %5471 = vmatprep.subr.msk.bf16.mxu1 (!%p313_p2), %vm1124_vm5, %v4521_v56  ;;  %v6088_v57 = vsel (!%p313_p2), %vm1124_vm5, %v4521_v56, 0 }
   0xa   : > { %917 = vst.msk [vmem:[#allocation2 + $0xd8] sm:$0x1] (!%p313_p2), %vm907_vm4, %v5912_v50  ;;  %908 = vst.msk [vmem:[#allocation2] sm:$0x1] (!%p313_p2), %vm907_vm4, %v5912_v50  ;;  %5209 = vmatpush3.bf16.msra.mxu1 (!%p313_p2), %v6088_v57  ;;  %v6094_v58 = vld [vmem:[%s7405_s4 + $0x8] sm:$0x3] (!%p313_p2) }
   0xb   : > { %909 = vst.msk [vmem:[#allocation2 + $0x18] sm:$0x1] (!%p313_p2), %vm907_vm4, %v5912_v50  ;;  %910 = vst.msk [vmem:[#allocation2 + $0x30] sm:$0x1] (!%p313_p2), %vm907_vm4, %v5912_v50  ;;  %5472 = vmatprep.subr.msk.bf16.mxu1 (!%p313_p2), %vm1124_vm5, %v6094_v58  ;;  %v6101_v59 = vld [vmem:[%s7405_s4] sm:$0x3] (!%p313_p2) }
   0xc   : > { %911 = vst.msk [vmem:[#allocation2 + $0x48] sm:$0x1] (!%p313_p2), %vm907_vm4, %v5912_v50  ;;  %912 = vst.msk [vmem:[#allocation2 + $0x60] sm:$0x1] (!%p313_p2), %vm907_vm4, %v5912_v50  ;;  %v6108_v60 = vld [vmem:[%s7403_s2] ss:$0 sm:$0xff] (!%p313_p2) }
   0xd   : > { %s7413_s14 = smov (!%p350_p3, %s4444_s14), 1  ;;  %913 = vst.msk [vmem:[#allocation2 + $0x78] sm:$0x1] %vm907_vm4, %v5912_v50  ;;  %914 = vst.msk [vmem:[#allocation2 + $0x90] sm:$0x1] %vm907_vm4, %v5912_v50 }
   0xe   : > { %s4645_s17 = sshll.u32 %s7413_s14, 8  ;;  %915 = vst.msk [vmem:[#allocation2 + $0xa8] sm:$0x1] %vm907_vm4, %v5912_v50  ;;  %916 = vst.msk [vmem:[#allocation2 + $0xc0] sm:$0x1] %vm907_vm4, %v5912_v50  ;;  %v1026_v53 = vld [vmem:[#allocation2 + $0x1] sm:$0xff] }
   0xf   : > { %s5987_s20 = scalar_lea.vmem %s7401_s0, %s4645_s17  ;;  %918 = vst.msk [vmem:[#allocation2 + $0xf0] sm:$0x1] %vm907_vm4, %v5912_v50  ;;  %919 = vst.msk [vmem:[#allocation2 + $0x108] sm:$0x1] %vm907_vm4, %v5912_v50  ;;  %v6113_v61 = vld [vmem:[%s7404_s3] ss:$0 sm:$0xff]  ;;  %s7190_s25 = scalar_lea.vmem %s7411_s10, %s4645_s17 }
  0x10   : > { %v367_v2 = vld [vmem:[%s5987_s20] sm:$0xff]  ;;  %v368_v3 = vld [vmem:[%s5987_s20 + $0x8] sm:$0xff]  ;;  %v369_v4 = vld [vmem:[%s5987_s20 + $0x10] sm:$0xff]  ;;  %920 = vst.msk [vmem:[#allocation2 + $0x120] sm:$0x1] %vm907_vm4, %v5912_v50 }
  0x11   : > { %v399_v5 = vpack.c.bf16 %v368_v3, %v367_v2  ;;  %v370_v6 = vld [vmem:[%s5987_s20 + $0x18] sm:$0xff]  ;;  %v371_v7 = vld [vmem:[%s5987_s20 + $0x20] sm:$0xff]  ;;  %v372_v8 = vld [vmem:[%s5987_s20 + $0x28] sm:$0xff]  ;;  %921 = vst.msk [vmem:[#allocation2 + $0x138] sm:$0x1] %vm907_vm4, %v5912_v50 }
  0x12   : > { %v400_v9 = vpack.c.bf16 %v370_v6, %v369_v4  ;;  %v401_v10 = vpack.c.bf16 %v372_v8, %v371_v7  ;;  %v373_v11 = vld [vmem:[%s5987_s20 + $0x30] sm:$0xff]  ;;  %v374_v12 = vld [vmem:[%s5987_s20 + $0x38] sm:$0xff]  ;;  %v375_v13 = vld [vmem:[%s5987_s20 + $0x40] sm:$0xff]  ;;  %922 = vst.msk [vmem:[#allocation2 + $0x150] sm:$0x1] %vm907_vm4, %v5912_v50 }
  0x13   : > { %4836 = vmatprep.mubr.msk.bf16.mxu0 %vm416_vm1, %v399_v5  ;;  %v376_v14 = vld [vmem:[%s5987_s20 + $0x48] sm:$0xff]  ;;  %v402_v15 = vpack.c.bf16 %v374_v12, %v373_v11  ;;  %v377_v17 = vld [vmem:[%s5987_s20 + $0x50] sm:$0xff]  ;;  %v378_v18 = vld [vmem:[%s5987_s20 + $0x58] sm:$0xff]  ;;  %923 = vst.msk [vmem:[#allocation2 + $0x168] sm:$0x1] %vm907_vm4, %v5912_v50 }
  0x14   : > { %4837 = vmatmul.mubr.msk.bf16.vlgmr.msra.gmra.mrb[0].mxu0 %vm416_vm1, %v400_v9  ;;  %v403_v16 = vpack.c.bf16 %v376_v14, %v375_v13  ;;  %v379_v19 = vld [vmem:[%s5987_s20 + $0x60] sm:$0xff]  ;;  %v380_v20 = vld [vmem:[%s5987_s20 + $0x68] sm:$0xff]  ;;  %v404_v21 = vpack.c.bf16 %v378_v18, %v377_v17  ;;  %v381_v23 = vld [vmem:[%s5987_s20 + $0x70] sm:$0xff]  ;;  %924 = vst.msk [vmem:[#allocation2 + $0x180] sm:$0x1] %vm907_vm4, %v5912_v50 }
  0x15   : > { %4840 = vmatprep.mubr.msk.bf16.mxu0 %vm416_vm1, %v401_v10  ;;  %v405_v22 = vpack.c.bf16 %v380_v20, %v379_v19  ;;  %v382_v24 = vld [vmem:[%s5987_s20 + $0x78] sm:$0xff]  ;;  %v383_v25 = vld [vmem:[%s5987_s20 + $0x80] sm:$0xff]  ;;  %v384_v26 = vld [vmem:[%s5987_s20 + $0x88] sm:$0xff]  ;;  %925 = vst.msk [vmem:[#allocation2 + $0x198] sm:$0x1] %vm907_vm4, %v5912_v50  ;;  %4869 = vmatpush3.bf16.msra.mxu0 %v1126_v52 }
  0x16   : > { %v406_v27 = vpack.c.bf16 %v382_v24, %v381_v23  ;;  %v407_v28 = vpack.c.bf16 %v384_v26, %v383_v25  ;;  %v385_v29 = vld [vmem:[%s5987_s20 + $0x90] sm:$0xff]  ;;  %v386_v30 = vld [vmem:[%s5987_s20 + $0x98] sm:$0xff]  ;;  %v387_v31 = vld [vmem:[%s5987_s20 + $0xa0] sm:$0xff]  ;;  %926 = vst.msk [vmem:[#allocation2 + $0x11] sm:$0x1] %vm907_vm4, %v5912_v50  ;;  %5468 = vmatprep.subr.msk.bf16.mxu0 %vm1124_vm5, %v6101_v59 }
  0x17   : > { %v388_v32 = vld [vmem:[%s5987_s20 + $0xa8] sm:$0xff]  ;;  %v408_v33 = vpack.c.bf16 %v386_v30, %v385_v29  ;;  %v389_v35 = vld [vmem:[%s5987_s20 + $0xb0] sm:$0xff]  ;;  %v390_v36 = vld [vmem:[%s5987_s20 + $0xb8] sm:$0xff]  ;;  %927 = vst.msk [vmem:[#allocation2 + $0x29] sm:$0x1] %vm907_vm4, %v5912_v50 }
  0x18   : > { %v409_v34 = vpack.c.bf16 %v388_v32, %v387_v31  ;;  %v391_v37 = vld [vmem:[%s5987_s20 + $0xc0] sm:$0xff]  ;;  %v392_v38 = vld [vmem:[%s5987_s20 + $0xc8] sm:$0xff]  ;;  %v410_v39 = vpack.c.bf16 %v390_v36, %v389_v35  ;;  %v393_v41 = vld [vmem:[%s5987_s20 + $0xd0] sm:$0xff]  ;;  %928 = vst.msk [vmem:[#allocation2 + $0x41] sm:$0x1] %vm907_vm4, %v5912_v50 }
  0x19   : > { %v411_v40 = vpack.c.bf16 %v392_v38, %v391_v37  ;;  %v394_v42 = vld [vmem:[%s5987_s20 + $0xd8] sm:$0xff]  ;;  %v395_v43 = vld [vmem:[%s5987_s20 + $0xe0] sm:$0xff]  ;;  %v396_v44 = vld [vmem:[%s5987_s20 + $0xe8] sm:$0xff]  ;;  %929 = vst.msk [vmem:[#allocation2 + $0x59] sm:$0x1] %vm907_vm4, %v5912_v50 }
  0x1a   : > { %v412_v45 = vpack.c.bf16 %v394_v42, %v393_v41  ;;  %v413_v46 = vpack.c.bf16 %v396_v44, %v395_v43  ;;  %v397_v47 = vld [vmem:[%s5987_s20 + $0xf0] sm:$0xff]  ;;  %v398_v48 = vld [vmem:[%s5987_s20 + $0xf8] sm:$0xff]  ;;  %930 = vst.msk [vmem:[#allocation2 + $0x71] sm:$0x1] %vm907_vm4, %v5912_v50  ;;  %931 = vst.msk [vmem:[#allocation2 + $0x89] sm:$0x1] %vm907_vm4, %v5912_v50 }
  0x1b   : > { %v414_v49 = vpack.c.bf16 %v398_v48, %v397_v47  ;;  %932 = vst.msk [vmem:[#allocation2 + $0xa1] sm:$0x1] %vm907_vm4, %v5912_v50  ;;  %933 = vst.msk [vmem:[#allocation2 + $0xb9] sm:$0x1] %vm907_vm4, %v5912_v50  ;;  %v1027_v54 = vld [vmem:[#allocation2 + $0x9] sm:$0xff] }
  0x1c   : > { %4841 = vmatmul.mubr.msk.bf16.gmra.mrb[4].mxu0 %vm416_vm1, %v402_v15  ;;  %934 = vst.msk [vmem:[#allocation2 + $0xd1] sm:$0x1] %vm907_vm4, %v5912_v50  ;;  %935 = vst.msk [vmem:[#allocation2 + $0xe9] sm:$0x1] %vm907_vm4, %v5912_v50  ;;  %v1058_v55 = vpack.c.bf16 %v1027_v54, %v1026_v53 }
  0x1d   : > { %4844 = vmatprep.mubr.msk.bf16.mxu0 %vm416_vm1, %v403_v16  ;;  %936 = vst.msk [vmem:[#allocation2 + $0x101] sm:$0x1] %vm907_vm4, %v5912_v50  ;;  %937 = vst.msk [vmem:[#allocation2 + $0x119] sm:$0x1] %vm907_vm4, %v5912_v50 }
  0x1e   : > { %938 = vst.msk [vmem:[#allocation2 + $0x131] sm:$0x1] %vm907_vm4, %v5912_v50  ;;  %939 = vst.msk [vmem:[#allocation2 + $0x149] sm:$0x1] %vm907_vm4, %v5912_v50 }
  0x1f   : > { %940 = vst.msk [vmem:[#allocation2 + $0x161] sm:$0x1] %vm907_vm4, %v5912_v50  ;;  %941 = vst.msk [vmem:[#allocation2 + $0x179] sm:$0x1] %vm907_vm4, %v5912_v50 }
  0x20   : > { %942 = vst.msk [vmem:[#allocation2 + $0x191] sm:$0x1] %vm907_vm4, %v5912_v50  ;;  %943 = vst.msk [vmem:[#allocation2 + $0x1a9] sm:$0x1] %vm907_vm4, %v5912_v50 }
  0x24   : > { %4845 = vmatmul.mubr.msk.bf16.gmra.mrb[8].mxu0 %vm416_vm1, %v404_v21 }
  0x25   : > { %4848 = vmatprep.mubr.msk.bf16.mxu0 %vm416_vm1, %v405_v22 }
  0x2c   : > { %4849 = vmatmul.mubr.msk.bf16.gmra.mrb[12].mxu0 %vm416_vm1, %v406_v27 }
  0x2d   : > { %4852 = vmatprep.mubr.msk.bf16.mxu0 %vm416_vm1, %v407_v28 }
  0x34   : > { %4853 = vmatmul.mubr.msk.bf16.gmra.mrb[16].mxu0 %vm416_vm1, %v408_v33 }
  0x35   : > { %4856 = vmatprep.mubr.msk.bf16.mxu0 %vm416_vm1, %v409_v34 }
  0x3c   : > { %4857 = vmatmul.mubr.msk.bf16.gmra.mrb[20].mxu0 %vm416_vm1, %v410_v39 }
  0x3d   : > { %4860 = vmatprep.mubr.msk.bf16.mxu0 %vm416_vm1, %v411_v40 }
  0x44   : > { %4861 = vmatmul.mubr.msk.bf16.gmra.mrb[24].mxu0 %vm416_vm1, %v412_v45 }
  0x45   : > { %4864 = vmatprep.mubr.msk.bf16.mxu0 %vm416_vm1, %v413_v46 }
  0x4c   : > { %4865 = vmatmul.mubr.msk.bf16.gmra.mrb[28].mxu0 %vm416_vm1, %v414_v49 }
  0x4d   : > { %4870 = vmatprep.mubr.msk.bf16.mxu0 %vm898_vm2, %v1058_v55 }
  0xe7   : > { %v4838_v62 = vpop.f32.mrb[0].mxu0 }
  0xe8   : > { %v638_v63 = vmul.f32 %v4838_v62, %v6108_v60  ;;  %v503_v0 = vpop.f32.mrb[1].mxu0 }
  0xe9   : > { %v636_v1 = vmul.f32 %v6108_v60, %v503_v0  ;;  %v4839_v2 = vpop.f32.mrb[2].mxu0 }
  0xea   : > { %v6118_v3 = vadd.f32 %v6113_v61, %v638_v63  ;;  %v639_v4 = vmul.f32 %v4839_v2, %v6108_v60  ;;  %v506_v5 = vpop.f32.mrb[3].mxu0 }
  0xeb   : > { %v6122_v6 = vadd.f32 %v6113_v61, %v636_v1  ;;  %v637_v7 = vmul.f32 %v6108_v60, %v506_v5 }
  0xec   : > { %v708_v8 = vsub.f32 0.0, %v6118_v3  ;;  %v6127_v9 = vadd.f32 %v6113_v61, %v639_v4 }
  0xed   : > { %v706_v10 = vsub.f32 0.0, %v6122_v6  ;;  %v6131_v11 = vadd.f32 %v6113_v61, %v637_v7 }
  0xee   : > { %v742_v12 = vmul.f32 1.442695, %v708_v8  ;;  %v709_v13 = vsub.f32 0.0, %v6127_v9 }
  0xef   : > { %v738_v14 = vmul.f32 1.442695, %v706_v10  ;;  %v707_v15 = vsub.f32 0.0, %v6131_v11  ;;  %v4842_v16 = vpop.f32.mrb[4].mxu0 }
  0xf0   : > { %5487 = vpow2.f32 %v742_v12  ;;  %v744_v17 = vmul.f32 1.442695, %v709_v13  ;;  %v642_v18 = vmul.f32 %v4842_v16, %v6108_v60  ;;  %v519_v19 = vpop.f32.mrb[5].mxu0 }
  0xf1   : > { %5489 = vpow2.f32 %v738_v14  ;;  %v740_v20 = vmul.f32 1.442695, %v707_v15  ;;  %v640_v21 = vmul.f32 %v6108_v60, %v519_v19  ;;  %v4843_v22 = vpop.f32.mrb[6].mxu0 }
  0xf2   : > { %5491 = vpow2.f32 %v744_v17  ;;  %v6138_v23 = vadd.f32 %v6113_v61, %v642_v18  ;;  %v643_v24 = vmul.f32 %v4843_v22, %v6108_v60  ;;  %v522_v25 = vpop.f32.mrb[7].mxu0 }
  0xf3   : > { %5493 = vpow2.f32 %v740_v20  ;;  %v6142_v26 = vadd.f32 %v6113_v61, %v640_v21  ;;  %v641_v27 = vmul.f32 %v6108_v60, %v522_v25 }
  0xf4   : > { %v712_v28 = vsub.f32 0.0, %v6138_v23  ;;  %v6147_v29 = vadd.f32 %v6113_v61, %v643_v24 }
  0xf5   : > { %v710_v30 = vsub.f32 0.0, %v6142_v26  ;;  %v6151_v31 = vadd.f32 %v6113_v61, %v641_v27 }
  0xf6   : > { %v750_v32 = vmul.f32 1.442695, %v712_v28  ;;  %v713_v33 = vsub.f32 0.0, %v6147_v29 }
  0xf7   : > { %v746_v34 = vmul.f32 1.442695, %v710_v30  ;;  %v711_v35 = vsub.f32 0.0, %v6151_v31  ;;  %v4846_v36 = vpop.f32.mrb[8].mxu0 }
  0xf8   : > { %5495 = vpow2.f32 %v750_v32  ;;  %v752_v37 = vmul.f32 1.442695, %v713_v33  ;;  %v646_v38 = vmul.f32 %v4846_v36, %v6108_v60  ;;  %v535_v39 = vpop.f32.mrb[9].mxu0 }
  0xf9   : > { %5497 = vpow2.f32 %v746_v34  ;;  %v748_v40 = vmul.f32 1.442695, %v711_v35  ;;  %v644_v41 = vmul.f32 %v6108_v60, %v535_v39  ;;  %v4847_v42 = vpop.f32.mrb[10].mxu0 }
  0xfa   : > { %v5488_v43 = vpop.eup %5487  ;;  %5499 = vpow2.f32 %v752_v37  ;;  %v6158_v44 = vadd.f32 %v6113_v61, %v646_v38  ;;  %v647_v45 = vmul.f32 %v4847_v42, %v6108_v60  ;;  %v538_v46 = vpop.f32.mrb[11].mxu0 }
  0xfb   : > { %v5490_v47 = vpop.eup %5489  ;;  %v804_v48 = vadd.f32 1.0, %v5488_v43  ;;  %5501 = vpow2.f32 %v748_v40  ;;  %v6162_v49 = vadd.f32 %v6113_v61, %v644_v41  ;;  %v645_v50 = vmul.f32 %v6108_v60, %v538_v46 }
  0xfc   : > { %v5492_v51 = vpop.eup %5491  ;;  %v802_v52 = vadd.f32 1.0, %v5490_v47  ;;  %v716_v53 = vsub.f32 0.0, %v6158_v44  ;;  %v6167_v54 = vadd.f32 %v6113_v61, %v647_v45 }
  0xfd   : > { %v5494_v55 = vpop.eup %5493  ;;  %5503 = vrcp.f32 %v804_v48  ;;  %v805_v56 = vadd.f32 1.0, %v5492_v51  ;;  %v714_v62 = vsub.f32 0.0, %v6162_v49  ;;  %v6171_v63 = vadd.f32 %v6113_v61, %v645_v50 }
  0xfe   : > { %5505 = vrcp.f32 %v802_v52  ;;  %v803_v0 = vadd.f32 1.0, %v5494_v55  ;;  %v758_v1 = vmul.f32 1.442695, %v716_v53  ;;  %v717_v2 = vsub.f32 0.0, %v6167_v54 }
  0xff   : > { %5507 = vrcp.f32 %v805_v56  ;;  %v754_v4 = vmul.f32 1.442695, %v714_v62  ;;  %v715_v5 = vsub.f32 0.0, %v6171_v63  ;;  %v4850_v7 = vpop.f32.mrb[12].mxu0 }
 0x100   : > { %5509 = vrcp.f32 %v803_v0  ;;  %v760_v8 = vmul.f32 1.442695, %v717_v2  ;;  %v650_v10 = vmul.f32 %v4850_v7, %v6108_v60  ;;  %v551_v12 = vpop.f32.mrb[13].mxu0 }
 0x101   : > { %5511 = vpow2.f32 %v758_v1  ;;  %v756_v13 = vmul.f32 1.442695, %v715_v5  ;;  %v648_v14 = vmul.f32 %v6108_v60, %v551_v12  ;;  %v4851_v15 = vpop.f32.mrb[14].mxu0 }
 0x102   : > { %v5496_v16 = vpop.eup %5495  ;;  %5513 = vpow2.f32 %v754_v4  ;;  %v6178_v17 = vadd.f32 %v6113_v61, %v650_v10  ;;  %v651_v18 = vmul.f32 %v4851_v15, %v6108_v60  ;;  %v554_v19 = vpop.f32.mrb[15].mxu0  ;;  %v6223_v15 = vsel %vm1124_vm5, %v6101_v59, 0 }
 0x103   : > { %v5498_v20 = vpop.eup %5497  ;;  %v808_v21 = vadd.f32 1.0, %v5496_v16  ;;  %5515 = vpow2.f32 %v760_v8  ;;  %v6182_v22 = vadd.f32 %v6113_v61, %v648_v14  ;;  %v649_v24 = vmul.f32 %v6108_v60, %v554_v19 }
 0x104   : > { %v5500_v25 = vpop.eup %5499  ;;  %v806_v27 = vadd.f32 1.0, %v5498_v20  ;;  %5517 = vpow2.f32 %v756_v13  ;;  %v720_v28 = vsub.f32 0.0, %v6178_v17  ;;  %v6187_v30 = vadd.f32 %v6113_v61, %v651_v18 }
 0x105   : > { %v5502_v32 = vpop.eup %5501  ;;  %5519 = vrcp.f32 %v808_v21  ;;  %v809_v33 = vadd.f32 1.0, %v5500_v25  ;;  %v718_v34 = vsub.f32 0.0, %v6182_v22  ;;  %v6191_v35 = vadd.f32 %v6113_v61, %v649_v24 }
 0x106   : > { %5521 = vrcp.f32 %v806_v27  ;;  %v807_v36 = vadd.f32 1.0, %v5502_v32  ;;  %v766_v37 = vmul.f32 1.442695, %v720_v28  ;;  %v721_v38 = vsub.f32 0.0, %v6187_v30 }
 0x107   : > { %v5504_v39 = vpop.eup %5503  ;;  %5523 = vrcp.f32 %v809_v33  ;;  %v762_v40 = vmul.f32 1.442695, %v718_v34  ;;  %v719_v41 = vsub.f32 0.0, %v6191_v35  ;;  %v4854_v42 = vpop.f32.mrb[16].mxu0 }
 0x108   : > { %v5506_v43 = vpop.eup %5505  ;;  %v868_v45 = vmul.f32 %v5504_v39, %v6118_v3  ;;  %5525 = vrcp.f32 %v807_v36  ;;  %v768_v46 = vmul.f32 1.442695, %v721_v38  ;;  %v654_v47 = vmul.f32 %v4854_v42, %v6108_v60  ;;  %v567_v48 = vpop.f32.mrb[17].mxu0 }
 0x109   : > { %v5508_v50 = vpop.eup %5507  ;;  %v866_v51 = vmul.f32 %v5506_v43, %v6122_v6  ;;  %5527 = vpow2.f32 %v766_v37  ;;  %v764_v52 = vmul.f32 1.442695, %v719_v41  ;;  %v652_v53 = vmul.f32 %v6108_v60, %v567_v48  ;;  %v4855_v55 = vpop.f32.mrb[18].mxu0 }
 0x10a   : > { %v5510_v56 = vpop.eup %5509  ;;  %947 = vst.msk [vmem:[#allocation2 + $0x31] sm:$0xff] %vm898_vm2, %v868_v45  ;;  %v869_v62 = vmul.f32 %v5508_v50, %v6127_v9  ;;  %5529 = vpow2.f32 %v762_v40  ;;  %v6202_v3 = vadd.f32 %v6113_v61, %v654_v47  ;;  %v655_v0 = vmul.f32 %v4855_v55, %v6108_v60  ;;  %v570_v1 = vpop.f32.mrb[19].mxu0 }
 0x10b   : > { %v5512_v2 = vpop.eup %5511  ;;  %945 = vst.msk [vmem:[#allocation2 + $0x19] sm:$0xff] %vm898_vm2, %v866_v51  ;;  %v867_v6 = vmul.f32 %v5510_v56, %v6131_v11  ;;  %5531 = vpow2.f32 %v768_v46  ;;  %v6208_v4 = vadd.f32 %v6113_v61, %v652_v53  ;;  %v653_v5 = vmul.f32 %v6108_v60, %v570_v1 }
 0x10c   : > { %v5514_v7 = vpop.eup %5513  ;;  %948 = vst.msk [vmem:[#allocation2 + $0x39] sm:$0xff] %vm898_vm2, %v869_v62  ;;  %v812_v9 = vadd.f32 1.0, %v5512_v2  ;;  %5533 = vpow2.f32 %v764_v52  ;;  %v724_v8 = vsub.f32 0.0, %v6202_v3  ;;  %v6214_v10 = vadd.f32 %v6113_v61, %v655_v0 }
 0x10d   : > { %v5516_v12 = vpop.eup %5515  ;;  %946 = vst.msk [vmem:[#allocation2 + $0x21] sm:$0xff] %vm898_vm2, %v867_v6  ;;  %v810_v11 = vadd.f32 1.0, %v5514_v7  ;;  %v722_v13 = vsub.f32 0.0, %v6208_v4  ;;  %v6219_v14 = vadd.f32 %v6113_v61, %v653_v5 }
 0x10e   : > { %v5518_v16 = vpop.eup %5517  ;;  %5535 = vrcp.f32 %v812_v9  ;;  %v813_v18 = vadd.f32 1.0, %v5516_v12  ;;  %v774_v19 = vmul.f32 1.442695, %v724_v8  ;;  %v725_v20 = vsub.f32 0.0, %v6214_v10 }
 0x10f   : > { %v5520_v21 = vpop.eup %5519  ;;  %5537 = vrcp.f32 %v810_v11  ;;  %v811_v24 = vadd.f32 1.0, %v5518_v16  ;;  %v770_v25 = vmul.f32 1.442695, %v722_v13  ;;  %v723_v27 = vsub.f32 0.0, %v6219_v14  ;;  %v4858_v28 = vpop.f32.mrb[20].mxu0 }
 0x110   : > { %v5522_v32 = vpop.eup %5521  ;;  %v872_v33 = vmul.f32 %v5520_v21, %v6138_v23  ;;  %5539 = vrcp.f32 %v813_v18  ;;  %v776_v34 = vmul.f32 1.442695, %v725_v20  ;;  %v658_v59 = vmul.f32 %v4858_v28, %v6108_v60  ;;  %v583_v36 = vpop.f32.mrb[21].mxu0 }
 0x111   : > { %v5524_v37 = vpop.eup %5523  ;;  %v870_v38 = vmul.f32 %v5522_v32, %v6142_v26  ;;  %5541 = vrcp.f32 %v811_v24  ;;  %v772_v39 = vmul.f32 1.442695, %v723_v27  ;;  %v656_v40 = vmul.f32 %v6108_v60, %v583_v36  ;;  %v4859_v41 = vpop.f32.mrb[22].mxu0  ;;  %v1030_v32 = vld [vmem:[#allocation2 + $0x31] sm:$0xff] }
 0x112   : > { %v5526_v42 = vpop.eup %5525  ;;  %951 = vst.msk [vmem:[#allocation2 + $0x61] sm:$0xff] %vm898_vm2, %v872_v33  ;;  %v873_v43 = vmul.f32 %v5524_v37, %v6147_v29  ;;  %5543 = vpow2.f32 %v774_v19  ;;  %v6234_v23 = vadd.f32 %v6113_v61, %v658_v59  ;;  %v659_v45 = vmul.f32 %v4859_v41, %v6108_v60  ;;  %v586_v46 = vpop.f32.mrb[23].mxu0  ;;  %v1028_v7 = vld [vmem:[#allocation2 + $0x19] sm:$0xff] }
 0x113   : > { %v5528_v47 = vpop.eup %5527  ;;  %949 = vst.msk [vmem:[#allocation2 + $0x49] sm:$0xff] %vm898_vm2, %v870_v38  ;;  %v871_v26 = vmul.f32 %v5526_v42, %v6151_v31  ;;  %5545 = vpow2.f32 %v770_v25  ;;  %v6240_v48 = vadd.f32 %v6113_v61, %v656_v40  ;;  %v657_v50 = vmul.f32 %v6108_v60, %v586_v46  ;;  %v1031_v13 = vld [vmem:[#allocation2 + $0x39] sm:$0xff] }
 0x114   : > { %v5530_v51 = vpop.eup %5529  ;;  %952 = vst.msk [vmem:[#allocation2 + $0x69] sm:$0xff] %vm898_vm2, %v873_v43  ;;  %v816_v29 = vadd.f32 1.0, %v5528_v47  ;;  %5547 = vpow2.f32 %v776_v34  ;;  %v728_v52 = vsub.f32 0.0, %v6234_v23  ;;  %v6246_v53 = vadd.f32 %v6113_v61, %v659_v45  ;;  %v1029_v0 = vld [vmem:[#allocation2 + $0x21] sm:$0xff] }
 0x115   : > { %v5532_v55 = vpop.eup %5531  ;;  %950 = vst.msk [vmem:[#allocation2 + $0x51] sm:$0xff] %vm898_vm2, %v871_v26  ;;  %v814_v31 = vadd.f32 1.0, %v5530_v51  ;;  %5549 = vpow2.f32 %v772_v39  ;;  %v726_v56 = vsub.f32 0.0, %v6240_v48  ;;  %v6251_v62 = vadd.f32 %v6113_v61, %v657_v50  ;;  %v6263_v34 = vld [vmem:[%s7405_s4 + $0x4] sm:$0x3] }
 0x116   : > { %v5534_v1 = vpop.eup %5533  ;;  %5551 = vrcp.f32 %v816_v29  ;;  %v817_v2 = vadd.f32 1.0, %v5532_v55  ;;  %v782_v6 = vmul.f32 1.442695, %v728_v52  ;;  %v729_v5 = vsub.f32 0.0, %v6246_v53 }
 0x117   : > { %5553 = vrcp.f32 %v814_v31  ;;  %v815_v9 = vadd.f32 1.0, %v5534_v1  ;;  %v778_v8 = vmul.f32 1.442695, %v726_v56  ;;  %v727_v12 = vsub.f32 0.0, %v6251_v62  ;;  %v4862_v11 = vpop.f32.mrb[24].mxu0 }
 0x118   : > { %v5536_v16 = vpop.eup %5535  ;;  %5555 = vrcp.f32 %v817_v2  ;;  %v784_v18 = vmul.f32 1.442695, %v729_v5  ;;  %v662_v19 = vmul.f32 %v4862_v11, %v6108_v60  ;;  %v6256_v20 = vpack.c.bf16 %v1029_v0, %v1028_v7  ;;  %v599_v21 = vpop.f32.mrb[25].mxu0 }
 0x119   : > { %v5538_v24 = vpop.eup %5537  ;;  %v876_v25 = vmul.f32 %v5536_v16, %v6158_v44  ;;  %5557 = vrcp.f32 %v815_v9  ;;  %v780_v27 = vmul.f32 1.442695, %v727_v12  ;;  %v660_v28 = vmul.f32 %v6108_v60, %v599_v21  ;;  %v4863_v33 = vpop.f32.mrb[26].mxu0 }
 0x11a   : > { %v5540_v59 = vpop.eup %5539  ;;  %v874_v36 = vmul.f32 %v5538_v24, %v6162_v49  ;;  %5559 = vpow2.f32 %v782_v6  ;;  %v6267_v37 = vadd.f32 %v6113_v61, %v662_v19  ;;  %4871 = vmatmul.mubr.msk.bf16.vlgmr.msra.gmra.mrb[32].mxu0 %vm898_vm2, %v6256_v20  ;;  %v6271_v44 = vpack.c.bf16 %v1031_v13, %v1030_v32  ;;  %v602_v38 = vpop.f32.mrb[27].mxu0  ;;  %v1032_v50 = vld [vmem:[#allocation2 + $0x49] sm:$0xff]  ;;  %v1034_v32 = vld [vmem:[#allocation2 + $0x61] sm:$0xff] }
 0x11b   : > { %v5542_v39 = vpop.eup %5541  ;;  %955 = vst.msk [vmem:[#allocation2 + $0x91] sm:$0xff] %vm898_vm2, %v876_v25  ;;  %v877_v40 = vmul.f32 %v5540_v59, %v6167_v54  ;;  %5561 = vpow2.f32 %v778_v8  ;;  %v6276_v41 = vadd.f32 %v6113_v61, %v660_v28  ;;  %v663_v49 = vmul.f32 %v4863_v33, %v6108_v60  ;;  %4903 = vmatpush3.bf16.msra.mxu0 %v6223_v15  ;;  %v1035_v11 = vld [vmem:[#allocation2 + $0x69] sm:$0xff] }
 0x11c   : > { %v5544_v42 = vpop.eup %5543  ;;  %953 = vst.msk [vmem:[#allocation2 + $0x79] sm:$0xff] %vm898_vm2, %v874_v36  ;;  %v875_v43 = vmul.f32 %v5542_v39, %v6171_v63  ;;  %5563 = vpow2.f32 %v784_v18  ;;  %v732_v45 = vsub.f32 0.0, %v6267_v37  ;;  %4874 = vmatprep.mubr.msk.bf16.mxu0 %vm898_vm2, %v6271_v44  ;;  %v661_v54 = vmul.f32 %v6108_v60, %v602_v38  ;;  %v1033_v46 = vld [vmem:[#allocation2 + $0x51] sm:$0xff]  ;;  %5469 = vmatprep.subr.msk.bf16.mxu0 %vm1124_vm5, %v6263_v34 }
 0x11d   : > { %v5546_v47 = vpop.eup %5545  ;;  %956 = vst.msk [vmem:[#allocation2 + $0x99] sm:$0xff] %vm898_vm2, %v877_v40  ;;  %v820_v15 = vadd.f32 1.0, %v5544_v42  ;;  %5565 = vpow2.f32 %v780_v27  ;;  %v730_v26 = vsub.f32 0.0, %v6276_v41  ;;  %v6291_v63 = vadd.f32 %v6113_v61, %v663_v49 }
 0x11e   : > { %v5548_v51 = vpop.eup %5547  ;;  %954 = vst.msk [vmem:[#allocation2 + $0x81] sm:$0xff] %vm898_vm2, %v875_v43  ;;  %v818_v29 = vadd.f32 1.0, %v5546_v47  ;;  %v790_v52 = vmul.f32 1.442695, %v732_v45  ;;  %v6295_v55 = vadd.f32 %v6113_v61, %v661_v54  ;;  %v6297_v31 = vpack.c.bf16 %v1033_v46, %v1032_v50 }
 0x11f   : > { %v5550_v56 = vpop.eup %5549  ;;  %5567 = vrcp.f32 %v820_v15  ;;  %v821_v0 = vadd.f32 1.0, %v5548_v51  ;;  %v786_v1 = vmul.f32 1.442695, %v730_v26  ;;  %v733_v2 = vsub.f32 0.0, %v6291_v63  ;;  %v4866_v6 = vpop.f32.mrb[28].mxu0 }
 0x120   : > { %v5552_v5 = vpop.eup %5551  ;;  %5569 = vrcp.f32 %v818_v29  ;;  %v819_v7 = vadd.f32 1.0, %v5550_v56  ;;  %v731_v9 = vsub.f32 0.0, %v6295_v55  ;;  %v666_v8 = vmul.f32 %v4866_v6, %v6108_v60  ;;  %v615_v12 = vpop.f32.mrb[29].mxu0 }
 0x121   : > { %v5554_v13 = vpop.eup %5553  ;;  %v880_v16 = vmul.f32 %v5552_v5, %v6178_v17  ;;  %5571 = vrcp.f32 %v821_v0  ;;  %v792_v18 = vmul.f32 1.442695, %v733_v2  ;;  %v664_v19 = vmul.f32 %v6108_v60, %v615_v12  ;;  %v4867_v21 = vpop.f32.mrb[30].mxu0 }
 0x122   : > { %v5556_v24 = vpop.eup %5555  ;;  %v878_v25 = vmul.f32 %v5554_v13, %v6182_v22  ;;  %5573 = vrcp.f32 %v819_v7  ;;  %v788_v27 = vmul.f32 1.442695, %v731_v9  ;;  %v6306_v28 = vadd.f32 %v6113_v61, %v666_v8  ;;  %4875 = vmatmul.mubr.msk.bf16.gmra.mrb[36].mxu0 %vm898_vm2, %v6297_v31  ;;  %v618_v33 = vpop.f32.mrb[31].mxu0  ;;  %v1038_v2 = vld [vmem:[#allocation2 + $0x91] sm:$0xff] }
 0x123   : > { %v5558_v59 = vpop.eup %5557  ;;  %959 = vst.msk [vmem:[#allocation2 + $0xc1] sm:$0xff] %vm898_vm2, %v880_v16  ;;  %v881_v17 = vmul.f32 %v5556_v24, %v6187_v30  ;;  %5575 = vpow2.f32 %v790_v52  ;;  %v6313_v36 = vadd.f32 %v6113_v61, %v664_v19  ;;  %v6315_v22 = vpack.c.bf16 %v1035_v11, %v1034_v32  ;;  %v1036_v56 = vld [vmem:[#allocation2 + $0x79] sm:$0xff] }
 0x124   : > { %v5560_v38 = vpop.eup %5559  ;;  %957 = vst.msk [vmem:[#allocation2 + $0xa9] sm:$0xff] %vm898_vm2, %v878_v25  ;;  %v879_v39 = vmul.f32 %v5558_v59, %v6191_v35  ;;  %5577 = vpow2.f32 %v786_v1  ;;  %v736_v40 = vsub.f32 0.0, %v6306_v28  ;;  %v667_v49 = vmul.f32 %v4867_v21, %v6108_v60  ;;  %v1039_v26 = vld [vmem:[#allocation2 + $0x99] sm:$0xff] }
 0x125   : > { %v5562_v42 = vpop.eup %5561  ;;  %960 = vst.msk [vmem:[#allocation2 + $0xc9] sm:$0xff] %vm898_vm2, %v881_v17  ;;  %v824_v30 = vadd.f32 1.0, %v5560_v38  ;;  %5579 = vpow2.f32 %v792_v18  ;;  %v734_v43 = vsub.f32 0.0, %v6313_v36  ;;  %4878 = vmatprep.mubr.msk.bf16.mxu0 %vm898_vm2, %v6315_v22  ;;  %v665_v45 = vmul.f32 %v6108_v60, %v618_v33  ;;  %v1037_v54 = vld [vmem:[#allocation2 + $0x81] sm:$0xff] }
 0x126   : > { %v5564_v46 = vpop.eup %5563  ;;  %958 = vst.msk [vmem:[#allocation2 + $0xb1] sm:$0xff] %vm898_vm2, %v879_v39  ;;  %v822_v35 = vadd.f32 1.0, %v5562_v42  ;;  %5581 = vpow2.f32 %v788_v27  ;;  %v798_v47 = vmul.f32 1.442695, %v736_v40  ;;  %v6328_v15 = vadd.f32 %v6113_v61, %v667_v49 }
 0x127   : > { %v5566_v50 = vpop.eup %5565  ;;  %5583 = vrcp.f32 %v824_v30  ;;  %v825_v51 = vadd.f32 1.0, %v5564_v46  ;;  %v794_v29 = vmul.f32 1.442695, %v734_v43  ;;  %v6331_v52 = vadd.f32 %v6113_v61, %v665_v45 }
 0x128   : > { %5585 = vrcp.f32 %v822_v35  ;;  %v823_v60 = vadd.f32 1.0, %v5566_v50  ;;  %v737_v0 = vsub.f32 0.0, %v6328_v15  ;;  %v6334_v1 = vpack.c.bf16 %v1037_v54, %v1036_v56 }
 0x129   : > { %v5568_v6 = vpop.eup %5567  ;;  %5587 = vrcp.f32 %v825_v51  ;;  %v735_v5 = vsub.f32 0.0, %v6331_v52  ;;  %v6337_v7 = vpack.c.bf16 %v1039_v26, %v1038_v2 }
 0x12a   : > { %v5570_v9 = vpop.eup %5569  ;;  %v884_v8 = vmul.f32 %v5568_v6, %v6202_v3  ;;  %5589 = vrcp.f32 %v823_v60  ;;  %v800_v61 = vmul.f32 1.442695, %v737_v0  ;;  %4879 = vmatmul.mubr.msk.bf16.gmra.mrb[40].mxu0 %vm898_vm2, %v6334_v1  ;;  %v1042_v38 = vld [vmem:[#allocation2 + $0xc1] sm:$0xff] }
 0x12b   : > { %v5572_v12 = vpop.eup %5571  ;;  %v882_v11 = vmul.f32 %v5570_v9, %v6208_v4  ;;  %5591 = vpow2.f32 %v798_v47  ;;  %v796_v13 = vmul.f32 1.442695, %v735_v5  ;;  %4882 = vmatprep.mubr.msk.bf16.mxu0 %vm898_vm2, %v6337_v7  ;;  %v1040_v21 = vld [vmem:[#allocation2 + $0xa9] sm:$0xff] }
 0x12c   : > { %v5574_v16 = vpop.eup %5573  ;;  %963 = vst.msk [vmem:[#allocation2 + $0xf1] sm:$0xff] %vm898_vm2, %v884_v8  ;;  %v885_v18 = vmul.f32 %v5572_v12, %v6214_v10  ;;  %5593 = vpow2.f32 %v794_v29  ;;  %v1043_v32 = vld [vmem:[#allocation2 + $0xc9] sm:$0xff] }
 0x12d   : > { %v5576_v3 = vpop.eup %5575  ;;  %961 = vst.msk [vmem:[#allocation2 + $0xd9] sm:$0xff] %vm898_vm2, %v882_v11  ;;  %v883_v19 = vmul.f32 %v5574_v16, %v6219_v14  ;;  %5595 = vpow2.f32 %v800_v61  ;;  %v1041_v24 = vld [vmem:[#allocation2 + $0xb1] sm:$0xff]  ;;  %v6353_v40 = vpack.c.bf16 %v1043_v32, %v1042_v38  ;;  %v2188_v61 = vsel %vm1124_vm5, %v6094_v58, 0 }
 0x12e   : > { %v5578_v4 = vpop.eup %5577  ;;  %964 = vst.msk [vmem:[#allocation2 + $0xf9] sm:$0xff] %vm898_vm2, %v885_v18  ;;  %v828_v25 = vadd.f32 1.0, %v5576_v3  ;;  %5597 = vpow2.f32 %v796_v13  ;;  %v6350_v27 = vpack.c.bf16 %v1041_v24, %v1040_v21  ;;  %v6382_v13 = vld [vmem:[%s7405_s4 + $0xa] sm:$0x3] }
 0x12f   : > { %v5580_v33 = vpop.eup %5579  ;;  %962 = vst.msk [vmem:[#allocation2 + $0xe1] sm:$0xff] %vm898_vm2, %v883_v19  ;;  %v826_v10 = vadd.f32 1.0, %v5578_v4 }
 0x130   : > { %v5582_v59 = vpop.eup %5581  ;;  %5599 = vrcp.f32 %v828_v25  ;;  %v829_v17 = vadd.f32 1.0, %v5580_v33 }
 0x131   : > { %v5584_v14 = vpop.eup %5583  ;;  %5601 = vrcp.f32 %v826_v10  ;;  %v827_v39 = vadd.f32 1.0, %v5582_v59 }
 0x132   : > { %v5586_v49 = vpop.eup %5585  ;;  %v888_v42 = vmul.f32 %v5584_v14, %v6234_v23  ;;  %5603 = vrcp.f32 %v829_v17  ;;  %4883 = vmatmul.mubr.msk.bf16.gmra.mrb[44].mxu0 %vm898_vm2, %v6350_v27 }
 0x133   : > { %v5588_v30 = vpop.eup %5587  ;;  %v886_v43 = vmul.f32 %v5586_v49, %v6240_v48  ;;  %5605 = vrcp.f32 %v827_v39  ;;  %4886 = vmatprep.mubr.msk.bf16.mxu0 %vm898_vm2, %v6353_v40  ;;  %v1813_v6 = vld [vmem:[#allocation2 + $0xf0] sm:$0xff] }
 0x134   : > { %v5590_v45 = vpop.eup %5589  ;;  %967 = vst.msk [vmem:[#allocation2 + $0x121] sm:$0xff] %vm898_vm2, %v888_v42  ;;  %v889_v54 = vmul.f32 %v5588_v30, %v6246_v53  ;;  %v1044_v35 = vld [vmem:[#allocation2 + $0xd9] sm:$0xff]  ;;  %v1046_v9 = vld [vmem:[#allocation2 + $0xf1] sm:$0xff] }
 0x135   : > { %v5592_v46 = vpop.eup %5591  ;;  %965 = vst.msk [vmem:[#allocation2 + $0x109] sm:$0xff] %vm898_vm2, %v886_v43  ;;  %v887_v23 = vmul.f32 %v5590_v45, %v6251_v62  ;;  %v1811_v47 = vld [vmem:[#allocation2 + $0xd8] sm:$0xff] }
 0x136   : > { %v1814_v26 = vld [vmem:[#allocation2 + $0xf8] sm:$0xff]  ;;  %v5594_v50 = vpop.eup %5593  ;;  %968 = vst.msk [vmem:[#allocation2 + $0x129] sm:$0xff] %vm898_vm2, %v889_v54  ;;  %v832_v48 = vadd.f32 1.0, %v5592_v46  ;;  %v1045_v51 = vld [vmem:[#allocation2 + $0xe1] sm:$0xff] }
 0x137   : > { %v1812_v29 = vld [vmem:[#allocation2 + $0xe0] sm:$0xff]  ;;  %v5596_v60 = vpop.eup %5595  ;;  %966 = vst.msk [vmem:[#allocation2 + $0x111] sm:$0xff] %vm898_vm2, %v887_v23  ;;  %v830_v0 = vadd.f32 1.0, %v5594_v50  ;;  %v6367_v53 = vpack.c.bf16 %v1045_v51, %v1044_v35  ;;  %v6371_v8 = vpack.c.bf16 %v1814_v26, %v1813_v6 }
 0x138   : > { %v1047_v56 = vld [vmem:[#allocation2 + $0xf9] sm:$0xff]  ;;  %v6369_v2 = vpack.c.bf16 %v1812_v29, %v1811_v47  ;;  %v5598_v62 = vpop.eup %5597  ;;  %5607 = vrcp.f32 %v832_v48  ;;  %v833_v5 = vadd.f32 1.0, %v5596_v60  ;;  %v978_v60 = vld [vmem:[#allocation2 + $0x8] sm:$0xff] }
 0x139   : > { %5609 = vrcp.f32 %v830_v0  ;;  %v831_v12 = vadd.f32 1.0, %v5598_v62  ;;  %v6377_v11 = vpack.c.bf16 %v1047_v56, %v1046_v9 }
 0x13a   : > { %4988 = vmatprep.mubr.msk.bf16.mxu1 %vm898_vm2, %v6369_v2  ;;  %v5600_v16 = vpop.eup %5599  ;;  %5611 = vrcp.f32 %v833_v5  ;;  %4887 = vmatmul.mubr.msk.bf16.gmra.mrb[48].mxu0 %vm898_vm2, %v6367_v53 }
 0x13b   : > { %4989 = vmatmul.mubr.msk.bf16.vlgmr.msra.gmra.mrb[0].mxu1 %vm898_vm2, %v6371_v8  ;;  %v5602_v58 = vpop.eup %5601  ;;  %v892_v18 = vmul.f32 %v5600_v16, %v6267_v37  ;;  %5613 = vrcp.f32 %v831_v12  ;;  %4890 = vmatprep.mubr.msk.bf16.mxu0 %vm898_vm2, %v6377_v11  ;;  %v1817_v38 = vld [vmem:[#allocation2 + $0x120] sm:$0xff] }
 0x13c   : > { %5005 = vmatpush3.bf16.msra.mxu1 %v2188_v61  ;;  %v5604_v3 = vpop.eup %5603  ;;  %v890_v19 = vmul.f32 %v5602_v58, %v6276_v41  ;;  %v1048_v4 = vld [vmem:[#allocation2 + $0x109] sm:$0xff] }
 0x13d   : > { %5473 = vmatprep.subr.msk.bf16.mxu1 %vm1124_vm5, %v6382_v13  ;;  %v5606_v21 = vpop.eup %5605  ;;  %971 = vst.msk [vmem:[#allocation2 + $0x151] sm:$0xff] %vm898_vm2, %v892_v18  ;;  %v893_v24 = vmul.f32 %v5604_v3, %v6291_v63  ;;  %v1815_v25 = vld [vmem:[#allocation2 + $0x108] sm:$0xff]  ;;  %v980_v3 = vld [vmem:[#allocation2 + $0x20] sm:$0xff] }
 0x13e   : > { %v1818_v32 = vld [vmem:[#allocation2 + $0x128] sm:$0xff]  ;;  %969 = vst.msk [vmem:[#allocation2 + $0x139] sm:$0xff] %vm898_vm2, %v890_v19  ;;  %v891_v37 = vmul.f32 %v5606_v21, %v6295_v55  ;;  %v1049_v33 = vld [vmem:[#allocation2 + $0x111] sm:$0xff] }
 0x13f   : > { %v1816_v10 = vld [vmem:[#allocation2 + $0x110] sm:$0xff]  ;;  %972 = vst.msk [vmem:[#allocation2 + $0x159] sm:$0xff] %vm898_vm2, %v893_v24  ;;  %v6399_v41 = vpack.c.bf16 %v1049_v33, %v1048_v4  ;;  %v1050_v63 = vld [vmem:[#allocation2 + $0x121] sm:$0xff]  ;;  %v6404_v14 = vpack.c.bf16 %v1818_v32, %v1817_v38  ;;  %v982_v19 = vld [vmem:[#allocation2 + $0x38] sm:$0xff]  ;;  %v2482_v32 = vsel %vm1124_vm5, %v6382_v13, 0 }
 0x140   : > { %v1051_v59 = vld [vmem:[#allocation2 + $0x129] sm:$0xff]  ;;  %v6401_v17 = vpack.c.bf16 %v1816_v10, %v1815_v25  ;;  %970 = vst.msk [vmem:[#allocation2 + $0x141] sm:$0xff] %vm898_vm2, %v891_v37  ;;  %v979_v21 = vld [vmem:[#allocation2 + $0x18] sm:$0xff]  ;;  %v1600_v37 = vsel %vm1124_vm5, %v6263_v34, 0  ;;  %v5871_v33 = vld [vmem:[%s7405_s4 + $0x6] sm:$0x3] }
 0x141   : > { %v6408_v39 = vpack.c.bf16 %v1051_v59, %v1050_v63  ;;  %v6455_v24 = vpack.c.bf16 %v980_v3, %v979_v21  ;;  %v981_v4 = vld [vmem:[#allocation2 + $0x30] sm:$0xff]  ;;  %v986_v34 = vld [vmem:[#allocation2 + $0x68] sm:$0xff]  ;;  %v990_v63 = vld [vmem:[#allocation2 + $0x98] sm:$0xff] }
 0x142   : > { %4992 = vmatprep.mubr.msk.bf16.mxu1 %vm898_vm2, %v6401_v17  ;;  %v5608_v55 = vpop.eup %5607  ;;  %4891 = vmatmul.mubr.msk.bf16.gmra.mrb[52].mxu0 %vm898_vm2, %v6399_v41  ;;  %v6457_v25 = vpack.c.bf16 %v982_v19, %v981_v4  ;;  %v984_v13 = vld [vmem:[#allocation2 + $0x50] sm:$0xff]  ;;  %v983_v10 = vld [vmem:[#allocation2 + $0x48] sm:$0xff]  ;;  %v2391_v4 = vld [vmem:[#allocation2 + $0x7a] sm:$0xff] }
 0x143   : > { %4993 = vmatmul.mubr.msk.bf16.gmra.mrb[4].mxu1 %vm898_vm2, %v6404_v14  ;;  %v5610_v49 = vpop.eup %5609  ;;  %v896_v42 = vmul.f32 %v5608_v55, %v6306_v28  ;;  %4894 = vmatprep.mubr.msk.bf16.mxu0 %vm898_vm2, %v6408_v39  ;;  %v6482_v59 = vpack.c.bf16 %v984_v13, %v983_v10  ;;  %v987_v55 = vld [vmem:[#allocation2 + $0x78] sm:$0xff]  ;;  %v6560_v3 = vld [vmem:[%s7405_s4 + $0xe] sm:$0x3]  ;;  %v1509_v19 = vld [vmem:[#allocation2 + $0x62] sm:$0xff] }
 0x144   : > { %v5612_v30 = vpop.eup %5611  ;;  %v894_v43 = vmul.f32 %v5610_v49, %v6313_v36  ;;  %v1054_v51 = vld [vmem:[#allocation2 + $0x151] sm:$0xff]  ;;  %v1514_v13 = vld [vmem:[#allocation2 + $0x9a] sm:$0xff] }
 0x145   : > { %v5614_v45 = vpop.eup %5613  ;;  %975 = vst.msk [vmem:[#allocation2 + $0x181] sm:$0xff] %vm898_vm2, %v896_v42  ;;  %v897_v54 = vmul.f32 %v5612_v30, %v6328_v15  ;;  %v1052_v23 = vld [vmem:[#allocation2 + $0x139] sm:$0xff]  ;;  %v1821_v15 = vld [vmem:[#allocation2 + $0x150] sm:$0xff] }
 0x146   : > { %973 = vst.msk [vmem:[#allocation2 + $0x169] sm:$0xff] %vm898_vm2, %v894_v43  ;;  %v895_v46 = vmul.f32 %v5614_v45, %v6331_v52  ;;  %v1055_v35 = vld [vmem:[#allocation2 + $0x159] sm:$0xff]  ;;  %v989_v42 = vld [vmem:[#allocation2 + $0x90] sm:$0xff]  ;;  %v994_v43 = vld [vmem:[#allocation2 + $0xc8] sm:$0xff] }
 0x147   : > { %v1822_v47 = vld [vmem:[#allocation2 + $0x158] sm:$0xff]  ;;  %976 = vst.msk [vmem:[#allocation2 + $0x189] sm:$0xff] %vm898_vm2, %v897_v54  ;;  %v1053_v28 = vld [vmem:[#allocation2 + $0x141] sm:$0xff]  ;;  %v6428_v29 = vpack.c.bf16 %v1055_v35, %v1054_v51  ;;  %v6496_v30 = vpack.c.bf16 %v990_v63, %v989_v42  ;;  %v1510_v21 = vld [vmem:[#allocation2 + $0x6a] sm:$0xff] }
 0x148   : > { %v1819_v26 = vld [vmem:[#allocation2 + $0x138] sm:$0xff]  ;;  %v1820_v50 = vld [vmem:[#allocation2 + $0x140] sm:$0xff]  ;;  %974 = vst.msk [vmem:[#allocation2 + $0x171] sm:$0xff] %vm898_vm2, %v895_v46  ;;  %v6424_v36 = vpack.c.bf16 %v1053_v28, %v1052_v23  ;;  %v6430_v56 = vpack.c.bf16 %v1822_v47, %v1821_v15  ;;  %v991_v45 = vld [vmem:[#allocation2 + $0xa8] sm:$0xff] }
 0x149   : > { %v6426_v48 = vpack.c.bf16 %v1820_v50, %v1819_v26  ;;  %v977_v52 = vld [vmem:[#allocation2] sm:$0xff]  ;;  %v1502_v47 = vld [vmem:[#allocation2 + $0xa] sm:$0xff] }
 0x14a   : > { %4895 = vmatmul.mubr.msk.bf16.gmra.mrb[56].mxu0 %vm898_vm2, %v6424_v36  ;;  %v1009_v61 = vpack.c.bf16 %v978_v60, %v977_v52  ;;  %v993_v46 = vld [vmem:[#allocation2 + $0xc0] sm:$0xff]  ;;  %v1518_v63 = vld [vmem:[#allocation2 + $0xca] sm:$0xff] }
 0x14b   : > { %4996 = vmatprep.mubr.msk.bf16.mxu1 %vm898_vm2, %v6426_v48  ;;  %4898 = vmatprep.mubr.msk.bf16.mxu0 %vm898_vm2, %v6428_v29  ;;  %v6508_v23 = vpack.c.bf16 %v994_v43, %v993_v46  ;;  %v1501_v35 = vld [vmem:[#allocation2 + $0x2] sm:$0xff]  ;;  %v2383_v26 = vld [vmem:[#allocation2 + $0x1a] sm:$0xff] }
 0x14c   : > { %4997 = vmatmul.mubr.msk.bf16.gmra.mrb[8].mxu1 %vm898_vm2, %v6430_v56  ;;  %v1825_v58 = vld [vmem:[#allocation2 + $0x180] sm:$0xff]  ;;  %v1533_v51 = vpack.c.bf16 %v1502_v47, %v1501_v35  ;;  %v2403_v35 = vld [vmem:[#allocation2 + $0x10a] sm:$0xff]  ;;  %v2404_v47 = vld [vmem:[#allocation2 + $0x112] sm:$0xff] }
 0x14d   : > { %v1056_v0 = vld [vmem:[#allocation2 + $0x169] sm:$0xff]  ;;  %v2119_v15 = vld [vmem:[#allocation2 + $0x181] sm:$0xff] }
 0x14e   : > { %v1826_v6 = vld [vmem:[#allocation2 + $0x188] sm:$0xff]  ;;  %v1522_v46 = vld [vmem:[#allocation2 + $0xfa] sm:$0xff] }
 0x14f   : > { %v1057_v62 = vld [vmem:[#allocation2 + $0x171] sm:$0xff]  ;;  %v1823_v5 = vld [vmem:[#allocation2 + $0x168] sm:$0xff]  ;;  %v6444_v18 = vpack.c.bf16 %v1826_v6, %v1825_v58  ;;  %v1506_v6 = vld [vmem:[#allocation2 + $0x3a] sm:$0xff] }
 0x150   : > { %v1824_v9 = vld [vmem:[#allocation2 + $0x170] sm:$0xff]  ;;  %v6440_v12 = vpack.c.bf16 %v1057_v62, %v1056_v0  ;;  %v2384_v50 = vld [vmem:[#allocation2 + $0x22] sm:$0xff] }
 0x151   : > { %v6442_v16 = vpack.c.bf16 %v1824_v9, %v1823_v5  ;;  %v2120_v28 = vld [vmem:[#allocation2 + $0x189] sm:$0xff]  ;;  %v2415_v60 = vpack.c.bf16 %v2384_v50, %v2383_v26  ;;  %v1505_v0 = vld [vmem:[#allocation2 + $0x32] sm:$0xff]  ;;  %v6611_v26 = vpack.c.bf16 %v2404_v47, %v2403_v35 }
 0x152   : > { %4899 = vmatmul.mubr.msk.bf16.gmra.mrb[60].mxu0 %vm898_vm2, %v6440_v12  ;;  %v6542_v52 = vpack.c.bf16 %v2120_v28, %v2119_v15  ;;  %v2387_v62 = vld [vmem:[#allocation2 + $0x4a] sm:$0xff]  ;;  %v2388_v5 = vld [vmem:[#allocation2 + $0x52] sm:$0xff]  ;;  %v6550_v9 = vpack.c.bf16 %v1506_v6, %v1505_v0  ;;  %v2400_v42 = vld [vmem:[#allocation2 + $0xe2] sm:$0xff] }
 0x153   : > { %5000 = vmatprep.mubr.msk.bf16.mxu1 %vm898_vm2, %v6442_v16  ;;  %4904 = vmatprep.mubr.msk.bf16.mxu0 %vm898_vm2, %v1009_v61  ;;  %v6555_v58 = vpack.c.bf16 %v2388_v5, %v2387_v62  ;;  %v1525_v50 = vld [vmem:[#allocation2 + $0x122] sm:$0xff]  ;;  %v2407_v15 = vld [vmem:[#allocation2 + $0x13a] sm:$0xff]  ;;  %v1529_v62 = vld [vmem:[#allocation2 + $0x152] sm:$0xff] }
 0x154   : > { %5001 = vmatmul.mubr.msk.bf16.gmra.mrb[12].mxu1 %vm898_vm2, %v6444_v18  ;;  %v1530_v5 = vld [vmem:[#allocation2 + $0x15a] sm:$0xff] }
 0x155   : > { %5006 = vmatprep.mubr.msk.bf16.mxu1 %vm898_vm2, %v6256_v20  ;;  %v6468_v20 = vld [vmem:[%s7405_s4 + $0xc] sm:$0x3] }
 0x156   : > { %v2777_v61 = vsel %vm1124_vm5, %v6468_v20, 0 }
 0x15a   : > { %4905 = vmatmul.mubr.msk.bf16.vlgmr.msra.gmra.mrb[32].mxu0 %vm898_vm2, %v6455_v24 }
 0x15b   : > { %4908 = vmatprep.mubr.msk.bf16.mxu0 %vm898_vm2, %v6457_v25  ;;  %4937 = vmatpush3.bf16.msra.mxu0 %v1600_v37  ;;  %v6571_v37 = vpack.c.bf16 %v1510_v21, %v1509_v19  ;;  %v2412_v19 = vld [vmem:[#allocation2 + $0x172] sm:$0xff]  ;;  %v6631_v21 = vpack.c.bf16 %v1530_v5, %v1529_v62  ;;  %v6818_v62 = vld [vmem:[%s7406_s5] ss:$0 sm:$0xff] }
 0x15c   : > { %5007 = vmatmul.mubr.msk.bf16.vlgmr.msra.gmra.mrb[16].mxu1 %vm898_vm2, %v6271_v44  ;;  %5470 = vmatprep.subr.msk.bf16.mxu0 %vm1124_vm5, %v5871_v33  ;;  %v985_v44 = vld [vmem:[#allocation2 + $0x60] sm:$0xff]  ;;  %v2396_v33 = vld [vmem:[#allocation2 + $0xb2] sm:$0xff] }
 0x15d   : > { %5039 = vmatpush3.bf16.msra.mxu1 %v2482_v32  ;;  %5010 = vmatprep.mubr.msk.bf16.mxu1 %vm898_vm2, %v6297_v31  ;;  %v6484_v38 = vpack.c.bf16 %v986_v34, %v985_v44  ;;  %v988_v31 = vld [vmem:[#allocation2 + $0x80] sm:$0xff]  ;;  %v2395_v34 = vld [vmem:[#allocation2 + $0xaa] sm:$0xff] }
 0x15e   : > { %5474 = vmatprep.subr.msk.bf16.mxu1 %vm1124_vm5, %v6468_v20  ;;  %v6494_v49 = vpack.c.bf16 %v988_v31, %v987_v55  ;;  %v2392_v32 = vld [vmem:[#allocation2 + $0x82] sm:$0xff]  ;;  %v6587_v44 = vpack.c.bf16 %v2396_v33, %v2395_v34  ;;  %v2399_v55 = vld [vmem:[#allocation2 + $0xda] sm:$0xff]  ;;  %v3071_v34 = vsel %vm1124_vm5, %v6560_v3, 0  ;;  %v4606_v33 = vld [vmem:[%s7405_s4 + $0x10] sm:$0x3] }
 0x15f   : > { %v6575_v20 = vpack.c.bf16 %v2392_v32, %v2391_v4  ;;  %v1517_v31 = vld [vmem:[#allocation2 + $0xc2] sm:$0xff]  ;;  %v6599_v43 = vpack.c.bf16 %v2400_v42, %v2399_v55 }
 0x160   : > { %v2413_v32 = vld [vmem:[#allocation2 + $0x182] sm:$0xff] }
 0x162   : > { %4909 = vmatmul.mubr.msk.bf16.gmra.mrb[36].mxu0 %vm898_vm2, %v6482_v59 }
 0x163   : > { %4912 = vmatprep.mubr.msk.bf16.mxu0 %vm898_vm2, %v6484_v38 }
 0x164   : > { %5011 = vmatmul.mubr.msk.bf16.gmra.mrb[20].mxu1 %vm898_vm2, %v6315_v22  ;;  %v992_v22 = vld [vmem:[#allocation2 + $0xb0] sm:$0xff] }
 0x165   : > { %5014 = vmatprep.mubr.msk.bf16.mxu1 %vm898_vm2, %v6334_v1  ;;  %v6506_v54 = vpack.c.bf16 %v992_v22, %v991_v45  ;;  %v6595_v22 = vpack.c.bf16 %v1518_v63, %v1517_v31  ;;  %v1521_v45 = vld [vmem:[#allocation2 + $0xf2] sm:$0xff] }
 0x166   : > { %v6607_v28 = vpack.c.bf16 %v1522_v46, %v1521_v45 }
 0x16a   : > { %4913 = vmatmul.mubr.msk.bf16.gmra.mrb[40].mxu0 %vm898_vm2, %v6494_v49 }
 0x16b   : > { %4916 = vmatprep.mubr.msk.bf16.mxu0 %vm898_vm2, %v6496_v30 }
 0x16c   : > { %5015 = vmatmul.mubr.msk.bf16.gmra.mrb[24].mxu1 %vm898_vm2, %v6337_v7 }
 0x16d   : > { %5018 = vmatprep.mubr.msk.bf16.mxu1 %vm898_vm2, %v6350_v27 }
 0x172   : > { %4917 = vmatmul.mubr.msk.bf16.gmra.mrb[44].mxu0 %vm898_vm2, %v6506_v54 }
 0x173   : > { %4920 = vmatprep.mubr.msk.bf16.mxu0 %vm898_vm2, %v6508_v23 }
 0x174   : > { %5019 = vmatmul.mubr.msk.bf16.gmra.mrb[28].mxu1 %vm898_vm2, %v6353_v40 }
 0x175   : > { %5022 = vmatprep.mubr.msk.bf16.mxu1 %vm898_vm2, %v6367_v53 }
 0x17a   : > { %4921 = vmatmul.mubr.msk.bf16.gmra.mrb[48].mxu0 %vm898_vm2, %v6369_v2 }
 0x17b   : > { %4924 = vmatprep.mubr.msk.bf16.mxu0 %vm898_vm2, %v6371_v8 }
 0x17c   : > { %5023 = vmatmul.mubr.msk.bf16.gmra.mrb[0].mxu1 %vm898_vm2, %v6377_v11 }
 0x17d   : > { %5026 = vmatprep.mubr.msk.bf16.mxu1 %vm898_vm2, %v6399_v41 }
 0x182   : > { %4925 = vmatmul.mubr.msk.bf16.gmra.mrb[52].mxu0 %vm898_vm2, %v6401_v17 }
 0x183   : > { %4928 = vmatprep.mubr.msk.bf16.mxu0 %vm898_vm2, %v6404_v14 }
 0x184   : > { %5027 = vmatmul.mubr.msk.bf16.gmra.mrb[4].mxu1 %vm898_vm2, %v6408_v39 }
 0x185   : > { %5030 = vmatprep.mubr.msk.bf16.mxu1 %vm898_vm2, %v6424_v36 }
 0x18a   : > { %4929 = vmatmul.mubr.msk.bf16.gmra.mrb[56].mxu0 %vm898_vm2, %v6426_v48 }
 0x18b   : > { %4932 = vmatprep.mubr.msk.bf16.mxu0 %vm898_vm2, %v6430_v56 }
 0x18c   : > { %5031 = vmatmul.mubr.msk.bf16.gmra.mrb[8].mxu1 %vm898_vm2, %v6428_v29 }
 0x18d   : > { %5034 = vmatprep.mubr.msk.bf16.mxu1 %vm898_vm2, %v6440_v12 }
 0x192   : > { %4933 = vmatmul.mubr.msk.bf16.gmra.mrb[60].mxu0 %vm898_vm2, %v6442_v16 }
 0x193   : > { %4938 = vmatprep.mubr.msk.bf16.mxu0 %vm898_vm2, %v1533_v51  ;;  %v1526_v51 = vld [vmem:[#allocation2 + $0x12a] sm:$0xff] }
 0x194   : > { %5035 = vmatmul.mubr.msk.bf16.gmra.mrb[12].mxu1 %vm898_vm2, %v6542_v52  ;;  %v6619_v0 = vpack.c.bf16 %v1526_v51, %v1525_v50 }
 0x195   : > { %5040 = vmatprep.mubr.msk.bf16.mxu1 %vm898_vm2, %v2415_v60 }
 0x19a   : > { %4939 = vmatmul.mubr.msk.bf16.vlgmr.msra.gmra.mrb[32].mxu0 %vm898_vm2, %v2415_v60  ;;  %v2408_v60 = vld [vmem:[#allocation2 + $0x142] sm:$0xff] }
 0x19b   : > { %4942 = vmatprep.mubr.msk.bf16.mxu0 %vm898_vm2, %v6550_v9  ;;  %4971 = vmatpush3.bf16.msra.mxu0 %v6088_v57  ;;  %v1513_v57 = vld [vmem:[#allocation2 + $0x92] sm:$0xff]  ;;  %v6623_v6 = vpack.c.bf16 %v2408_v60, %v2407_v15 }
 0x19c   : > { %5041 = vmatmul.mubr.msk.bf16.vlgmr.msra.gmra.mrb[16].mxu1 %vm898_vm2, %v6550_v9  ;;  %v6583_v10 = vpack.c.bf16 %v1514_v13, %v1513_v57  ;;  %v2414_v57 = vld [vmem:[#allocation2 + $0x18a] sm:$0xff] }
 0x19d   : > { %5073 = vmatpush3.bf16.msra.mxu1 %v2777_v61  ;;  %5044 = vmatprep.mubr.msk.bf16.mxu1 %vm898_vm2, %v6555_v58  ;;  %v2411_v61 = vld [vmem:[#allocation2 + $0x16a] sm:$0xff]  ;;  %v6643_v13 = vpack.c.bf16 %v2414_v57, %v2413_v32 }
 0x19e   : > { %5475 = vmatprep.subr.msk.bf16.mxu1 %vm1124_vm5, %v6560_v3  ;;  %v6635_v4 = vpack.c.bf16 %v2412_v19, %v2411_v61 }
 0x1a2   : > { %4943 = vmatmul.mubr.msk.bf16.gmra.mrb[36].mxu0 %vm898_vm2, %v6555_v58 }
 0x1a3   : > { %4946 = vmatprep.mubr.msk.bf16.mxu0 %vm898_vm2, %v6571_v37 }
 0x1a4   : > { %5045 = vmatmul.mubr.msk.bf16.gmra.mrb[20].mxu1 %vm898_vm2, %v6571_v37 }
 0x1a5   : > { %5048 = vmatprep.mubr.msk.bf16.mxu1 %vm898_vm2, %v6575_v20 }
 0x1aa   : > { %4947 = vmatmul.mubr.msk.bf16.gmra.mrb[40].mxu0 %vm898_vm2, %v6575_v20 }
 0x1ab   : > { %4950 = vmatprep.mubr.msk.bf16.mxu0 %vm898_vm2, %v6583_v10 }
 0x1ac   : > { %5049 = vmatmul.mubr.msk.bf16.gmra.mrb[24].mxu1 %vm898_vm2, %v6583_v10 }
 0x1ad   : > { %5052 = vmatprep.mubr.msk.bf16.mxu1 %vm898_vm2, %v6587_v44 }
 0x1b2   : > { %4951 = vmatmul.mubr.msk.bf16.gmra.mrb[44].mxu0 %vm898_vm2, %v6587_v44 }
 0x1b3   : > { %4954 = vmatprep.mubr.msk.bf16.mxu0 %vm898_vm2, %v6595_v22 }
 0x1b4   : > { %5053 = vmatmul.mubr.msk.bf16.gmra.mrb[28].mxu1 %vm898_vm2, %v6595_v22 }
 0x1b5   : > { %5056 = vmatprep.mubr.msk.bf16.mxu1 %vm898_vm2, %v6599_v43 }
 0x1ba   : > { %4955 = vmatmul.mubr.msk.bf16.gmra.mrb[48].mxu0 %vm898_vm2, %v6599_v43 }
 0x1bb   : > { %4958 = vmatprep.mubr.msk.bf16.mxu0 %vm898_vm2, %v6607_v28 }
 0x1bc   : > { %5057 = vmatmul.mubr.msk.bf16.gmra.mrb[0].mxu1 %vm898_vm2, %v6607_v28 }
 0x1bd   : > { %5060 = vmatprep.mubr.msk.bf16.mxu1 %vm898_vm2, %v6611_v26 }
 0x1c2   : > { %4959 = vmatmul.mubr.msk.bf16.gmra.mrb[52].mxu0 %vm898_vm2, %v6611_v26 }
 0x1c3   : > { %4962 = vmatprep.mubr.msk.bf16.mxu0 %vm898_vm2, %v6619_v0 }
 0x1c4   : > { %5061 = vmatmul.mubr.msk.bf16.gmra.mrb[4].mxu1 %vm898_vm2, %v6619_v0 }
 0x1c5   : > { %5064 = vmatprep.mubr.msk.bf16.mxu1 %vm898_vm2, %v6623_v6 }
 0x1ca   : > { %4963 = vmatmul.mubr.msk.bf16.gmra.mrb[56].mxu0 %vm898_vm2, %v6623_v6 }
 0x1cb   : > { %4966 = vmatprep.mubr.msk.bf16.mxu0 %vm898_vm2, %v6631_v21 }
 0x1cc   : > { %5065 = vmatmul.mubr.msk.bf16.gmra.mrb[8].mxu1 %vm898_vm2, %v6631_v21 }
 0x1cd   : > { %5068 = vmatprep.mubr.msk.bf16.mxu1 %vm898_vm2, %v6635_v4 }
 0x1d2   : > { %4967 = vmatmul.mubr.msk.bf16.gmra.mrb[60].mxu0 %vm898_vm2, %v6635_v4 }
 0x1d3   : > { %4972 = vmatprep.mubr.msk.bf16.mxu0 %vm898_vm2, %v6455_v24 }
 0x1d4   : > { %5069 = vmatmul.mubr.msk.bf16.gmra.mrb[12].mxu1 %vm898_vm2, %v6643_v13 }
 0x1d5   : > { %5074 = vmatprep.mubr.msk.bf16.mxu1 %vm898_vm2, %v6457_v25 }
 0x1da   : > { %4973 = vmatmul.mubr.msk.bf16.vlgmr.msra.gmra.mrb[32].mxu0 %vm898_vm2, %v6457_v25  ;;  %v2973_v25 = vld [vmem:[#allocation2 + $0x39] sm:$0xff] }
 0x1db   : > { %4976 = vmatprep.mubr.msk.bf16.mxu0 %vm898_vm2, %v6482_v59 }
 0x1dc   : > { %5075 = vmatmul.mubr.msk.bf16.vlgmr.msra.gmra.mrb[16].mxu1 %vm898_vm2, %v6482_v59 }
 0x1dd   : > { %5107 = vmatpush3.bf16.msra.mxu1 %v3071_v34  ;;  %5078 = vmatprep.mubr.msk.bf16.mxu1 %vm898_vm2, %v6484_v38 }
 0x1de   : > { %5476 = vmatprep.subr.msk.bf16.mxu1 %vm1124_vm5, %v4606_v33 }
 0x1e2   : > { %4977 = vmatmul.mubr.msk.bf16.gmra.mrb[36].mxu0 %vm898_vm2, %v6484_v38  ;;  %v2974_v38 = vld [vmem:[#allocation2 + $0x49] sm:$0xff] }
 0x1e3   : > { %4980 = vmatprep.mubr.msk.bf16.mxu0 %vm898_vm2, %v6494_v49 }
 0x1e4   : > { %5079 = vmatmul.mubr.msk.bf16.gmra.mrb[20].mxu1 %vm898_vm2, %v6494_v49  ;;  %v3365_v49 = vsel %vm1124_vm5, %v4606_v33, 0 }
 0x1e5   : > { %5082 = vmatprep.mubr.msk.bf16.mxu1 %vm898_vm2, %v6496_v30 }
 0x1ea   : > { %4981 = vmatmul.mubr.msk.bf16.gmra.mrb[40].mxu0 %vm898_vm2, %v6496_v30 }
 0x1eb   : > { %4984 = vmatprep.mubr.msk.bf16.mxu0 %vm898_vm2, %v6506_v54 }
 0x1ec   : > { %5083 = vmatmul.mubr.msk.bf16.gmra.mrb[24].mxu1 %vm898_vm2, %v6506_v54 }
 0x1ed   : > { %5086 = vmatprep.mubr.msk.bf16.mxu1 %vm898_vm2, %v6508_v23 }
 0x1f2   : > { %4985 = vmatmul.mubr.msk.bf16.gmra.mrb[44].mxu0 %vm898_vm2, %v6508_v23 }
 0x1f4   : > { %5087 = vmatmul.mubr.msk.bf16.gmra.mrb[28].mxu1 %vm898_vm2, %v6369_v2  ;;  %v2708_v2 = vld [vmem:[#allocation2 + $0x198] sm:$0xff] }
 0x1f5   : > { %5090 = vmatprep.mubr.msk.bf16.mxu1 %vm898_vm2, %v6371_v8  ;;  %v2709_v8 = vld [vmem:[#allocation2 + $0x1a0] sm:$0xff] }
 0x1f6   : > { %v2725_v24 = vpack.c.bf16 %v2709_v8, %v2708_v2 }
 0x1fc   : > { %5091 = vmatmul.mubr.msk.bf16.gmra.mrb[0].mxu1 %vm898_vm2, %v6401_v17  ;;  %v2972_v17 = vld [vmem:[#allocation2 + $0x31] sm:$0xff] }
 0x1fd   : > { %5094 = vmatprep.mubr.msk.bf16.mxu1 %vm898_vm2, %v6404_v14  ;;  %v3004_v59 = vpack.c.bf16 %v2973_v25, %v2972_v17  ;;  %v2975_v14 = vld [vmem:[#allocation2 + $0x51] sm:$0xff] }
 0x204   : > { %5095 = vmatmul.mubr.msk.bf16.gmra.mrb[4].mxu1 %vm898_vm2, %v6426_v48  ;;  %v2977_v48 = vld [vmem:[#allocation2 + $0x69] sm:$0xff] }
 0x205   : > { %5098 = vmatprep.mubr.msk.bf16.mxu1 %vm898_vm2, %v6430_v56  ;;  %v3005_v56 = vpack.c.bf16 %v2975_v14, %v2974_v38 }
 0x20c   : > { %5099 = vmatmul.mubr.msk.bf16.gmra.mrb[8].mxu1 %vm898_vm2, %v6442_v16  ;;  %v2976_v16 = vld [vmem:[#allocation2 + $0x61] sm:$0xff] }
 0x20d   : > { %5102 = vmatprep.mubr.msk.bf16.mxu1 %vm898_vm2, %v6444_v18  ;;  %v3006_v30 = vpack.c.bf16 %v2977_v48, %v2976_v16 }
 0x214   : > { %5103 = vmatmul.mubr.msk.bf16.gmra.mrb[12].mxu1 %vm898_vm2, %v2725_v24 }
 0x215   : > { %5108 = vmatprep.mubr.msk.bf16.mxu1 %vm898_vm2, %v3004_v59 }
 0x21c   : > { %5109 = vmatmul.mubr.msk.bf16.vlgmr.msra.gmra.mrb[16].mxu1 %vm898_vm2, %v3005_v56 }
 0x21d   : > { %5141 = vmatpush3.bf16.msra.mxu1 %v3365_v49  ;;  %5112 = vmatprep.mubr.msk.bf16.mxu1 %vm898_vm2, %v3006_v30 }
 0x224   : > { %5113 = vmatmul.mubr.msk.bf16.gmra.mrb[20].mxu1 %vm898_vm2, %v6334_v1  ;;  %v3002_v1 = vld [vmem:[#allocation2 + $0x199] sm:$0xff] }
 0x225   : > { %5116 = vmatprep.mubr.msk.bf16.mxu1 %vm898_vm2, %v6337_v7  ;;  %v3003_v7 = vld [vmem:[#allocation2 + $0x1a1] sm:$0xff] }
 0x22c   : > { %5117 = vmatmul.mubr.msk.bf16.gmra.mrb[24].mxu1 %vm898_vm2, %v6350_v27  ;;  %v3019_v27 = vpack.c.bf16 %v3003_v7, %v3002_v1 }
 0x22d   : > { %5120 = vmatprep.mubr.msk.bf16.mxu1 %vm898_vm2, %v6353_v40  ;;  %v3296_v40 = vld [vmem:[#allocation2 + $0x19a] sm:$0xff] }
 0x234   : > { %5121 = vmatmul.mubr.msk.bf16.gmra.mrb[28].mxu1 %vm898_vm2, %v6367_v53  ;;  %v3297_v53 = vld [vmem:[#allocation2 + $0x1a2] sm:$0xff] }
 0x235   : > { %5124 = vmatprep.mubr.msk.bf16.mxu1 %vm898_vm2, %v6377_v11 }
 0x23c   : > { %5125 = vmatmul.mubr.msk.bf16.gmra.mrb[0].mxu1 %vm898_vm2, %v6399_v41 }
 0x23d   : > { %5128 = vmatprep.mubr.msk.bf16.mxu1 %vm898_vm2, %v6408_v39 }
 0x244   : > { %5129 = vmatmul.mubr.msk.bf16.gmra.mrb[4].mxu1 %vm898_vm2, %v6424_v36  ;;  %v3313_v36 = vpack.c.bf16 %v3297_v53, %v3296_v40 }
 0x245   : > { %5132 = vmatprep.mubr.msk.bf16.mxu1 %vm898_vm2, %v6428_v29 }
 0x24c   : > { %5133 = vmatmul.mubr.msk.bf16.gmra.mrb[8].mxu1 %vm898_vm2, %v6440_v12 }
 0x24d   : > { %5136 = vmatprep.mubr.msk.bf16.mxu1 %vm898_vm2, %v6542_v52 }
 0x254   : > { %5137 = vmatmul.mubr.msk.bf16.gmra.mrb[12].mxu1 %vm898_vm2, %v3019_v27 }
 0x255   : > { %5142 = vmatprep.mubr.msk.bf16.mxu1 %vm898_vm2, %v6550_v9 }
 0x25c   : > { %5143 = vmatmul.mubr.msk.bf16.vlgmr.msra.gmra.mrb[16].mxu1 %vm898_vm2, %v6555_v58 }
 0x25d   : > { %5146 = vmatprep.mubr.msk.bf16.mxu1 %vm898_vm2, %v6571_v37 }
 0x264   : > { %5147 = vmatmul.mubr.msk.bf16.gmra.mrb[20].mxu1 %vm898_vm2, %v6575_v20 }
 0x265   : > { %5150 = vmatprep.mubr.msk.bf16.mxu1 %vm898_vm2, %v6583_v10 }
 0x26c   : > { %5151 = vmatmul.mubr.msk.bf16.gmra.mrb[24].mxu1 %vm898_vm2, %v6587_v44 }
 0x26d   : > { %5154 = vmatprep.mubr.msk.bf16.mxu1 %vm898_vm2, %v6595_v22 }
 0x274   : > { %5155 = vmatmul.mubr.msk.bf16.gmra.mrb[28].mxu1 %vm898_vm2, %v6599_v43 }
 0x275   : > { %5158 = vmatprep.mubr.msk.bf16.mxu1 %vm898_vm2, %v6607_v28 }
 0x27c   : > { %5159 = vmatmul.mubr.msk.bf16.gmra.mrb[0].mxu1 %vm898_vm2, %v6611_v26 }
 0x27d   : > { %5162 = vmatprep.mubr.msk.bf16.mxu1 %vm898_vm2, %v6619_v0  ;;  %v3844_v0 = vld [vmem:[%s7408_s7] sm:$0x3] }
 0x27e   : > { %5477 = vmatprep.subr.msk.bf16.mxu0 %vm1124_vm5, %v3844_v0 }
 0x284   : > { %5163 = vmatmul.mubr.msk.bf16.gmra.mrb[4].mxu1 %vm898_vm2, %v6623_v6  ;;  %v3894_v6 = vsel %vm1124_vm5, %v3844_v0, 0 }
 0x285   : > { %5166 = vmatprep.mubr.msk.bf16.mxu1 %vm898_vm2, %v6631_v21  ;;  %5175 = vmatpush3.bf16.msra.mxu0 %v3894_v6  ;;  %v6823_v21 = vld [vmem:[%s7407_s6] ss:$0 sm:$0xff] }
 0x28c   : > { %5167 = vmatmul.mubr.msk.bf16.gmra.mrb[8].mxu1 %vm898_vm2, %v6635_v4 }
 0x28d   : > { %5170 = vmatprep.mubr.msk.bf16.mxu1 %vm898_vm2, %v6643_v13  ;;  %v6761_v11 = vpop.f32.mrb[48].mxu0 }
 0x28e   : > { %v6763_v41 = vpop.f32.mrb[49].mxu0 }
 0x28f   : > { %v6765_v39 = vpop.f32.mrb[50].mxu0 }
 0x290   : > { %v6767_v29 = vpop.f32.mrb[51].mxu0 }
 0x294   : > { %5171 = vmatmul.mubr.msk.bf16.gmra.mrb[12].mxu1 %vm898_vm2, %v3313_v36 }
 0x295   : > { %v6770_v12 = vpop.f32.mrb[52].mxu0 }
 0x296   : > { %v6772_v18 = vpop.f32.mrb[53].mxu0 }
 0x297   : > { %v6774_v54 = vpop.f32.mrb[54].mxu0 }
 0x298   : > { %v6776_v23 = vpop.f32.mrb[55].mxu0 }
 0x29d   : > { %v6778_v52 = vpop.f32.mrb[56].mxu0 }
 0x29e   : > { %v6780_v9 = vpop.f32.mrb[57].mxu0 }
 0x29f   : > { %v6782_v58 = vpop.f32.mrb[58].mxu0 }
 0x2a0   : > { %v6784_v3 = vpop.f32.mrb[59].mxu0 }
 0x2a5   : > { %v6786_v37 = vpop.f32.mrb[60].mxu0 }
 0x2a6   : > { %v6788_v20 = vpop.f32.mrb[61].mxu0 }
 0x2a7   : > { %v6790_v10 = vpop.f32.mrb[62].mxu0 }
 0x2a8   : > { %v6792_v44 = vpop.f32.mrb[63].mxu0 }
 0x2ad   : > { %v4974_v31 = vpop.f32.mrb[32].mxu0 }
 0x2ae   : > { %v1930_v63 = vpop.f32.mrb[33].mxu0 }
 0x2af   : > { %v4975_v55 = vpop.f32.mrb[34].mxu0 }
 0x2b0   : > { %v1933_v42 = vpop.f32.mrb[35].mxu0 }
 0x2b5   : > { %v4978_v22 = vpop.f32.mrb[36].mxu0 }
 0x2b6   : > { %v1946_v43 = vpop.f32.mrb[37].mxu0 }
 0x2b7   : > { %v4979_v45 = vpop.f32.mrb[38].mxu0 }
 0x2b8   : > { %v1949_v46 = vpop.f32.mrb[39].mxu0 }
 0x2bd   : > { %v6794_v35 = vpop.f32.mrb[40].mxu0 }
 0x2be   : > { %v6796_v47 = vpop.f32.mrb[41].mxu0 }
 0x2bf   : > { %v6798_v28 = vpop.f32.mrb[42].mxu0 }
 0x2c0   : > { %v6800_v26 = vpop.f32.mrb[43].mxu0 }
 0x2c5   : > { %v6802_v50 = vpop.f32.mrb[44].mxu0 }
 0x2c6   : > { %v6804_v51 = vpop.f32.mrb[45].mxu0 }
 0x2c7   : > { %v6806_v15 = vpop.f32.mrb[46].mxu0 }
 0x2c8   : > { %v6808_v60 = vpop.f32.mrb[47].mxu0 }
 0x32f   : > { %v5144_v5 = vpop.f32.mrb[16].mxu1 }
 0x330   : > { %v5210_v61 = vadd.f32 %v5144_v5, %v4974_v31  ;;  %v3401_v19 = vpop.f32.mrb[17].mxu1 }
 0x331   : > { %v5211_v4 = vadd.f32 %v3401_v19, %v1930_v63  ;;  %v5145_v32 = vpop.f32.mrb[18].mxu1 }
 0x332   : > { %v3568_v57 = vmul.f32 %v5210_v61, %v6818_v62  ;;  %v5212_v13 = vadd.f32 %v5145_v32, %v4975_v55  ;;  %v3404_v34 = vpop.f32.mrb[19].mxu1 }
 0x333   : > { %v3566_v33 = vmul.f32 %v5211_v4, %v6818_v62  ;;  %v5213_v2 = vadd.f32 %v3404_v34, %v1933_v42 }
 0x334   : > { %v6828_v8 = vadd.f32 %v6823_v21, %v3568_v57  ;;  %v3569_v24 = vmul.f32 %v5212_v13, %v6818_v62 }
 0x335   : > { %v6832_v25 = vadd.f32 %v6823_v21, %v3566_v33  ;;  %v3567_v17 = vmul.f32 %v5213_v2, %v6818_v62 }
 0x336   : > { %v3638_v59 = vsub.f32 0.0, %v6828_v8  ;;  %v6837_v14 = vadd.f32 %v6823_v21, %v3569_v24 }
 0x337   : > { %v3636_v48 = vsub.f32 0.0, %v6832_v25  ;;  %v6841_v38 = vadd.f32 %v6823_v21, %v3567_v17  ;;  %v5148_v56 = vpop.f32.mrb[20].mxu1 }
 0x338   : > { %v3672_v49 = vmul.f32 1.442695, %v3638_v59  ;;  %v3639_v16 = vsub.f32 0.0, %v6837_v14  ;;  %v5214_v30 = vadd.f32 %v5148_v56, %v4978_v22  ;;  %v3417_v1 = vpop.f32.mrb[21].mxu1 }
 0x339   : > { %v3668_v7 = vmul.f32 1.442695, %v3636_v48  ;;  %v3637_v27 = vsub.f32 0.0, %v6841_v38  ;;  %v5215_v40 = vadd.f32 %v3417_v1, %v1946_v43  ;;  %v5149_v53 = vpop.f32.mrb[22].mxu1 }
 0x33a   : > { %5615 = vpow2.f32 %v3672_v49  ;;  %v3674_v36 = vmul.f32 1.442695, %v3639_v16  ;;  %v3572_v31 = vmul.f32 %v5214_v30, %v6818_v62  ;;  %v5216_v63 = vadd.f32 %v5149_v53, %v4979_v45  ;;  %v3420_v55 = vpop.f32.mrb[23].mxu1 }
 0x33b   : > { %5617 = vpow2.f32 %v3668_v7  ;;  %v3670_v42 = vmul.f32 1.442695, %v3637_v27  ;;  %v3570_v0 = vmul.f32 %v5215_v40, %v6818_v62  ;;  %v5217_v6 = vadd.f32 %v3420_v55, %v1949_v46 }
 0x33c   : > { %5619 = vpow2.f32 %v3674_v36  ;;  %v6848_v22 = vadd.f32 %v6823_v21, %v3572_v31  ;;  %v3573_v5 = vmul.f32 %v5216_v63, %v6818_v62 }
 0x33d   : > { %5621 = vpow2.f32 %v3670_v42  ;;  %v6852_v43 = vadd.f32 %v6823_v21, %v3570_v0  ;;  %v3571_v61 = vmul.f32 %v5217_v6, %v6818_v62 }
 0x33e   : > { %v3642_v45 = vsub.f32 0.0, %v6848_v22  ;;  %v6857_v19 = vadd.f32 %v6823_v21, %v3573_v5 }
 0x33f   : > { %v3640_v4 = vsub.f32 0.0, %v6852_v43  ;;  %v6861_v46 = vadd.f32 %v6823_v21, %v3571_v61  ;;  %v5152_v32 = vpop.f32.mrb[24].mxu1 }
 0x340   : > { %v3680_v57 = vmul.f32 1.442695, %v3642_v45  ;;  %v3643_v13 = vsub.f32 0.0, %v6857_v19  ;;  %v5218_v34 = vadd.f32 %v5152_v32, %v6794_v35  ;;  %v3433_v33 = vpop.f32.mrb[25].mxu1 }
 0x341   : > { %v3676_v2 = vmul.f32 1.442695, %v3640_v4  ;;  %v3641_v24 = vsub.f32 0.0, %v6861_v46  ;;  %v5219_v17 = vadd.f32 %v3433_v33, %v6796_v47  ;;  %v5153_v59 = vpop.f32.mrb[26].mxu1 }
 0x342   : > { %5623 = vpow2.f32 %v3680_v57  ;;  %v3682_v48 = vmul.f32 1.442695, %v3643_v13  ;;  %v3576_v56 = vmul.f32 %v5218_v34, %v6818_v62  ;;  %v5220_v49 = vadd.f32 %v5153_v59, %v6798_v28  ;;  %v3436_v16 = vpop.f32.mrb[27].mxu1 }
 0x343   : > { %5625 = vpow2.f32 %v3676_v2  ;;  %v3678_v30 = vmul.f32 1.442695, %v3641_v24  ;;  %v3574_v1 = vmul.f32 %v5219_v17, %v6818_v62  ;;  %v5221_v35 = vadd.f32 %v3436_v16, %v6800_v26 }
 0x344   : > { %v5616_v7 = vpop.eup %5615  ;;  %5627 = vpow2.f32 %v3682_v48  ;;  %v6872_v27 = vadd.f32 %v6823_v21, %v3576_v56  ;;  %v3577_v47 = vmul.f32 %v5220_v49, %v6818_v62 }
 0x345   : > { %v5618_v40 = vpop.eup %5617  ;;  %v3734_v53 = vadd.f32 1.0, %v5616_v7  ;;  %5629 = vpow2.f32 %v3678_v30  ;;  %v6876_v36 = vadd.f32 %v6823_v21, %v3574_v1  ;;  %v3575_v28 = vmul.f32 %v5221_v35, %v6818_v62 }
 0x346   : > { %v5620_v31 = vpop.eup %5619  ;;  %v3732_v63 = vadd.f32 1.0, %v5618_v40  ;;  %v3646_v55 = vsub.f32 0.0, %v6872_v27  ;;  %v6881_v26 = vadd.f32 %v6823_v21, %v3577_v47 }
 0x347   : > { %v5622_v42 = vpop.eup %5621  ;;  %5631 = vrcp.f32 %v3734_v53  ;;  %v3735_v0 = vadd.f32 1.0, %v5620_v31  ;;  %v3644_v6 = vsub.f32 0.0, %v6876_v36  ;;  %v6885_v5 = vadd.f32 %v6823_v21, %v3575_v28  ;;  %v5156_v61 = vpop.f32.mrb[28].mxu1 }
 0x348   : > { %5633 = vrcp.f32 %v3732_v63  ;;  %v3733_v45 = vadd.f32 1.0, %v5622_v42  ;;  %v3688_v4 = vmul.f32 1.442695, %v3646_v55  ;;  %v3647_v32 = vsub.f32 0.0, %v6881_v26  ;;  %v3449_v57 = vpop.f32.mrb[29].mxu1 }
 0x349   : > { %5635 = vrcp.f32 %v3735_v0  ;;  %v3684_v13 = vmul.f32 1.442695, %v3644_v6  ;;  %v3645_v34 = vsub.f32 0.0, %v6885_v5  ;;  %v5222_v33 = vadd.f32 %v5156_v61, %v6802_v50  ;;  %v5157_v2 = vpop.f32.mrb[30].mxu1 }
 0x34a   : > { %5637 = vrcp.f32 %v3733_v45  ;;  %v3690_v24 = vmul.f32 1.442695, %v3647_v32  ;;  %v5223_v17 = vadd.f32 %v3449_v57, %v6804_v51  ;;  %v5224_v59 = vadd.f32 %v5157_v2, %v6806_v15  ;;  %v3452_v48 = vpop.f32.mrb[31].mxu1 }
 0x34b   : > { %5639 = vpow2.f32 %v3688_v4  ;;  %v3686_v56 = vmul.f32 1.442695, %v3645_v34  ;;  %v3580_v49 = vmul.f32 %v5222_v33, %v6818_v62  ;;  %v5225_v16 = vadd.f32 %v3452_v48, %v6808_v60 }
 0x34c   : > { %v5624_v30 = vpop.eup %5623  ;;  %5641 = vpow2.f32 %v3684_v13  ;;  %v3578_v1 = vmul.f32 %v5223_v17, %v6818_v62  ;;  %v3581_v50 = vmul.f32 %v5224_v59, %v6818_v62 }
 0x34d   : > { %v5626_v35 = vpop.eup %5625  ;;  %v3738_v7 = vadd.f32 1.0, %v5624_v30  ;;  %5643 = vpow2.f32 %v3690_v24  ;;  %v6897_v51 = vadd.f32 %v6823_v21, %v3580_v49  ;;  %v3579_v15 = vmul.f32 %v5225_v16, %v6818_v62 }
 0x34e   : > { %v5628_v47 = vpop.eup %5627  ;;  %v3736_v40 = vadd.f32 1.0, %v5626_v35  ;;  %5645 = vpow2.f32 %v3686_v56  ;;  %v6901_v53 = vadd.f32 %v6823_v21, %v3578_v1  ;;  %v6904_v60 = vadd.f32 %v6823_v21, %v3581_v50 }
 0x34f   : > { %v5630_v28 = vpop.eup %5629  ;;  %5647 = vrcp.f32 %v3738_v7  ;;  %v3739_v31 = vadd.f32 1.0, %v5628_v47  ;;  %v3650_v63 = vsub.f32 0.0, %v6897_v51  ;;  %v6908_v55 = vadd.f32 %v6823_v21, %v3579_v15  ;;  %v5160_v42 = vpop.f32.mrb[0].mxu1 }
 0x350   : > { %5649 = vrcp.f32 %v3736_v40  ;;  %v3737_v0 = vadd.f32 1.0, %v5630_v28  ;;  %v3648_v6 = vsub.f32 0.0, %v6901_v53  ;;  %v3651_v61 = vsub.f32 0.0, %v6904_v60  ;;  %v3465_v45 = vpop.f32.mrb[1].mxu1 }
 0x351   : > { %v5632_v4 = vpop.eup %5631  ;;  %5651 = vrcp.f32 %v3739_v31  ;;  %v3696_v32 = vmul.f32 1.442695, %v3650_v63  ;;  %v3649_v57 = vsub.f32 0.0, %v6908_v55  ;;  %v5226_v13 = vadd.f32 %v5160_v42, %v6761_v11  ;;  %v5161_v34 = vpop.f32.mrb[2].mxu1 }
 0x352   : > { %v5634_v33 = vpop.eup %5633  ;;  %5653 = vrcp.f32 %v3737_v0  ;;  %v3692_v2 = vmul.f32 1.442695, %v3648_v6  ;;  %v3698_v24 = vmul.f32 1.442695, %v3651_v61  ;;  %v3468_v17 = vpop.f32.mrb[3].mxu1  ;;  %v6915_v48 = vmul.f32 %v5632_v4, %v6828_v8 }
 0x353   : > { %v5636_v59 = vpop.eup %5635  ;;  %5655 = vpow2.f32 %v3696_v32  ;;  %v3694_v56 = vmul.f32 1.442695, %v3649_v57  ;;  %v3584_v49 = vmul.f32 %v5226_v13, %v6818_v62  ;;  %v5227_v11 = vadd.f32 %v3465_v45, %v6763_v41 }
 0x354   : > { %v5638_v16 = vpop.eup %5637  ;;  %v6919_v30 = vmul.f32 %v5636_v59, %v6837_v14  ;;  %5657 = vpow2.f32 %v3692_v2  ;;  %v5228_v1 = vadd.f32 %v5161_v34, %v6765_v39  ;;  %v6924_v35 = vmul.f32 %v5634_v33, %v6832_v25 }
 0x355   : > { %v5640_v50 = vpop.eup %5639  ;;  %5659 = vpow2.f32 %v3698_v24  ;;  %v6927_v8 = vadd.f32 %v6823_v21, %v3584_v49  ;;  %v5229_v7 = vadd.f32 %v3468_v17, %v6767_v29  ;;  %v3582_v41 = vmul.f32 %v5227_v11, %v6818_v62 }
 0x356   : > { %v5642_v15 = vpop.eup %5641  ;;  %v3829_v14 = vpack.c.bf16 %v6919_v30, %v6915_v48  ;;  %v3742_v47 = vadd.f32 1.0, %v5640_v50  ;;  %5661 = vpow2.f32 %v3694_v56  ;;  %v3585_v25 = vmul.f32 %v5228_v1, %v6818_v62 }
 0x357   : > { %v5644_v40 = vpop.eup %5643  ;;  %v3740_v39 = vadd.f32 1.0, %v5642_v15  ;;  %v3654_v28 = vsub.f32 0.0, %v6927_v8  ;;  %v3583_v31 = vmul.f32 %v5229_v7, %v6818_v62  ;;  %v5164_v63 = vpop.f32.mrb[4].mxu1  ;;  %v6937_v0 = vadd.f32 %v6823_v21, %v3582_v41 }
 0x358   : > { %v5646_v42 = vpop.eup %5645  ;;  %5663 = vrcp.f32 %v3742_v47  ;;  %v3743_v29 = vadd.f32 1.0, %v5644_v40  ;;  %v5230_v6 = vadd.f32 %v5164_v63, %v6770_v12  ;;  %v3481_v61 = vpop.f32.mrb[5].mxu1  ;;  %v6941_v57 = vadd.f32 %v6823_v21, %v3585_v25 }
 0x359   : > { %v5648_v45 = vpop.eup %5647  ;;  %5665 = vrcp.f32 %v3740_v39  ;;  %v3741_v4 = vadd.f32 1.0, %v5646_v42  ;;  %v3704_v32 = vmul.f32 1.442695, %v3654_v28  ;;  %v5165_v13 = vpop.f32.mrb[6].mxu1  ;;  %v3797_v33 = vmul.f32 %v5638_v16, %v6841_v38 }
 0x35a   : > { %v5650_v34 = vpop.eup %5649  ;;  %5667 = vrcp.f32 %v3743_v29  ;;  %v3652_v2 = vsub.f32 0.0, %v6937_v0  ;;  %v6946_v24 = vadd.f32 %v6823_v21, %v3583_v31  ;;  %v3484_v17 = vpop.f32.mrb[7].mxu1  ;;  %v6949_v59 = vmul.f32 %v5648_v45, %v6848_v22 }
 0x35b   : > { %v5652_v12 = vpop.eup %5651  ;;  %5669 = vrcp.f32 %v3741_v4  ;;  %v3655_v56 = vsub.f32 0.0, %v6941_v57  ;;  %v3588_v49 = vmul.f32 %v5230_v6, %v6818_v62  ;;  %v6954_v1 = vmul.f32 %v5650_v34, %v6852_v43 }
 0x35c   : > { %v5654_v11 = vpop.eup %5653  ;;  %5671 = vpow2.f32 %v3704_v32  ;;  %v3700_v38 = vmul.f32 1.442695, %v3652_v2  ;;  %v3653_v16 = vsub.f32 0.0, %v6946_v24  ;;  %v6958_v7 = vmul.f32 %v5652_v12, %v6857_v19 }
 0x35d   : > { %v5656_v50 = vpop.eup %5655  ;;  %v3706_v15 = vmul.f32 1.442695, %v3655_v56  ;;  %v6961_v22 = vadd.f32 %v6823_v21, %v3588_v49  ;;  %v5231_v47 = vadd.f32 %v3481_v61, %v6772_v18  ;;  %v5232_v43 = vadd.f32 %v5165_v13, %v6774_v54 }
 0x35e   : > { %v5658_v41 = vpop.eup %5657  ;;  %v3746_v40 = vadd.f32 1.0, %v5656_v50  ;;  %5673 = vpow2.f32 %v3700_v38  ;;  %v3702_v39 = vmul.f32 1.442695, %v3653_v16  ;;  %v3828_v18 = vpack.c.bf16 %v3797_v33, %v6924_v35 }
 0x35f   : > { %v5660_v28 = vpop.eup %5659  ;;  %v3744_v25 = vadd.f32 1.0, %v5658_v41  ;;  %5675 = vpow2.f32 %v3706_v15  ;;  %v3658_v31 = vsub.f32 0.0, %v6961_v22  ;;  %v3586_v19 = vmul.f32 %v5231_v47, %v6818_v62  ;;  %v5168_v63 = vpop.f32.mrb[8].mxu1 }
 0x360   : > { %v5662_v42 = vpop.eup %5661  ;;  %5677 = vrcp.f32 %v3746_v40  ;;  %v3747_v29 = vadd.f32 1.0, %v5660_v28  ;;  %v3589_v6 = vmul.f32 %v5232_v43, %v6818_v62  ;;  %v3497_v61 = vpop.f32.mrb[9].mxu1  ;;  %5176 = vmatprep.mubr.msk.bf16.mxu0 %vm898_vm2, %v3828_v18  ;;  %v5233_v2 = vadd.f32 %v3484_v17, %v6776_v23 }
 0x361   : > { %5679 = vrcp.f32 %v3744_v25  ;;  %v3745_v45 = vadd.f32 1.0, %v5662_v42  ;;  %v3712_v4 = vmul.f32 1.442695, %v3658_v31  ;;  %v6970_v54 = vadd.f32 %v6823_v21, %v3586_v19  ;;  %v5169_v32 = vpop.f32.mrb[10].mxu1  ;;  %5177 = vmatmul.mubr.msk.bf16.vlgmr.msra.gmra.mrb[64].mxu0 %vm898_vm2, %v3829_v14 }
 0x362   : > { %v5664_v13 = vpop.eup %5663  ;;  %5681 = vrcp.f32 %v3747_v29  ;;  %v6973_v34 = vadd.f32 %v6823_v21, %v3589_v6  ;;  %v5234_v12 = vadd.f32 %v5168_v63, %v6778_v52  ;;  %v3500_v35 = vpop.f32.mrb[11].mxu1  ;;  %v3801_v56 = vmul.f32 %v5654_v11, %v6861_v46 }
 0x363   : > { %v5666_v33 = vpop.eup %5665  ;;  %5683 = vrcp.f32 %v3745_v45  ;;  %v3656_v49 = vsub.f32 0.0, %v6970_v54  ;;  %v5235_v38 = vadd.f32 %v3497_v61, %v6780_v9  ;;  %v6986_v50 = vmul.f32 %v5664_v13, %v6872_v27 }
 0x364   : > { %v5668_v16 = vpop.eup %5667  ;;  %5685 = vpow2.f32 %v3702_v39  ;;  %v3659_v23 = vsub.f32 0.0, %v6973_v34  ;;  %v3587_v52 = vmul.f32 %v5233_v2, %v6818_v62  ;;  %v6991_v17 = vmul.f32 %v5666_v33, %v6876_v36 }
 0x365   : > { %v5670_v46 = vpop.eup %5669  ;;  %5687 = vpow2.f32 %v3712_v4  ;;  %v3708_v11 = vmul.f32 1.442695, %v3656_v49  ;;  %v3592_v48 = vmul.f32 %v5234_v12, %v6818_v62  ;;  %v6995_v9 = vmul.f32 %v5668_v16, %v6881_v26 }
 0x366   : > { %v5672_v30 = vpop.eup %5671  ;;  %v3714_v14 = vmul.f32 1.442695, %v3659_v23  ;;  %v6998_v27 = vadd.f32 %v6823_v21, %v3587_v52  ;;  %v3590_v15 = vmul.f32 %v5235_v38, %v6818_v62  ;;  %v5236_v36 = vadd.f32 %v5169_v32, %v6782_v58 }
 0x367   : > { %v3750_v47 = vadd.f32 1.0, %v5672_v30  ;;  %5689 = vpow2.f32 %v3708_v11  ;;  %v7002_v41 = vadd.f32 %v6823_v21, %v3592_v48  ;;  %v5172_v40 = vpop.f32.mrb[12].mxu1  ;;  %v3830_v28 = vpack.c.bf16 %v3801_v56, %v6954_v1 }
 0x368   : > { %v5674_v39 = vpop.eup %5673  ;;  %5691 = vpow2.f32 %v3714_v14  ;;  %v3657_v43 = vsub.f32 0.0, %v6998_v27  ;;  %v7007_v26 = vadd.f32 %v6823_v21, %v3590_v15  ;;  %v3513_v25 = vpop.f32.mrb[13].mxu1  ;;  %v3593_v42 = vmul.f32 %v5236_v36, %v6818_v62 }
 0x369   : > { %v5676_v31 = vpop.eup %5675  ;;  %5693 = vrcp.f32 %v3750_v47  ;;  %v3748_v19 = vadd.f32 1.0, %v5674_v39  ;;  %v3662_v63 = vsub.f32 0.0, %v7002_v41  ;;  %v5173_v29 = vpop.f32.mrb[14].mxu1  ;;  %5180 = vmatprep.mubr.msk.bf16.mxu0 %vm898_vm2, %v3830_v28  ;;  %v5237_v45 = vadd.f32 %v3500_v35, %v6784_v3 }
 0x36a   : > { %v5678_v58 = vpop.eup %5677  ;;  %v3751_v6 = vadd.f32 1.0, %v5676_v31  ;;  %v3710_v18 = vmul.f32 1.442695, %v3657_v43  ;;  %v3660_v61 = vsub.f32 0.0, %v7007_v26  ;;  %v3516_v4 = vpop.f32.mrb[15].mxu1  ;;  %v3805_v32 = vmul.f32 %v5670_v46, %v6885_v5 }
 0x36b   : > { %v5680_v1 = vpop.eup %5679  ;;  %5695 = vrcp.f32 %v3748_v19  ;;  %v3720_v13 = vmul.f32 1.442695, %v3662_v63  ;;  %v7017_v2 = vadd.f32 %v6823_v21, %v3593_v42  ;;  %v7020_v33 = vmul.f32 %v5678_v58, %v6897_v51 }
 0x36c   : > { %v5682_v12 = vpop.eup %5681  ;;  %5697 = vrcp.f32 %v3751_v6  ;;  %v3716_v56 = vmul.f32 1.442695, %v3660_v61  ;;  %v3591_v49 = vmul.f32 %v5237_v45, %v6818_v62  ;;  %v7024_v3 = vmul.f32 %v5680_v1, %v6901_v53 }
 0x36d   : > { %v5684_v38 = vpop.eup %5683  ;;  %5699 = vpow2.f32 %v3710_v18  ;;  %v3663_v5 = vsub.f32 0.0, %v7017_v2  ;;  %v3831_v35 = vpack.c.bf16 %v6958_v7, %v6949_v59  ;;  %v5238_v52 = vadd.f32 %v5172_v40, %v6786_v37 }
 0x36e   : > { %v5686_v16 = vpop.eup %5685  ;;  %v3809_v23 = vmul.f32 %v5684_v38, %v6908_v55  ;;  %5701 = vpow2.f32 %v3720_v13  ;;  %v7031_v51 = vadd.f32 %v6823_v21, %v3591_v49  ;;  %v5239_v48 = vadd.f32 %v3513_v25, %v6788_v20 }
 0x36f   : > { %v5688_v46 = vpop.eup %5687  ;;  %v3749_v11 = vadd.f32 1.0, %v5686_v16  ;;  %5703 = vpow2.f32 %v3716_v56  ;;  %v3722_v53 = vmul.f32 1.442695, %v3663_v5  ;;  %5181 = vmatmul.mubr.msk.bf16.gmra.mrb[68].mxu0 %vm898_vm2, %v3831_v35  ;;  %v3596_v7 = vmul.f32 %v5238_v52, %v6818_v62 }
 0x370   : > { %v3754_v30 = vadd.f32 1.0, %v5688_v46  ;;  %v3661_v59 = vsub.f32 0.0, %v7031_v51  ;;  %v5240_v55 = vadd.f32 %v5173_v29, %v6790_v10  ;;  %v3594_v15 = vmul.f32 %v5239_v48, %v6818_v62 }
 0x371   : > { %v5690_v14 = vpop.eup %5689  ;;  %5705 = vrcp.f32 %v3749_v11  ;;  %v3832_v37 = vpack.c.bf16 %v3805_v32, %v6991_v17  ;;  %v5241_v47 = vadd.f32 %v3516_v4, %v6792_v44  ;;  %v7043_v20 = vadd.f32 %v6823_v21, %v3596_v7 }
 0x372   : > { %v5692_v36 = vpop.eup %5691  ;;  %5707 = vrcp.f32 %v3754_v30  ;;  %v3752_v40 = vadd.f32 1.0, %v5690_v14  ;;  %v3718_v39 = vmul.f32 1.442695, %v3661_v59  ;;  %v7046_v10 = vadd.f32 %v6823_v21, %v3594_v15 }
 0x373   : > { %v5694_v43 = vpop.eup %5693  ;;  %v3755_v28 = vadd.f32 1.0, %v5692_v36  ;;  %5709 = vpow2.f32 %v3722_v53  ;;  %v3597_v25 = vmul.f32 %v5240_v55, %v6818_v62  ;;  %5184 = vmatprep.mubr.msk.bf16.mxu0 %vm898_vm2, %v3832_v37  ;;  %v3811_v17 = vmul.f32 %v5682_v12, %v6904_v60 }
 0x374   : > { %5711 = vrcp.f32 %v3752_v40  ;;  %v3666_v44 = vsub.f32 0.0, %v7043_v20  ;;  %v3595_v31 = vmul.f32 %v5241_v47, %v6818_v62  ;;  %v3664_v63 = vsub.f32 0.0, %v7046_v10 }
 0x375   : > { %v5696_v19 = vpop.eup %5695  ;;  %5713 = vrcp.f32 %v3755_v28  ;;  %v7055_v42 = vadd.f32 %v6823_v21, %v3597_v25  ;;  %v3833_v29 = vpack.c.bf16 %v6995_v9, %v6986_v50  ;;  %v3814_v6 = vmul.f32 %v5694_v43, %v6927_v8 }
 0x376   : > { %v5698_v58 = vpop.eup %5697  ;;  %5715 = vpow2.f32 %v3718_v39  ;;  %v3728_v60 = vmul.f32 1.442695, %v3666_v44  ;;  %v7061_v18 = vadd.f32 %v6823_v21, %v3595_v31  ;;  %v3724_v45 = vmul.f32 1.442695, %v3664_v63 }
 0x377   : > { %v5700_v61 = vpop.eup %5699  ;;  %v3815_v62 = vmul.f32 %v5698_v58, %v6941_v57  ;;  %v3667_v4 = vsub.f32 0.0, %v7055_v42  ;;  %5185 = vmatmul.mubr.msk.bf16.gmra.mrb[72].mxu0 %vm898_vm2, %v3833_v29  ;;  %v3834_v1 = vpack.c.bf16 %v3809_v23, %v7024_v3  ;;  %v3835_v9 = vpack.c.bf16 %v3811_v17, %v7020_v33 }
 0x378   : > { %v5702_v32 = vpop.eup %5701  ;;  %v3753_v50 = vadd.f32 1.0, %v5700_v61  ;;  %5717 = vpow2.f32 %v3728_v60  ;;  %v3665_v8 = vsub.f32 0.0, %v7061_v18  ;;  %v3812_v3 = vmul.f32 %v5696_v19, %v6937_v0 }
 0x379   : > { %v5704_v13 = vpop.eup %5703  ;;  %v3758_v21 = vadd.f32 1.0, %v5702_v32  ;;  %5719 = vpow2.f32 %v3724_v45  ;;  %v3730_v12 = vmul.f32 1.442695, %v3667_v4  ;;  %5188 = vmatprep.mubr.msk.bf16.mxu0 %vm898_vm2, %v3834_v1  ;;  %v3837_v57 = vpack.c.bf16 %v3815_v62, %v3814_v6 }
 0x37a   : > { %5721 = vrcp.f32 %v3753_v50  ;;  %v3726_v56 = vmul.f32 1.442695, %v3665_v8  ;;  %v3756_v16 = vadd.f32 1.0, %v5704_v13  ;;  %v5872_v13 = vld [vmem:[%s5987_s20 + $0x10] sm:$0xff] }
 0x37b   : > { %v5706_v49 = vpop.eup %5705  ;;  %5723 = vrcp.f32 %v3758_v21 }
 0x37c   : > { %v5708_v38 = vpop.eup %5707  ;;  %v3813_v5 = vmul.f32 %v5706_v49, %v6946_v24  ;;  %5725 = vpow2.f32 %v3730_v12 }
 0x37d   : > { %v5710_v35 = vpop.eup %5709  ;;  %5727 = vpow2.f32 %v3726_v56  ;;  %v3818_v53 = vmul.f32 %v5708_v38, %v6961_v22 }
 0x37e   : > { %v5712_v33 = vpop.eup %5711  ;;  %v3759_v23 = vadd.f32 1.0, %v5710_v35  ;;  %v3836_v52 = vpack.c.bf16 %v3813_v5, %v3812_v3  ;;  %v5874_v3 = vld [vmem:[%s5987_s20 + $0x18] sm:$0xff] }
 0x37f   : > { %v5714_v46 = vpop.eup %5713  ;;  %5189 = vmatmul.mubr.msk.bf16.gmra.mrb[76].mxu0 %vm898_vm2, %v3835_v9  ;;  %v3816_v14 = vmul.f32 %v5712_v33, %v6970_v54 }
 0x380   : > { %v5716_v11 = vpop.eup %5715  ;;  %v3819_v48 = vmul.f32 %v5714_v46, %v6973_v34  ;;  %5729 = vrcp.f32 %v3759_v23  ;;  %5192 = vmatprep.mubr.msk.bf16.mxu0 %vm898_vm2, %v3836_v52 }
 0x381   : > { %5731 = vrcp.f32 %v3756_v16  ;;  %v3757_v0 = vadd.f32 1.0, %v5716_v11  ;;  %v5875_v16 = vld [vmem:[%s5987_s20 + $0x8] sm:$0xff] }
 0x382   : > { %v5718_v24 = vpop.eup %5717  ;;  %v3839_v30 = vpack.c.bf16 %v3819_v48, %v3818_v53 }
 0x383   : > { %v5720_v59 = vpop.eup %5719  ;;  %5733 = vrcp.f32 %v3757_v0  ;;  %v3762_v55 = vadd.f32 1.0, %v5718_v24 }
 0x384   : > { %v5722_v7 = vpop.eup %5721  ;;  %v3760_v37 = vadd.f32 1.0, %v5720_v59 }
 0x385   : > { %v3817_v15 = vmul.f32 %v5722_v7, %v6998_v27  ;;  %v5724_v47 = vpop.eup %5723  ;;  %5735 = vrcp.f32 %v3762_v55 }
 0x386   : > { %v5726_v22 = vpop.eup %5725  ;;  %5737 = vrcp.f32 %v3760_v37  ;;  %v3822_v54 = vmul.f32 %v5724_v47, %v7002_v41 }
 0x387   : > { %5193 = vmatmul.mubr.msk.bf16.gmra.mrb[80].mxu0 %vm898_vm2, %v3837_v57  ;;  %v3838_v34 = vpack.c.bf16 %v3817_v15, %v3816_v14  ;;  %v5728_v36 = vpop.eup %5727  ;;  %v3763_v40 = vadd.f32 1.0, %v5726_v22  ;;  %v5873_v57 = vld [vmem:[%s5987_s20] sm:$0xff]  ;;  %v5876_v22 = vld [vmem:[%s5987_s20 + $0x30] sm:$0xff] }
 0x388   : > { %v3761_v39 = vadd.f32 1.0, %v5728_v36 }
 0x389   : > { %5196 = vmatprep.mubr.msk.bf16.mxu0 %vm898_vm2, %v3838_v34  ;;  %5739 = vrcp.f32 %v3763_v40  ;;  %v5877_v40 = vld [vmem:[%s5987_s20 + $0x20] sm:$0xff] }
 0x38a   : > { %v5730_v43 = vpop.eup %5729  ;;  %5741 = vrcp.f32 %v3761_v39 }
 0x38b   : > { %v5732_v28 = vpop.eup %5731  ;;  %v3823_v27 = vmul.f32 %v5730_v43, %v7017_v2 }
 0x38c   : > { %v3820_v44 = vmul.f32 %v5732_v28, %v7007_v26 }
 0x38d   : > { %v5734_v25 = vpop.eup %5733  ;;  %v3841_v17 = vpack.c.bf16 %v3823_v27, %v3822_v54  ;;  %v5878_v54 = vld [vmem:[%s5987_s20 + $0x38] sm:$0xff] }
 0x38e   : > { %v3821_v31 = vmul.f32 %v5734_v25, %v7031_v51 }
 0x38f   : > { %5197 = vmatmul.mubr.msk.bf16.gmra.mrb[84].mxu0 %vm898_vm2, %v3839_v30  ;;  %v5736_v63 = vpop.eup %5735 }
 0x390   : > { %v3840_v19 = vpack.c.bf16 %v3821_v31, %v3820_v44  ;;  %v5738_v29 = vpop.eup %5737  ;;  %v3826_v41 = vmul.f32 %v5736_v63, %v7043_v20  ;;  %v7096_v20 = vld [vmem:[%s7409_s8] ss:$0 sm:$0xff] }
 0x391   : > { %v3824_v60 = vmul.f32 %v5738_v29, %v7046_v10  ;;  %v7101_v10 = vld [vmem:[%s7410_s9] ss:$0 sm:$0xff] }
 0x392   : > { %5200 = vmatprep.mubr.msk.bf16.mxu0 %vm898_vm2, %v3840_v19 }
 0x393   : > { %v5740_v58 = vpop.eup %5739 }
 0x394   : > { %v5742_v6 = vpop.eup %5741  ;;  %v3827_v2 = vmul.f32 %v5740_v58, %v7055_v42 }
 0x395   : > { %v3825_v61 = vmul.f32 %v5742_v6, %v7061_v18 }
 0x396   : > { %v3843_v26 = vpack.c.bf16 %v3827_v2, %v3826_v41 }
 0x397   : > { %5201 = vmatmul.mubr.msk.bf16.gmra.mrb[88].mxu0 %vm898_vm2, %v3841_v17  ;;  %v3842_v51 = vpack.c.bf16 %v3825_v61, %v3824_v60  ;;  %v5879_v17 = vld [vmem:[%s5987_s20 + $0x28] sm:$0xff] }
 0x399   : > { %5204 = vmatprep.mubr.msk.bf16.mxu0 %vm898_vm2, %v3842_v51 }
 0x39f   : > { %5205 = vmatmul.mubr.msk.bf16.gmra.mrb[92].mxu0 %vm898_vm2, %v3843_v26 }
 0x434   : > { %v5178_v42 = vpop.f32.mrb[64].mxu0 }
 0x435   : > { %v4065_v18 = vmul.f32 %v5178_v42, %v7096_v20  ;;  %v3930_v62 = vpop.f32.mrb[65].mxu0 }
 0x436   : > { %v4063_v45 = vmul.f32 %v7096_v20, %v3930_v62  ;;  %v5179_v4 = vpop.f32.mrb[66].mxu0 }
 0x437   : > { %v4103_v1 = vadd.f32 %v7101_v10, %v4065_v18  ;;  %v4066_v32 = vmul.f32 %v5179_v4, %v7096_v20  ;;  %v3933_v50 = vpop.f32.mrb[67].mxu0 }
 0x438   : > { %v4101_v8 = vadd.f32 %v7101_v10, %v4063_v45  ;;  %v4064_v9 = vmul.f32 %v7096_v20, %v3933_v50 }
 0x439   : > { %v7110_v21 = vadd.f32 %v5872_v13, %v4103_v1  ;;  %v4104_v12 = vadd.f32 %v7101_v10, %v4066_v32 }
 0x43a   : > { %v7114_v56 = vadd.f32 %v5873_v57, %v4101_v8  ;;  %v4102_v49 = vadd.f32 %v7101_v10, %v4064_v9  ;;  %v5880_v9 = vld [vmem:[%s5987_s20 + $0x50] sm:$0xff] }
 0x43b   : > { %v4167_v38 = vsub.f32 0.0, %v7110_v21  ;;  %v7119_v5 = vadd.f32 %v5874_v3, %v4104_v12 }
 0x43c   : > { %v4165_v35 = vsub.f32 0.0, %v7114_v56  ;;  %v7123_v33 = vadd.f32 %v5875_v16, %v4102_v49  ;;  %v5881_v49 = vld [vmem:[%s5987_s20 + $0x40] sm:$0xff] }
 0x43d   : > { %v4201_v23 = vmul.f32 1.442695, %v4167_v38  ;;  %v4168_v52 = vsub.f32 0.0, %v7119_v5 }
 0x43e   : > { %v4197_v46 = vmul.f32 1.442695, %v4165_v35  ;;  %v4166_v11 = vsub.f32 0.0, %v7123_v33 }
 0x43f   : > { %5743 = vpow2.f32 %v4201_v23  ;;  %v4203_v53 = vmul.f32 1.442695, %v4168_v52 }
 0x440   : > { %5745 = vpow2.f32 %v4197_v46  ;;  %v4199_v48 = vmul.f32 1.442695, %v4166_v11 }
 0x441   : > { %5747 = vpow2.f32 %v4203_v53  ;;  %v5882_v53 = vld [vmem:[%s5987_s20 + $0x58] sm:$0xff] }
 0x442   : > { %v5182_v0 = vpop.f32.mrb[68].mxu0  ;;  %5749 = vpow2.f32 %v4199_v48 }
 0x443   : > { %v4069_v24 = vmul.f32 %v5182_v0, %v7096_v20  ;;  %v3946_v30 = vpop.f32.mrb[69].mxu0 }
 0x444   : > { %v4067_v59 = vmul.f32 %v7096_v20, %v3946_v30  ;;  %v5183_v7 = vpop.f32.mrb[70].mxu0 }
 0x445   : > { %v4107_v55 = vadd.f32 %v7101_v10, %v4069_v24  ;;  %v4070_v14 = vmul.f32 %v5183_v7, %v7096_v20  ;;  %v3949_v15 = vpop.f32.mrb[71].mxu0 }
 0x446   : > { %v4105_v37 = vadd.f32 %v7101_v10, %v4067_v59  ;;  %v4068_v47 = vmul.f32 %v7096_v20, %v3949_v15  ;;  %v5883_v59 = vld [vmem:[%s5987_s20 + $0x48] sm:$0xff] }
 0x447   : > { %v7134_v34 = vadd.f32 %v5876_v22, %v4107_v55  ;;  %v4108_v36 = vadd.f32 %v7101_v10, %v4070_v14 }
 0x448   : > { %v7138_v39 = vadd.f32 %v5877_v40, %v4105_v37  ;;  %v4106_v43 = vadd.f32 %v7101_v10, %v4068_v47 }
 0x449   : > { %v4171_v28 = vsub.f32 0.0, %v7134_v34  ;;  %v7143_v27 = vadd.f32 %v5878_v54, %v4108_v36  ;;  %v5744_v19 = vpop.eup %5743 }
 0x44a   : > { %v4169_v25 = vsub.f32 0.0, %v7138_v39  ;;  %v7147_v44 = vadd.f32 %v5879_v17, %v4106_v43  ;;  %v5186_v31 = vpop.f32.mrb[72].mxu0  ;;  %v5746_v41 = vpop.eup %5745  ;;  %v4263_v2 = vadd.f32 1.0, %v5744_v19 }
 0x44b   : > { %v4209_v63 = vmul.f32 1.442695, %v4171_v28  ;;  %v4172_v29 = vsub.f32 0.0, %v7143_v27  ;;  %v4073_v58 = vmul.f32 %v5186_v31, %v7096_v20  ;;  %v3962_v6 = vpop.f32.mrb[73].mxu0  ;;  %v5748_v51 = vpop.eup %5747  ;;  %v4261_v42 = vadd.f32 1.0, %v5746_v41 }
 0x44c   : > { %v4170_v60 = vsub.f32 0.0, %v7147_v44  ;;  %v4071_v61 = vmul.f32 %v7096_v20, %v3962_v6  ;;  %v5187_v26 = vpop.f32.mrb[74].mxu0  ;;  %v4205_v18 = vmul.f32 1.442695, %v4169_v25  ;;  %v5750_v4 = vpop.eup %5749  ;;  %v4264_v1 = vadd.f32 1.0, %v5748_v51  ;;  %v5884_v25 = vld [vmem:[%s5987_s20 + $0x70] sm:$0xff] }
 0x44d   : > { %5751 = vpow2.f32 %v4209_v63  ;;  %v4111_v62 = vadd.f32 %v7101_v10, %v4073_v58  ;;  %v3965_v45 = vpop.f32.mrb[75].mxu0  ;;  %v4211_v32 = vmul.f32 1.442695, %v4172_v29  ;;  %v4262_v8 = vadd.f32 1.0, %v5750_v4  ;;  %v5885_v58 = vld [vmem:[%s5987_s20 + $0x60] sm:$0xff] }
 0x44e   : > { %5753 = vrcp.f32 %v4263_v2  ;;  %v4109_v50 = vadd.f32 %v7101_v10, %v4071_v61  ;;  %v4074_v12 = vmul.f32 %v5187_v26, %v7096_v20  ;;  %v4207_v57 = vmul.f32 1.442695, %v4170_v60  ;;  %v5886_v26 = vld [vmem:[%s5987_s20 + $0x78] sm:$0xff] }
 0x44f   : > { %5755 = vrcp.f32 %v4261_v42  ;;  %v7156_v13 = vadd.f32 %v5880_v9, %v4111_v62  ;;  %v4072_v3 = vmul.f32 %v7096_v20, %v3965_v45  ;;  %v5887_v45 = vld [vmem:[%s5987_s20 + $0x68] sm:$0xff] }
 0x450   : > { %5757 = vrcp.f32 %v4264_v1  ;;  %v7160_v38 = vadd.f32 %v5881_v49, %v4109_v50  ;;  %v4112_v16 = vadd.f32 %v7101_v10, %v4074_v12 }
 0x451   : > { %5759 = vrcp.f32 %v4262_v8  ;;  %v4175_v35 = vsub.f32 0.0, %v7156_v13  ;;  %v4110_v52 = vadd.f32 %v7101_v10, %v4072_v3 }
 0x452   : > { %5761 = vpow2.f32 %v4205_v18  ;;  %v4173_v23 = vsub.f32 0.0, %v7160_v38  ;;  %v5190_v46 = vpop.f32.mrb[76].mxu0  ;;  %v7168_v48 = vadd.f32 %v5882_v53, %v4112_v16 }
 0x453   : > { %5763 = vpow2.f32 %v4211_v32  ;;  %v4217_v11 = vmul.f32 1.442695, %v4175_v35  ;;  %v4077_v0 = vmul.f32 %v5190_v46, %v7096_v20  ;;  %v3978_v24 = vpop.f32.mrb[77].mxu0  ;;  %v7172_v7 = vadd.f32 %v5883_v59, %v4110_v52 }
 0x454   : > { %5765 = vpow2.f32 %v4207_v57  ;;  %v4213_v30 = vmul.f32 1.442695, %v4173_v23  ;;  %v4075_v55 = vmul.f32 %v7096_v20, %v3978_v24  ;;  %v5191_v14 = vpop.f32.mrb[78].mxu0  ;;  %v4176_v15 = vsub.f32 0.0, %v7168_v48 }
 0x455   : > { %5767 = vpow2.f32 %v4217_v11  ;;  %v4115_v37 = vadd.f32 %v7101_v10, %v4077_v0  ;;  %v4078_v47 = vmul.f32 %v5191_v14, %v7096_v20  ;;  %v3981_v22 = vpop.f32.mrb[79].mxu0  ;;  %v4174_v36 = vsub.f32 0.0, %v7172_v7 }
 0x456   : > { %5769 = vpow2.f32 %v4213_v30  ;;  %v4113_v40 = vadd.f32 %v7101_v10, %v4075_v55  ;;  %v4076_v43 = vmul.f32 %v7096_v20, %v3981_v22  ;;  %v4219_v54 = vmul.f32 1.442695, %v4176_v15 }
 0x457   : > { %v5752_v28 = vpop.eup %5751  ;;  %v7182_v17 = vadd.f32 %v5884_v25, %v4115_v37  ;;  %v4116_v31 = vadd.f32 %v7101_v10, %v4078_v47  ;;  %v4215_v29 = vmul.f32 1.442695, %v4174_v36  ;;  %v5888_v37 = vld [vmem:[%s5987_s20 + $0x90] sm:$0xff] }
 0x458   : > { %v5754_v19 = vpop.eup %5753  ;;  %v4267_v63 = vadd.f32 1.0, %v5752_v28  ;;  %v7193_v6 = vadd.f32 %v5885_v58, %v4113_v40  ;;  %v4114_v41 = vadd.f32 %v7101_v10, %v4076_v43  ;;  %5771 = vpow2.f32 %v4219_v54  ;;  %v5889_v40 = vld [vmem:[%s5987_s20 + $0x80] sm:$0xff] }
 0x459   : > { %v5756_v2 = vpop.eup %5755  ;;  %v4327_v60 = vmul.f32 %v5754_v19, %v7110_v21  ;;  %v4179_v61 = vsub.f32 0.0, %v7182_v17  ;;  %v7199_v51 = vadd.f32 %v5886_v26, %v4116_v31 }
 0x45a   : > { %v5758_v42 = vpop.eup %5757  ;;  %v4325_v18 = vmul.f32 %v5756_v2, %v7114_v56  ;;  %5773 = vrcp.f32 %v4267_v63  ;;  %v4177_v62 = vsub.f32 0.0, %v7193_v6  ;;  %v7204_v4 = vadd.f32 %v5887_v45, %v4114_v41  ;;  %v5194_v1 = vpop.f32.mrb[80].mxu0 }
 0x45b   : > { %v5760_v32 = vpop.eup %5759  ;;  %4359 = vst.msk [vmem:[%s7190_s25 + $0x10] sm:$0xff] %vm416_vm1, %v4327_v60  ;;  %v4328_v21 = vmul.f32 %v5758_v42, %v7119_v5  ;;  %5775 = vpow2.f32 %v4215_v29  ;;  %v4225_v50 = vmul.f32 1.442695, %v4179_v61  ;;  %v4180_v8 = vsub.f32 0.0, %v7199_v51  ;;  %v3994_v9 = vpop.f32.mrb[81].mxu0  ;;  %v5890_v29 = vld [vmem:[%s5987_s20 + $0x98] sm:$0xff] }
 0x45c   : > { %v5762_v56 = vpop.eup %5761  ;;  %4357 = vst.msk [vmem:[%s7190_s25] sm:$0xff] %vm416_vm1, %v4325_v18  ;;  %v4326_v12 = vmul.f32 %v5760_v32, %v7123_v33  ;;  %v4221_v57 = vmul.f32 1.442695, %v4177_v62  ;;  %v4178_v49 = vsub.f32 0.0, %v7204_v4  ;;  %v4081_v3 = vmul.f32 %v5194_v1, %v7096_v20  ;;  %v5195_v35 = vpop.f32.mrb[82].mxu0  ;;  %v5891_v42 = vld [vmem:[%s5987_s20 + $0x88] sm:$0xff] }
 0x45d   : > { %v5764_v16 = vpop.eup %5763  ;;  %4360 = vst.msk [vmem:[%s7190_s25 + $0x18] sm:$0xff] %vm416_vm1, %v4328_v21  ;;  %v4265_v5 = vadd.f32 1.0, %v5762_v56  ;;  %5777 = vpow2.f32 %v4225_v50  ;;  %v4227_v23 = vmul.f32 1.442695, %v4180_v8  ;;  %v4079_v52 = vmul.f32 %v7096_v20, %v3994_v9  ;;  %v3997_v46 = vpop.f32.mrb[83].mxu0 }
 0x45e   : > { %v5766_v11 = vpop.eup %5765  ;;  %4358 = vst.msk [vmem:[%s7190_s25 + $0x8] sm:$0xff] %vm416_vm1, %v4326_v12  ;;  %v4268_v33 = vadd.f32 1.0, %v5764_v16  ;;  %5779 = vpow2.f32 %v4221_v57  ;;  %v4223_v53 = vmul.f32 1.442695, %v4178_v49  ;;  %v4119_v0 = vadd.f32 %v7101_v10, %v4081_v3 }
 0x45f   : > { %v5768_v24 = vpop.eup %5767  ;;  %5781 = vrcp.f32 %v4265_v5  ;;  %v4266_v30 = vadd.f32 1.0, %v5766_v11  ;;  %v4117_v59 = vadd.f32 %v7101_v10, %v4079_v52  ;;  %v4082_v55 = vmul.f32 %v5195_v35, %v7096_v20  ;;  %v5892_v5 = vld [vmem:[%s5987_s20 + $0xb0] sm:$0xff] }
 0x460   : > { %v5770_v14 = vpop.eup %5769  ;;  %5783 = vrcp.f32 %v4268_v33  ;;  %v4271_v15 = vadd.f32 1.0, %v5768_v24  ;;  %v7224_v47 = vadd.f32 %v5888_v37, %v4119_v0  ;;  %v4080_v22 = vmul.f32 %v7096_v20, %v3997_v46 }
 0x461   : > { %5785 = vrcp.f32 %v4266_v30  ;;  %v4269_v36 = vadd.f32 1.0, %v5770_v14  ;;  %v7228_v43 = vadd.f32 %v5889_v40, %v4117_v59  ;;  %v4120_v28 = vadd.f32 %v7101_v10, %v4082_v55 }
 0x462   : > { %5787 = vrcp.f32 %v4271_v15  ;;  %v4183_v54 = vsub.f32 0.0, %v7224_v47  ;;  %v4118_v25 = vadd.f32 %v7101_v10, %v4080_v22  ;;  %v5198_v31 = vpop.f32.mrb[84].mxu0  ;;  %v5772_v19 = vpop.eup %5771  ;;  %v5893_v15 = vld [vmem:[%s5987_s20 + $0xa0] sm:$0xff]  ;;  %v5894_v22 = vld [vmem:[%s5987_s20 + $0xb8] sm:$0xff] }
 0x463   : > { %5789 = vrcp.f32 %v4269_v36  ;;  %v4181_v63 = vsub.f32 0.0, %v7228_v43  ;;  %v7235_v58 = vadd.f32 %v5890_v29, %v4120_v28  ;;  %v4085_v41 = vmul.f32 %v5198_v31, %v7096_v20  ;;  %v4010_v2 = vpop.f32.mrb[85].mxu0 }
 0x464   : > { %v5774_v60 = vpop.eup %5773  ;;  %v4272_v61 = vadd.f32 1.0, %v5772_v19  ;;  %5791 = vpow2.f32 %v4227_v23  ;;  %v4233_v26 = vmul.f32 1.442695, %v4183_v54  ;;  %v7239_v18 = vadd.f32 %v5891_v42, %v4118_v25  ;;  %v5199_v62 = vpop.f32.mrb[86].mxu0 }
 0x465   : > { %v5776_v45 = vpop.eup %5775  ;;  %v4331_v1 = vmul.f32 %v5774_v60, %v7134_v34  ;;  %5793 = vpow2.f32 %v4223_v53  ;;  %v4229_v32 = vmul.f32 1.442695, %v4181_v63  ;;  %v4184_v21 = vsub.f32 0.0, %v7235_v58  ;;  %v4013_v50 = vpop.f32.mrb[87].mxu0  ;;  %v5895_v60 = vld [vmem:[%s5987_s20 + $0xa8] sm:$0xff] }
 0x466   : > { %5795 = vrcp.f32 %v4272_v61  ;;  %v4270_v8 = vadd.f32 1.0, %v5776_v45  ;;  %v4182_v9 = vsub.f32 0.0, %v7239_v18  ;;  %v4123_v56 = vadd.f32 %v7101_v10, %v4085_v41 }
 0x467   : > { %v5778_v12 = vpop.eup %5777  ;;  %4363 = vst.msk [vmem:[%s7190_s25 + $0x30] sm:$0xff] %vm416_vm1, %v4331_v1  ;;  %5797 = vpow2.f32 %v4233_v26  ;;  %v4235_v57 = vmul.f32 1.442695, %v4184_v21  ;;  %v4083_v49 = vmul.f32 %v7096_v20, %v4010_v2  ;;  %v4086_v34 = vmul.f32 %v5199_v62, %v7096_v20 }
 0x468   : > { %v5780_v3 = vpop.eup %5779  ;;  %5799 = vrcp.f32 %v4270_v8  ;;  %v4275_v35 = vadd.f32 1.0, %v5778_v12  ;;  %v4231_v16 = vmul.f32 1.442695, %v4182_v9  ;;  %v7250_v23 = vadd.f32 %v5892_v5, %v4123_v56 }
 0x469   : > { %v5782_v52 = vpop.eup %5781  ;;  %v4273_v46 = vadd.f32 1.0, %v5780_v3  ;;  %5801 = vpow2.f32 %v4229_v32  ;;  %v4121_v11 = vadd.f32 %v7101_v10, %v4083_v49  ;;  %v4124_v33 = vadd.f32 %v7101_v10, %v4086_v34 }
 0x46a   : > { %v5784_v53 = vpop.eup %5783  ;;  %v4329_v0 = vmul.f32 %v5782_v52, %v7138_v39  ;;  %5803 = vrcp.f32 %v4275_v35  ;;  %v4187_v24 = vsub.f32 0.0, %v7250_v23  ;;  %v4084_v30 = vmul.f32 %v7096_v20, %v4013_v50  ;;  %v5202_v59 = vpop.f32.mrb[88].mxu0  ;;  %v5896_v35 = vld [vmem:[%s5987_s20 + $0xd0] sm:$0xff] }
 0x46b   : > { %v5786_v55 = vpop.eup %5785  ;;  %v4332_v14 = vmul.f32 %v5784_v53, %v7143_v27  ;;  %5805 = vrcp.f32 %v4273_v46  ;;  %v7259_v37 = vadd.f32 %v5893_v15, %v4121_v11  ;;  %v7262_v36 = vadd.f32 %v5894_v22, %v4124_v33  ;;  %v4026_v40 = vpop.f32.mrb[89].mxu0  ;;  %v5898_v22 = vld [vmem:[%s5987_s20 + $0xd8] sm:$0xff] }
 0x46c   : > { %v5788_v39 = vpop.eup %5787  ;;  %4361 = vst.msk [vmem:[%s7190_s25 + $0x20] sm:$0xff] %vm416_vm1, %v4329_v0  ;;  %v4330_v28 = vmul.f32 %v5786_v55, %v7147_v44  ;;  %5807 = vpow2.f32 %v4235_v57  ;;  %v4241_v54 = vmul.f32 1.442695, %v4187_v24  ;;  %v4122_v25 = vadd.f32 %v7101_v10, %v4084_v30  ;;  %v5203_v27 = vpop.f32.mrb[90].mxu0 }
 0x46d   : > { %v5790_v31 = vpop.eup %5789  ;;  %4364 = vst.msk [vmem:[%s7190_s25 + $0x38] sm:$0xff] %vm416_vm1, %v4332_v14  ;;  %v4335_v19 = vmul.f32 %v5788_v39, %v7156_v13  ;;  %5809 = vpow2.f32 %v4231_v16  ;;  %v4185_v63 = vsub.f32 0.0, %v7259_v37  ;;  %v4188_v29 = vsub.f32 0.0, %v7262_v36  ;;  %v4029_v41 = vpop.f32.mrb[91].mxu0 }
 0x46e   : > { %v5792_v44 = vpop.eup %5791  ;;  %4362 = vst.msk [vmem:[%s7190_s25 + $0x28] sm:$0xff] %vm416_vm1, %v4330_v28  ;;  %v4333_v2 = vmul.f32 %v5790_v31, %v7160_v38  ;;  %5811 = vpow2.f32 %v4241_v54  ;;  %v7277_v61 = vadd.f32 %v5895_v60, %v4122_v25  ;;  %v4089_v26 = vmul.f32 %v5202_v59, %v7096_v20 }
 0x46f   : > { %v5794_v42 = vpop.eup %5793  ;;  %4367 = vst.msk [vmem:[%s7190_s25 + $0x50] sm:$0xff] %vm416_vm1, %v4335_v19  ;;  %v4276_v13 = vadd.f32 1.0, %v5792_v44  ;;  %v4237_v62 = vmul.f32 1.442695, %v4185_v63  ;;  %v4243_v45 = vmul.f32 1.442695, %v4188_v29  ;;  %v4087_v1 = vmul.f32 %v7096_v20, %v4026_v40 }
 0x470   : > { %v5796_v32 = vpop.eup %5795  ;;  %4365 = vst.msk [vmem:[%s7190_s25 + $0x40] sm:$0xff] %vm416_vm1, %v4333_v2  ;;  %v4274_v21 = vadd.f32 1.0, %v5794_v42  ;;  %v4186_v38 = vsub.f32 0.0, %v7277_v61  ;;  %v4127_v50 = vadd.f32 %v7101_v10, %v4089_v26  ;;  %v4090_v8 = vmul.f32 %v5203_v27, %v7096_v20  ;;  %v5899_v27 = vld [vmem:[%s5987_s20 + $0xc8] sm:$0xff] }
 0x471   : > { %v5798_v9 = vpop.eup %5797  ;;  %v4336_v56 = vmul.f32 %v5796_v32, %v7168_v48  ;;  %5813 = vrcp.f32 %v4276_v13  ;;  %v4125_v12 = vadd.f32 %v7101_v10, %v4087_v1  ;;  %v4088_v57 = vmul.f32 %v7096_v20, %v4029_v41  ;;  %v5897_v48 = vld [vmem:[%s5987_s20 + $0xc0] sm:$0xff] }
 0x472   : > { %v5800_v49 = vpop.eup %5799  ;;  %5815 = vrcp.f32 %v4274_v21  ;;  %v4279_v34 = vadd.f32 1.0, %v5798_v9  ;;  %v4239_v3 = vmul.f32 1.442695, %v4186_v38  ;;  %v7292_v16 = vadd.f32 %v5896_v35, %v4127_v50  ;;  %v5206_v5 = vpop.f32.mrb[92].mxu0 }
 0x473   : > { %v5802_v52 = vpop.eup %5801  ;;  %4368 = vst.msk [vmem:[%s7190_s25 + $0x58] sm:$0xff] %vm416_vm1, %v4336_v56  ;;  %v4334_v46 = vmul.f32 %v5800_v49, %v7172_v7  ;;  %5817 = vpow2.f32 %v4237_v62  ;;  %v7298_v11 = vadd.f32 %v5897_v48, %v4125_v12  ;;  %v4128_v33 = vadd.f32 %v7101_v10, %v4090_v8  ;;  %v4042_v53 = vpop.f32.mrb[93].mxu0  ;;  %v5900_v8 = vld [vmem:[%s5987_s20 + $0xf0] sm:$0xff]  ;;  %v5901_v49 = vld [vmem:[%s5987_s20 + $0xe0] sm:$0xff] }
 0x474   : > { %v5804_v0 = vpop.eup %5803  ;;  %5819 = vrcp.f32 %v4279_v34  ;;  %v4277_v24 = vadd.f32 1.0, %v5802_v52  ;;  %v4191_v30 = vsub.f32 0.0, %v7292_v16  ;;  %v4126_v59 = vadd.f32 %v7101_v10, %v4088_v57  ;;  %v5207_v55 = vpop.f32.mrb[94].mxu0 }
 0x475   : > { %v5806_v14 = vpop.eup %5805  ;;  %4366 = vst.msk [vmem:[%s7190_s25 + $0x48] sm:$0xff] %vm416_vm1, %v4334_v46  ;;  %v4339_v7 = vmul.f32 %v5804_v0, %v7182_v17  ;;  %5821 = vpow2.f32 %v4243_v45  ;;  %v4189_v15 = vsub.f32 0.0, %v7298_v11  ;;  %v7308_v40 = vadd.f32 %v5898_v22, %v4128_v33  ;;  %v4045_v39 = vpop.f32.mrb[95].mxu0  ;;  %v5903_v33 = vld [vmem:[%s5987_s20 + $0xe8] sm:$0xff] }
 0x476   : > { %v5808_v28 = vpop.eup %5807  ;;  %v4337_v54 = vmul.f32 %v5806_v14, %v7193_v6  ;;  %5823 = vrcp.f32 %v4277_v24  ;;  %v4249_v25 = vmul.f32 1.442695, %v4191_v30  ;;  %v7312_v31 = vadd.f32 %v5899_v27, %v4126_v59 }
 0x477   : > { %v5810_v19 = vpop.eup %5809  ;;  %4371 = vst.msk [vmem:[%s7190_s25 + $0x70] sm:$0xff] %vm416_vm1, %v4339_v7  ;;  %v4280_v17 = vadd.f32 1.0, %v5808_v28  ;;  %5825 = vpow2.f32 %v4239_v3  ;;  %v4245_v63 = vmul.f32 1.442695, %v4189_v15  ;;  %v4192_v29 = vsub.f32 0.0, %v7308_v40 }
 0x478   : > { %v5812_v41 = vpop.eup %5811  ;;  %4369 = vst.msk [vmem:[%s7190_s25 + $0x60] sm:$0xff] %vm416_vm1, %v4337_v54  ;;  %v4278_v44 = vadd.f32 1.0, %v5810_v19  ;;  %5827 = vpow2.f32 %v4249_v25  ;;  %v4190_v6 = vsub.f32 0.0, %v7312_v31  ;;  %v4093_v2 = vmul.f32 %v5206_v5, %v7096_v20  ;;  %v5902_v5 = vld [vmem:[%s5987_s20 + $0xf8] sm:$0xff] }
 0x479   : > { %5829 = vrcp.f32 %v4280_v17  ;;  %v4283_v60 = vadd.f32 1.0, %v5812_v41  ;;  %v4251_v26 = vmul.f32 1.442695, %v4192_v29  ;;  %v4091_v42 = vmul.f32 %v7096_v20, %v4042_v53 }
 0x47a   : > { %5831 = vrcp.f32 %v4278_v44  ;;  %v4247_v13 = vmul.f32 1.442695, %v4190_v6  ;;  %v4131_v62 = vadd.f32 %v7101_v10, %v4093_v2  ;;  %v4094_v45 = vmul.f32 %v5207_v55, %v7096_v20 }
 0x47b   : > { %v5814_v1 = vpop.eup %5813  ;;  %5833 = vrcp.f32 %v4283_v60  ;;  %v4129_v32 = vadd.f32 %v7101_v10, %v4091_v42  ;;  %v4092_v21 = vmul.f32 %v7096_v20, %v4045_v39 }
 0x47c   : > { %v5816_v38 = vpop.eup %5815  ;;  %v4340_v50 = vmul.f32 %v5814_v1, %v7199_v51  ;;  %5835 = vpow2.f32 %v4245_v63  ;;  %v7328_v9 = vadd.f32 %v5900_v8, %v4131_v62  ;;  %v4132_v56 = vadd.f32 %v7101_v10, %v4094_v45 }
 0x47d   : > { %v5818_v12 = vpop.eup %5817  ;;  %v4338_v57 = vmul.f32 %v5816_v38, %v7204_v4  ;;  %5837 = vpow2.f32 %v4251_v26  ;;  %v7333_v34 = vadd.f32 %v5901_v49, %v4129_v32  ;;  %v4130_v20 = vadd.f32 %v7101_v10, %v4092_v21 }
 0x47e   : > { %v5820_v3 = vpop.eup %5819  ;;  %4372 = vst.msk [vmem:[%s7190_s25 + $0x78] sm:$0xff] %vm416_vm1, %v4340_v50  ;;  %v4281_v51 = vadd.f32 1.0, %v5818_v12  ;;  %5839 = vpow2.f32 %v4247_v13  ;;  %v4195_v35 = vsub.f32 0.0, %v7328_v9  ;;  %v7340_v52 = vadd.f32 %v5902_v5, %v4132_v56 }
 0x47f   : > { %v5822_v46 = vpop.eup %5821  ;;  %4370 = vst.msk [vmem:[%s7190_s25 + $0x68] sm:$0xff] %vm416_vm1, %v4338_v57  ;;  %v4343_v4 = vmul.f32 %v5820_v3, %v7224_v47  ;;  %v4193_v48 = vsub.f32 0.0, %v7333_v34  ;;  %v7347_v10 = vadd.f32 %v5903_v33, %v4130_v20 }
 0x480   : > { %v5824_v53 = vpop.eup %5823  ;;  %5841 = vrcp.f32 %v4281_v51  ;;  %v4284_v0 = vadd.f32 1.0, %v5822_v46  ;;  %v4257_v24 = vmul.f32 1.442695, %v4195_v35  ;;  %v4196_v30 = vsub.f32 0.0, %v7340_v52 }
 0x481   : > { %v5826_v59 = vpop.eup %5825  ;;  %4375 = vst.msk [vmem:[%s7190_s25 + $0x90] sm:$0xff] %vm416_vm1, %v4343_v4  ;;  %v4341_v55 = vmul.f32 %v5824_v53, %v7228_v43  ;;  %v4194_v14 = vsub.f32 0.0, %v7347_v10  ;;  %v4253_v15 = vmul.f32 1.442695, %v4193_v48 }
 0x482   : > { %v5828_v47 = vpop.eup %5827  ;;  %5843 = vrcp.f32 %v4284_v0  ;;  %v4282_v7 = vadd.f32 1.0, %v5826_v59  ;;  %v4259_v28 = vmul.f32 1.442695, %v4196_v30 }
 0x483   : > { %v5830_v22 = vpop.eup %5829  ;;  %4373 = vst.msk [vmem:[%s7190_s25 + $0x80] sm:$0xff] %vm416_vm1, %v4341_v55  ;;  %v4287_v39 = vadd.f32 1.0, %v5828_v47  ;;  %5845 = vpow2.f32 %v4257_v24  ;;  %v4255_v43 = vmul.f32 1.442695, %v4194_v14 }
 0x484   : > { %v5832_v54 = vpop.eup %5831  ;;  %v4344_v25 = vmul.f32 %v5830_v22, %v7235_v58  ;;  %5847 = vrcp.f32 %v4282_v7 }
 0x485   : > { %v5834_v27 = vpop.eup %5833  ;;  %v4342_v19 = vmul.f32 %v5832_v54, %v7239_v18  ;;  %5849 = vrcp.f32 %v4287_v39 }
 0x486   : > { %v5836_v17 = vpop.eup %5835  ;;  %4376 = vst.msk [vmem:[%s7190_s25 + $0x98] sm:$0xff] %vm416_vm1, %v4344_v25  ;;  %v4347_v63 = vmul.f32 %v5834_v27, %v7250_v23  ;;  %5851 = vpow2.f32 %v4253_v15 }
 0x487   : > { %v5838_v29 = vpop.eup %5837  ;;  %4374 = vst.msk [vmem:[%s7190_s25 + $0x88] sm:$0xff] %vm416_vm1, %v4342_v19  ;;  %v4285_v41 = vadd.f32 1.0, %v5836_v17  ;;  %5853 = vpow2.f32 %v4259_v28 }
 0x488   : > { %v5840_v44 = vpop.eup %5839  ;;  %4379 = vst.msk [vmem:[%s7190_s25 + $0xb0] sm:$0xff] %vm416_vm1, %v4347_v63  ;;  %v4288_v58 = vadd.f32 1.0, %v5838_v29  ;;  %5855 = vpow2.f32 %v4255_v43 }
 0x489   : > { %5857 = vrcp.f32 %v4285_v41  ;;  %v4286_v18 = vadd.f32 1.0, %v5840_v44 }
 0x48a   : > { %v5842_v6 = vpop.eup %5841  ;;  %5859 = vrcp.f32 %v4288_v58 }
 0x48b   : > { %v4345_v23 = vmul.f32 %v5842_v6, %v7259_v37  ;;  %5861 = vrcp.f32 %v4286_v18 }
 0x48c   : > { %v5844_v2 = vpop.eup %5843 }
 0x48d   : > { %v5846_v60 = vpop.eup %5845  ;;  %4377 = vst.msk [vmem:[%s7190_s25 + $0xa0] sm:$0xff] %vm416_vm1, %v4345_v23  ;;  %v4348_v26 = vmul.f32 %v5844_v2, %v7262_v36 }
 0x48e   : > { %v5848_v42 = vpop.eup %5847  ;;  %v4291_v13 = vadd.f32 1.0, %v5846_v60 }
 0x48f   : > { %v5850_v62 = vpop.eup %5849  ;;  %4380 = vst.msk [vmem:[%s7190_s25 + $0xb8] sm:$0xff] %vm416_vm1, %v4348_v26  ;;  %v4346_v45 = vmul.f32 %v5848_v42, %v7277_v61 }
 0x490   : > { %v5852_v1 = vpop.eup %5851  ;;  %v4351_v32 = vmul.f32 %v5850_v62, %v7292_v16  ;;  %5863 = vrcp.f32 %v4291_v13 }
 0x491   : > { %v5854_v37 = vpop.eup %5853  ;;  %4378 = vst.msk [vmem:[%s7190_s25 + $0xa8] sm:$0xff] %vm416_vm1, %v4346_v45  ;;  %v4289_v21 = vadd.f32 1.0, %v5852_v1 }
 0x492   : > { %v5856_v38 = vpop.eup %5855  ;;  %4383 = vst.msk [vmem:[%s7190_s25 + $0xd0] sm:$0xff] %vm416_vm1, %v4351_v32  ;;  %v4292_v36 = vadd.f32 1.0, %v5854_v37 }
 0x493   : > { %v5858_v50 = vpop.eup %5857  ;;  %5865 = vrcp.f32 %v4289_v21  ;;  %v4290_v8 = vadd.f32 1.0, %v5856_v38 }
 0x494   : > { %v5860_v61 = vpop.eup %5859  ;;  %v4349_v56 = vmul.f32 %v5858_v50, %v7298_v11  ;;  %5867 = vrcp.f32 %v4292_v36 }
 0x495   : > { %v5862_v16 = vpop.eup %5861  ;;  %v4352_v12 = vmul.f32 %v5860_v61, %v7308_v40  ;;  %5869 = vrcp.f32 %v4290_v8 }
 0x496   : > { %4381 = vst.msk [vmem:[%s7190_s25 + $0xc0] sm:$0xff] %vm416_vm1, %v4349_v56  ;;  %v4350_v57 = vmul.f32 %v5862_v16, %v7312_v31 }
 0x497   : > { %4384 = vst.msk [vmem:[%s7190_s25 + $0xd8] sm:$0xff] %vm416_vm1, %v4352_v12 }
 0x498   : > { %4382 = vst.msk [vmem:[%s7190_s25 + $0xc8] sm:$0xff] %vm416_vm1, %v4350_v57 }
 0x49a   : > { %v5864_v49 = vpop.eup %5863 }
 0x49b   : > { %v4355_v20 = vmul.f32 %v5864_v49, %v7328_v9 }
 0x49d   : > { %v5866_v11 = vpop.eup %5865  ;;  %4387 = vst.msk [vmem:[%s7190_s25 + $0xf0] sm:$0xff] %vm416_vm1, %v4355_v20 }
 0x49e   : > { %v5868_v3 = vpop.eup %5867  ;;  %v4353_v40 = vmul.f32 %v5866_v11, %v7333_v34 }
 0x49f   : > { %v5870_v51 = vpop.eup %5869  ;;  %v4356_v35 = vmul.f32 %v5868_v3, %v7340_v52 }
 0x4a0   : > { %4385 = vst.msk [vmem:[%s7190_s25 + $0xe0] sm:$0xff] %vm416_vm1, %v4353_v40  ;;  %v4354_v31 = vmul.f32 %v5870_v51, %v7347_v10 }
 0x4a1   : > { %4388 = vst.msk [vmem:[%s7190_s25 + $0xf8] sm:$0xff] %vm416_vm1, %v4356_v35 }
 0x4a2   : > { %4386 = vst.msk [vmem:[%s7190_s25 + $0xe8] sm:$0xff] %vm416_vm1, %v4354_v31 }
 0x4a3 PF: > { %s20_s13 = sadd.s32 1, %s5910_s13  }
 0x4a4   : > { %p17_p4 = scmp.ge.s32.totalorder %s20_s13, 4  }
 0x4a6   :  { %19 = sbr.rel (!%p17_p4) target bundleno = 1 (0x1), region = 101 }

</bundles_post_ra>
